<compile_context>
chip_gen: v5e
topology: v5e:2x2
jax: 0.10.0
libtpu: 0.0.40
codegen_flags: <defaults>
</compile_context>

<pallas_src>
import functools

import jax
import jax.numpy as jnp
import numpy as np
from jax import lax
from jax.experimental import pallas as pl
from jax.experimental.pallas import tpu as pltpu


def _round_up(x, m):
    return (x + m - 1) // m * m


def _tpu_vmem_capacity_bytes():
    try:
        info = pltpu.get_tpu_info()
        for name in ("vmem_capacity_bytes", "vmem_size_bytes", "vmem_bytes"):
            v = getattr(info, name, None)
            if v:
                return int(v)
    except Exception:
        pass
    return 64 * 1024 * 1024  # conservative default (v7x-sized VMEM)


def _tpu_num_tensorcores():
    try:
        kind = jax.devices()[0].device_kind.lower()
        if "v7" in kind or "7x" in kind:
            return 2
    except Exception:
        pass
    return 1


def lstm_kernel(x_ref, w_ih_ref, w_hh_ref, b_ref, w_out_ref, b_out_ref,
                out_ref, gx_ref, h_ref, c_ref, *, seq_len, mask_tail, unroll):
    # x_ref:     (Ts, Tb, E8)   time-major embedded chunk
    # w_ih_ref:  (E8, 4*Hp)     input->gates weights ([i,f,o,g] padded layout)
    # w_hh_ref:  (Hp, 4*Hp)     hidden->gates weights ([i,f,o,g] padded layout)
    # b_ref:     (1, 4*Hp)      combined bias (b_ih + b_hh), padded layout
    # w_out_ref: (Hp, 128)      output projection (padded, col 0 real)
    # b_out_ref: (1, 128)       output projection bias (padded)
    # out_ref:   (Tb, 128)      lane-dense output block (col 0 real)
    # gx_ref:    (Ts, Tb, 4*Hp) VMEM scratch: hoisted input-projection gates
    # h_ref/c_ref: (Tb, Hp)     VMEM scratch: recurrent state across S-chunks
    s_idx = pl.program_id(1)
    ts, tb, e = x_ref.shape
    hp = w_hh_ref.shape[0]

    @pl.when(s_idx == 0)
    def _():
        h_ref[...] = jnp.zeros_like(h_ref)
        c_ref[...] = jnp.zeros_like(c_ref)

    # ---- Hoisted input projection: one big MXU matmul for the whole chunk.
    x_flat = x_ref[...].reshape(ts * tb, e)                        # (Ts*Tb, E8)
    gx = (jnp.dot(x_flat, w_ih_ref[...],
                  preferred_element_type=jnp.float32)
          + b_ref[...])                                            # (Ts*Tb, 4Hp)
    gx_ref[...] = gx.reshape(ts, tb, 4 * hp)

    # Load the recurrent weights once; only h @ W_hh stays on the serial path.
    w_hh = w_hh_ref[...]
    # TODO(synk): a fully weight-stationary W_hh (pltpu.matmul_push_rhs /
    # matmul_acc_lhs / matmul_pop) could remove the per-step MXU weight push;
    # relying on Mosaic hoisting of the loaded value for now.

    # ---- Serial recurrence: only h @ W_hh remains inside the loop.
    def step(t, carry):
        h, c = carry
        gates = gx_ref[t] + jnp.dot(h, w_hh,
                                    preferred_element_type=jnp.float32)
        # Gate layout [i, f, o, g]: one sigmoid over 3*Hp lanes, one tanh.
        sig = jax.nn.sigmoid(gates[:, :3 * hp])
        i_g = sig[:, 0 * hp:1 * hp]
        f_g = sig[:, 1 * hp:2 * hp]
        o_g = sig[:, 2 * hp:3 * hp]
        g_g = jnp.tanh(gates[:, 3 * hp:4 * hp])
        c_new = f_g * c + i_g * g_g
        h_new = o_g * jnp.tanh(c_new)
        if mask_tail:
            valid = (s_idx * ts + t) < seq_len
            h_new = jnp.where(valid, h_new, h)
            c_new = jnp.where(valid, c_new, c)
        return (h_new, c_new)

    h, c = lax.fori_loop(0, ts, step, (h_ref[...], c_ref[...]), unroll=unroll)
    h_ref[...] = h
    c_ref[...] = c

    # ---- Final projection only after the last S-chunk; lane-dense store.
    @pl.when(s_idx == pl.num_programs(1) - 1)
    def _():
        out_ref[...] = (jnp.dot(h, w_out_ref[...],
                                preferred_element_type=jnp.float32)
                        + b_out_ref[...]).astype(out_ref.dtype)


def _pad_gate_cols(w, h, hp):
    """(rows, 4H) in PyTorch [i,f,g,o] order -> (rows, 4Hp) in [i,f,o,g] order,
    each gate chunk zero-padded to Hp columns (lane-tile aligned)."""
    order = (0, 1, 3, 2)  # i, f, o, g
    return jnp.concatenate(
        [jnp.pad(w[:, k * h:(k + 1) * h], ((0, 0), (0, hp - h))) for k in order],
        axis=1)


def _select_batch_tile(B, num_cores):
    if B > 128:
        B_pad = _round_up(B, 128)
        return B_pad, 128
    B_pad = _round_up(B, 8)
    if num_cores >= 2 and B_pad >= 16:
        tb = _round_up(-(-B_pad // 2), 8)   # two tiles -> both TCs busy on v7x
        return 2 * tb, tb
    return B_pad, B_pad


def _select_seq_chunk(S, TB, E, HP, vmem_limit, max_ts=128):
    """Largest TS whose working set fits the VMEM budget."""
    ep_lanes = _round_up(E, 128)            # what the x tile really occupies
    e8 = _round_up(E, 8)
    fixed = 4 * (e8 * 4 * HP                # w_ih (single-buffered)
                 + HP * 4 * HP              # w_hh
                 + 8 * 4 * HP               # bias (sublane-padded)
                 + HP * 128 + 8 * 128       # w_out, b_out
                 + 2 * TB * HP              # h, c scratch
                 + 2 * TB * 128)            # out block (double-buffered)
    per_ts = 4 * TB * (4 * HP + 2 * ep_lanes)   # gx scratch + 2x-buffered x tile
    budget = int(vmem_limit * 0.9) - fixed
    ts = max(1, budget // per_ts)
    return int(min(ts, S, max_ts))


def sentiment_lstm_forward(tokens, params):
    emb, w_ih, w_hh, b_ih, b_hh, w_out, b_out = (
        params["embedding"], params["w_ih"], params["w_hh"],
        params["b_ih"], params["b_hh"], params["w_out"], params["b_out"])

    B, S = tokens.shape
    E = emb.shape[1]
    H = w_hh.shape[1]
    O = w_out.shape[0]
    HP = _round_up(H, 128)           # lane-aligned per-gate hidden size
    E8 = _round_up(E, 8)             # MXU-friendly contraction dim
    OUT_LANES = 128                  # lane-dense output block

    vmem_cap = _tpu_vmem_capacity_bytes()
    num_cores = _tpu_num_tensorcores()
    # ~80 MiB on 128 MiB chips (v5e/v6e), ~44 MiB on 64 MiB chips (v7x).
    vmem_limit = 80 * 2**20 if vmem_cap >= 100 * 2**20 else 44 * 2**20
    vmem_limit = min(vmem_limit, int(vmem_cap * 0.75))

    B_pad, TB = _select_batch_tile(B, num_cores)
    TS = _select_seq_chunk(S, TB, E, HP, vmem_limit)
    S_pad = _round_up(S, TS)
    mask_tail = S_pad != S
    # Cap the unroll: full unroll at realistic Tb*Hp is spill-bound.
    live_bytes = TB * 4 * HP * 4
    unroll = 8 if live_bytes <= 64 * 1024 else 4
    unroll = max(1, min(unroll, TS))

    # Embedding lookup (gather) in plain JAX; padding_idx=0 row is zeros, so
    # padded batch rows see zero inputs and are sliced away at the end.
    tokens_p = jnp.pad(tokens, ((0, B_pad - B), (0, 0)))
    x = jnp.take(emb, tokens_p, axis=0)                       # (B_pad, S, E)
    x = jnp.transpose(x, (1, 0, 2))                           # (S, B_pad, E)
    x = jnp.pad(x, ((0, S_pad - S), (0, 0), (0, E8 - E)))     # time + E padding

    # Transpose + pad weights; gate slices land on 128-lane boundaries.
    w_ih_p = jnp.pad(_pad_gate_cols(jnp.transpose(w_ih), H, HP),
                     ((0, E8 - E), (0, 0)))                             # (E8, 4Hp)
    w_hh_p = jnp.pad(_pad_gate_cols(jnp.transpose(w_hh), H, HP),
                     ((0, HP - H), (0, 0)))                             # (Hp, 4Hp)
    b_p = _pad_gate_cols((b_ih + b_hh)[None, :], H, HP)                 # (1, 4Hp)
    w_out_p = jnp.zeros((HP, OUT_LANES), jnp.float32).at[:H, :O].set(
        jnp.transpose(w_out))                                           # (Hp, 128)
    b_out_p = jnp.zeros((1, OUT_LANES), jnp.float32).at[0, :O].set(b_out)

    grid = (B_pad // TB, S_pad // TS)
    kernel = functools.partial(lstm_kernel, seq_len=S, mask_tail=mask_tail,
                               unroll=unroll)

    def build(single_buffer_weights):
        def const_spec(shape):
            kwargs = {}
            if single_buffer_weights:
                kwargs["pipeline_mode"] = pl.Buffered(1)
            return pl.BlockSpec(shape, lambda bt, st: (0,) * len(shape), **kwargs)

        return pl.pallas_call(
            kernel,
            out_shape=jax.ShapeDtypeStruct((B_pad, OUT_LANES), jnp.float32),
            grid_spec=pltpu.PrefetchScalarGridSpec(
                num_scalar_prefetch=0,
                grid=grid,
                in_specs=[
                    pl.BlockSpec((TS, TB, E8), lambda bt, st: (st, bt, 0)),
                    const_spec((E8, 4 * HP)),
                    const_spec((HP, 4 * HP)),
                    const_spec((1, 4 * HP)),
                    const_spec((HP, OUT_LANES)),
                    const_spec((1, OUT_LANES)),
                ],
                out_specs=pl.BlockSpec((TB, OUT_LANES), lambda bt, st: (bt, 0)),
                scratch_shapes=[
                    pltpu.VMEM((TS, TB, 4 * HP), jnp.float32),   # hoisted gates
                    pltpu.VMEM((TB, HP), jnp.float32),           # h state
                    pltpu.VMEM((TB, HP), jnp.float32),           # c state
                ],
            ),
            compiler_params=pltpu.CompilerParams(
                dimension_semantics=("parallel", "arbitrary"),
                vmem_limit_bytes=int(vmem_limit),
            ),
        )

    try:
        out = build(True)(x, w_ih_p, w_hh_p, b_p, w_out_p, b_out_p)
    except Exception:
        # Fallback if single-buffered invariant operands are rejected.
        out = build(False)(x, w_ih_p, w_hh_p, b_p, w_out_p, b_out_p)

    return out[:B, :O]


def reference_forward(tokens, params):
    emb, w_ih, w_hh, b_ih, b_hh, w_out, b_out = (
        params["embedding"], params["w_ih"], params["w_hh"],
        params["b_ih"], params["b_hh"], params["w_out"], params["b_out"])
    H = w_hh.shape[1]
    x = jnp.take(emb, tokens, axis=0)            # (B, S, E)
    B, S, _ = x.shape

    def step(carry, x_t):
        h, c = carry
        gates = x_t @ w_ih.T + h @ w_hh.T + b_ih + b_hh
        i_g = jax.nn.sigmoid(gates[:, 0 * H:1 * H])
        f_g = jax.nn.sigmoid(gates[:, 1 * H:2 * H])
        g_g = jnp.tanh(gates[:, 2 * H:3 * H])
        o_g = jax.nn.sigmoid(gates[:, 3 * H:4 * H])
        c_new = f_g * c + i_g * g_g
        h_new = o_g * jnp.tanh(c_new)
        return (h_new, c_new), None

    h0 = jnp.zeros((B, H), jnp.float32)
    c0 = jnp.zeros((B, H), jnp.float32)
    (h_final, _), _ = lax.scan(step, (h0, c0), jnp.transpose(x, (1, 0, 2)))
    return h_final @ w_out.T + b_out


def init_params(key, vocab_size, embedding_dim, hidden_dim, output_dim=1):
    keys = jax.random.split(key, 7)
    k_lstm = 1.0 / np.sqrt(hidden_dim)
    k_lin = 1.0 / np.sqrt(hidden_dim)

    emb = jax.random.normal(keys[0], (vocab_size + 1, embedding_dim), jnp.float32)
    emb = emb.at[0].set(0.0)  # padding_idx=0

    params = {
        "embedding": emb,
        "w_ih": jax.random.uniform(keys[1], (4 * hidden_dim, embedding_dim),
                                   jnp.float32, -k_lstm, k_lstm),
        "w_hh": jax.random.uniform(keys[2], (4 * hidden_dim, hidden_dim),
                                   jnp.float32, -k_lstm, k_lstm),
        "b_ih": jax.random.uniform(keys[3], (4 * hidden_dim,),
                                   jnp.float32, -k_lstm, k_lstm),
        "b_hh": jax.random.uniform(keys[4], (4 * hidden_dim,),
                                   jnp.float32, -k_lstm, k_lstm),
        "w_out": jax.random.uniform(keys[5], (output_dim, hidden_dim),
                                    jnp.float32, -k_lin, k_lin),
        "b_out": jax.random.uniform(keys[6], (output_dim,),
                                    jnp.float32, -k_lin, k_lin),
    }
    return params


if __name__ == "__main__":
    vocab_size = 50
    embedding_dim = 16
    hidden_dim = 32
    output_dim = 1
    batch, seq = 2, 8

    key = jax.random.PRNGKey(0)
    k_params, k_tokens = jax.random.split(key)
    params = init_params(k_params, vocab_size, embedding_dim, hidden_dim, output_dim)
    tokens = jax.random.randint(k_tokens, (batch, seq), 0, vocab_size + 1,
                                dtype=jnp.int32)

    out = sentiment_lstm_forward(tokens, params)
    out = jax.block_until_ready(out)

    ref = jax.block_until_ready(reference_forward(tokens, params))
    assert out.shape == (batch, output_dim)
    np.testing.assert_allclose(np.asarray(out), np.asarray(ref),
                               rtol=1e-4, atol=1e-4)

    print("KERNEL_OK")
</pallas_src>

<mosaic_0001>
module attributes {stable_mosaic.version = 11 : i64} {
  func.func @lstm_kernel(%arg0: i32, %arg1: i32, %arg2: memref<8x8x16xf32, #tpu.memory_space<vmem>>, %arg3: memref<16x512xf32, #tpu.memory_space<vmem>>, %arg4: memref<128x512xf32, #tpu.memory_space<vmem>>, %arg5: memref<1x512xf32, #tpu.memory_space<vmem>>, %arg6: memref<128x128xf32, #tpu.memory_space<vmem>>, %arg7: memref<1x128xf32, #tpu.memory_space<vmem>>, %arg8: memref<8x128xf32, #tpu.memory_space<vmem>>, %arg9: memref<8x8x512xf32, #tpu.memory_space<vmem>>, %arg10: memref<8x128xf32, #tpu.memory_space<vmem>>, %arg11: memref<8x128xf32, #tpu.memory_space<vmem>>) attributes {dimension_semantics = [#tpu.dimension_semantics<parallel>, #tpu.dimension_semantics<arbitrary>], iteration_bounds = array<i64: 1, 1>, scalar_prefetch = 0 : i64, scratch_operands = 3 : i64, tpu.core_type = #tpu.core_type<tc>, window_params = [{transform_indices = @transform_0, window_bounds = array<i64: 8, 8, 16>}, {pipeline_mode = #tpu.pipeline_mode<synchronous>, transform_indices = @transform_1, window_bounds = array<i64: 16, 512>}, {pipeline_mode = #tpu.pipeline_mode<synchronous>, transform_indices = @transform_2, window_bounds = array<i64: 128, 512>}, {pipeline_mode = #tpu.pipeline_mode<synchronous>, transform_indices = @transform_3, window_bounds = array<i64: 1, 512>}, {pipeline_mode = #tpu.pipeline_mode<synchronous>, transform_indices = @transform_4, window_bounds = array<i64: 128, 128>}, {pipeline_mode = #tpu.pipeline_mode<synchronous>, transform_indices = @transform_5, window_bounds = array<i64: 1, 128>}, {transform_indices = @transform_6, window_bounds = array<i64: 8, 128>}]} {
    %c0_i32 = arith.constant 0 : i32
    %0 = arith.cmpi eq, %arg1, %c0_i32 : i32
    %1 = arith.extui %0 : i1 to i32
    %c0_i32_0 = arith.constant 0 : i32
    %2 = arith.cmpi ne, %1, %c0_i32_0 : i32
    scf.if %2 {
      %cst_55 = arith.constant 0.000000e+00 : f32
      %188 = vector.broadcast %cst_55 : f32 to vector<8x128xf32>
      %c0_56 = arith.constant 0 : index
      %c0_57 = arith.constant 0 : index
      %189 = vector.load %arg10[%c0_56, %c0_57] : memref<8x128xf32, #tpu.memory_space<vmem>>, vector<8x128xf32>
      tpu.vector_store %arg10[%c0_56, %c0_57], %188 {strides = array<i32>} : memref<8x128xf32, #tpu.memory_space<vmem>>, vector<8x128xf32>,
      %cst_58 = arith.constant 0.000000e+00 : f32
      %190 = vector.broadcast %cst_58 : f32 to vector<8x128xf32>
      %c0_59 = arith.constant 0 : index
      %c0_60 = arith.constant 0 : index
      %191 = vector.load %arg11[%c0_59, %c0_60] : memref<8x128xf32, #tpu.memory_space<vmem>>, vector<8x128xf32>
      tpu.vector_store %arg11[%c0_59, %c0_60], %190 {strides = array<i32>} : memref<8x128xf32, #tpu.memory_space<vmem>>, vector<8x128xf32>,
    } else {
    }
    %c0 = arith.constant 0 : index
    %c0_1 = arith.constant 0 : index
    %c0_2 = arith.constant 0 : index
    %3 = vector.load %arg2[%c0, %c0_1, %c0_2] : memref<8x8x16xf32, #tpu.memory_space<vmem>>, vector<8x8x16xf32>
    %4 = vector.shape_cast %3 : vector<8x8x16xf32> to vector<64x16xf32>
    %c0_3 = arith.constant 0 : index
    %c0_4 = arith.constant 0 : index
    %5 = vector.load %arg3[%c0_3, %c0_4] : memref<16x512xf32, #tpu.memory_space<vmem>>, vector<16x512xf32>
    %cst = arith.constant dense<0.000000e+00> : vector<64x512xf32>
    %6 = tpu.matmul %4, %5, %cst {dimension_numbers = #tpu.dot_dimension_numbers<[1], [0], [0], [1], [0, 0, 1, 1], [], []>} : vector<64x16xf32>, vector<16x512xf32>, vector<64x512xf32> -> vector<64x512xf32>
    %c0_5 = arith.constant 0 : index
    %c0_6 = arith.constant 0 : index
    %7 = vector.load %arg5[%c0_5, %c0_6] : memref<1x512xf32, #tpu.memory_space<vmem>>, vector<1x512xf32>
    %8 = vector.broadcast %7 : vector<1x512xf32> to vector<64x512xf32>
    %9 = arith.addf %6, %8 : vector<64x512xf32>
    %10 = vector.shape_cast %9 : vector<64x512xf32> to vector<8x8x512xf32>
    %c0_7 = arith.constant 0 : index
    %c0_8 = arith.constant 0 : index
    %c0_9 = arith.constant 0 : index
    %11 = vector.load %arg9[%c0_7, %c0_8, %c0_9] : memref<8x8x512xf32, #tpu.memory_space<vmem>>, vector<8x8x512xf32>
    tpu.vector_store %arg9[%c0_7, %c0_8, %c0_9], %10 {strides = array<i32>} : memref<8x8x512xf32, #tpu.memory_space<vmem>>, vector<8x8x512xf32>,
    %c0_10 = arith.constant 0 : index
    %c0_11 = arith.constant 0 : index
    %12 = vector.load %arg4[%c0_10, %c0_11] : memref<128x512xf32, #tpu.memory_space<vmem>>, vector<128x512xf32>
    %c0_12 = arith.constant 0 : index
    %c0_13 = arith.constant 0 : index
    %13 = vector.load %arg10[%c0_12, %c0_13] : memref<8x128xf32, #tpu.memory_space<vmem>>, vector<8x128xf32>
    %c0_14 = arith.constant 0 : index
    %c0_15 = arith.constant 0 : index
    %14 = vector.load %arg11[%c0_14, %c0_15] : memref<8x128xf32, #tpu.memory_space<vmem>>, vector<8x128xf32>
    %c0_i32_16 = arith.constant 0 : i32
    %15 = arith.index_cast %c0_i32_16 : i32 to index
    %c0_17 = arith.constant 0 : index
    %c0_18 = arith.constant 0 : index
    %16 = vector.load %arg9[%15, %c0_17, %c0_18] : memref<8x8x512xf32, #tpu.memory_space<vmem>>, vector<1x8x512xf32>
    %17 = vector.shape_cast %16 : vector<1x8x512xf32> to vector<8x512xf32>
    %cst_19 = arith.constant dense<0.000000e+00> : vector<8x512xf32>
    %18 = tpu.matmul %13, %12, %cst_19 {dimension_numbers = #tpu.dot_dimension_numbers<[1], [0], [0], [1], [0, 0, 1, 1], [], []>} : vector<8x128xf32>, vector<128x512xf32>, vector<8x512xf32> -> vector<8x512xf32>
    %19 = arith.addf %17, %18 : vector<8x512xf32>
    %20 = vector.extract_strided_slice %19 {offsets = [0, 0], sizes = [8, 384], strides = [1, 1]} : vector<8x512xf32> to vector<8x384xf32>
    %21 = arith.negf %20 : vector<8x384xf32>
    %22 = math.exp %21 : vector<8x384xf32>
    %cst_20 = arith.constant 1.000000e+00 : f32
    %23 = vector.broadcast %cst_20 : f32 to vector<8x384xf32>
    %24 = arith.addf %23, %22 : vector<8x384xf32>
    %25 = arith.divf %23, %24 : vector<8x384xf32>
    %26 = vector.extract_strided_slice %25 {offsets = [0, 0], sizes = [8, 128], strides = [1, 1]} : vector<8x384xf32> to vector<8x128xf32>
    %27 = vector.extract_strided_slice %25 {offsets = [0, 128], sizes = [8, 128], strides = [1, 1]} : vector<8x384xf32> to vector<8x128xf32>
    %28 = vector.extract_strided_slice %25 {offsets = [0, 256], sizes = [8, 128], strides = [1, 1]} : vector<8x384xf32> to vector<8x128xf32>
    %29 = vector.extract_strided_slice %19 {offsets = [0, 384], sizes = [8, 128], strides = [1, 1]} : vector<8x512xf32> to vector<8x128xf32>
    %30 = math.tanh %29 : vector<8x128xf32>
    %31 = arith.mulf %27, %14 : vector<8x128xf32>
    %32 = arith.mulf %26, %30 : vector<8x128xf32>
    %33 = arith.addf %31, %32 : vector<8x128xf32>
    %34 = math.tanh %33 : vector<8x128xf32>
    %35 = arith.mulf %28, %34 : vector<8x128xf32>
    %c1_i32 = arith.constant 1 : i32
    %36 = arith.index_cast %c1_i32 : i32 to index
    %c0_21 = arith.constant 0 : index
    %c0_22 = arith.constant 0 : index
    %37 = vector.load %arg9[%36, %c0_21, %c0_22] : memref<8x8x512xf32, #tpu.memory_space<vmem>>, vector<1x8x512xf32>
    %38 = vector.shape_cast %37 : vector<1x8x512xf32> to vector<8x512xf32>
    %cst_23 = arith.constant dense<0.000000e+00> : vector<8x512xf32>
    %39 = tpu.matmul %35, %12, %cst_23 {dimension_numbers = #tpu.dot_dimension_numbers<[1], [0], [0], [1], [0, 0, 1, 1], [], []>} : vector<8x128xf32>, vector<128x512xf32>, vector<8x512xf32> -> vector<8x512xf32>
    %40 = arith.addf %38, %39 : vector<8x512xf32>
    %41 = vector.extract_strided_slice %40 {offsets = [0, 0], sizes = [8, 384], strides = [1, 1]} : vector<8x512xf32> to vector<8x384xf32>
    %42 = arith.negf %41 : vector<8x384xf32>
    %43 = math.exp %42 : vector<8x384xf32>
    %cst_24 = arith.constant 1.000000e+00 : f32
    %44 = vector.broadcast %cst_24 : f32 to vector<8x384xf32>
    %45 = arith.addf %44, %43 : vector<8x384xf32>
    %46 = arith.divf %44, %45 : vector<8x384xf32>
    %47 = vector.extract_strided_slice %46 {offsets = [0, 0], sizes = [8, 128], strides = [1, 1]} : vector<8x384xf32> to vector<8x128xf32>
    %48 = vector.extract_strided_slice %46 {offsets = [0, 128], sizes = [8, 128], strides = [1, 1]} : vector<8x384xf32> to vector<8x128xf32>
    %49 = vector.extract_strided_slice %46 {offsets = [0, 256], sizes = [8, 128], strides = [1, 1]} : vector<8x384xf32> to vector<8x128xf32>
    %50 = vector.extract_strided_slice %40 {offsets = [0, 384], sizes = [8, 128], strides = [1, 1]} : vector<8x512xf32> to vector<8x128xf32>
    %51 = math.tanh %50 : vector<8x128xf32>
    %52 = arith.mulf %48, %33 : vector<8x128xf32>
    %53 = arith.mulf %47, %51 : vector<8x128xf32>
    %54 = arith.addf %52, %53 : vector<8x128xf32>
    %55 = math.tanh %54 : vector<8x128xf32>
    %56 = arith.mulf %49, %55 : vector<8x128xf32>
    %c2_i32 = arith.constant 2 : i32
    %57 = arith.index_cast %c2_i32 : i32 to index
    %c0_25 = arith.constant 0 : index
    %c0_26 = arith.constant 0 : index
    %58 = vector.load %arg9[%57, %c0_25, %c0_26] : memref<8x8x512xf32, #tpu.memory_space<vmem>>, vector<1x8x512xf32>
    %59 = vector.shape_cast %58 : vector<1x8x512xf32> to vector<8x512xf32>
    %cst_27 = arith.constant dense<0.000000e+00> : vector<8x512xf32>
    %60 = tpu.matmul %56, %12, %cst_27 {dimension_numbers = #tpu.dot_dimension_numbers<[1], [0], [0], [1], [0, 0, 1, 1], [], []>} : vector<8x128xf32>, vector<128x512xf32>, vector<8x512xf32> -> vector<8x512xf32>
    %61 = arith.addf %59, %60 : vector<8x512xf32>
    %62 = vector.extract_strided_slice %61 {offsets = [0, 0], sizes = [8, 384], strides = [1, 1]} : vector<8x512xf32> to vector<8x384xf32>
    %63 = arith.negf %62 : vector<8x384xf32>
    %64 = math.exp %63 : vector<8x384xf32>
    %cst_28 = arith.constant 1.000000e+00 : f32
    %65 = vector.broadcast %cst_28 : f32 to vector<8x384xf32>
    %66 = arith.addf %65, %64 : vector<8x384xf32>
    %67 = arith.divf %65, %66 : vector<8x384xf32>
    %68 = vector.extract_strided_slice %67 {offsets = [0, 0], sizes = [8, 128], strides = [1, 1]} : vector<8x384xf32> to vector<8x128xf32>
    %69 = vector.extract_strided_slice %67 {offsets = [0, 128], sizes = [8, 128], strides = [1, 1]} : vector<8x384xf32> to vector<8x128xf32>
    %70 = vector.extract_strided_slice %67 {offsets = [0, 256], sizes = [8, 128], strides = [1, 1]} : vector<8x384xf32> to vector<8x128xf32>
    %71 = vector.extract_strided_slice %61 {offsets = [0, 384], sizes = [8, 128], strides = [1, 1]} : vector<8x512xf32> to vector<8x128xf32>
    %72 = math.tanh %71 : vector<8x128xf32>
    %73 = arith.mulf %69, %54 : vector<8x128xf32>
    %74 = arith.mulf %68, %72 : vector<8x128xf32>
    %75 = arith.addf %73, %74 : vector<8x128xf32>
    %76 = math.tanh %75 : vector<8x128xf32>
    %77 = arith.mulf %70, %76 : vector<8x128xf32>
    %c3_i32 = arith.constant 3 : i32
    %78 = arith.index_cast %c3_i32 : i32 to index
    %c0_29 = arith.constant 0 : index
    %c0_30 = arith.constant 0 : index
    %79 = vector.load %arg9[%78, %c0_29, %c0_30] : memref<8x8x512xf32, #tpu.memory_space<vmem>>, vector<1x8x512xf32>
    %80 = vector.shape_cast %79 : vector<1x8x512xf32> to vector<8x512xf32>
    %cst_31 = arith.constant dense<0.000000e+00> : vector<8x512xf32>
    %81 = tpu.matmul %77, %12, %cst_31 {dimension_numbers = #tpu.dot_dimension_numbers<[1], [0], [0], [1], [0, 0, 1, 1], [], []>} : vector<8x128xf32>, vector<128x512xf32>, vector<8x512xf32> -> vector<8x512xf32>
    %82 = arith.addf %80, %81 : vector<8x512xf32>
    %83 = vector.extract_strided_slice %82 {offsets = [0, 0], sizes = [8, 384], strides = [1, 1]} : vector<8x512xf32> to vector<8x384xf32>
    %84 = arith.negf %83 : vector<8x384xf32>
    %85 = math.exp %84 : vector<8x384xf32>
    %cst_32 = arith.constant 1.000000e+00 : f32
    %86 = vector.broadcast %cst_32 : f32 to vector<8x384xf32>
    %87 = arith.addf %86, %85 : vector<8x384xf32>
    %88 = arith.divf %86, %87 : vector<8x384xf32>
    %89 = vector.extract_strided_slice %88 {offsets = [0, 0], sizes = [8, 128], strides = [1, 1]} : vector<8x384xf32> to vector<8x128xf32>
    %90 = vector.extract_strided_slice %88 {offsets = [0, 128], sizes = [8, 128], strides = [1, 1]} : vector<8x384xf32> to vector<8x128xf32>
    %91 = vector.extract_strided_slice %88 {offsets = [0, 256], sizes = [8, 128], strides = [1, 1]} : vector<8x384xf32> to vector<8x128xf32>
    %92 = vector.extract_strided_slice %82 {offsets = [0, 384], sizes = [8, 128], strides = [1, 1]} : vector<8x512xf32> to vector<8x128xf32>
    %93 = math.tanh %92 : vector<8x128xf32>
    %94 = arith.mulf %90, %75 : vector<8x128xf32>
    %95 = arith.mulf %89, %93 : vector<8x128xf32>
    %96 = arith.addf %94, %95 : vector<8x128xf32>
    %97 = math.tanh %96 : vector<8x128xf32>
    %98 = arith.mulf %91, %97 : vector<8x128xf32>
    %c4_i32 = arith.constant 4 : i32
    %99 = arith.index_cast %c4_i32 : i32 to index
    %c0_33 = arith.constant 0 : index
    %c0_34 = arith.constant 0 : index
    %100 = vector.load %arg9[%99, %c0_33, %c0_34] : memref<8x8x512xf32, #tpu.memory_space<vmem>>, vector<1x8x512xf32>
    %101 = vector.shape_cast %100 : vector<1x8x512xf32> to vector<8x512xf32>
    %cst_35 = arith.constant dense<0.000000e+00> : vector<8x512xf32>
    %102 = tpu.matmul %98, %12, %cst_35 {dimension_numbers = #tpu.dot_dimension_numbers<[1], [0], [0], [1], [0, 0, 1, 1], [], []>} : vector<8x128xf32>, vector<128x512xf32>, vector<8x512xf32> -> vector<8x512xf32>
    %103 = arith.addf %101, %102 : vector<8x512xf32>
    %104 = vector.extract_strided_slice %103 {offsets = [0, 0], sizes = [8, 384], strides = [1, 1]} : vector<8x512xf32> to vector<8x384xf32>
    %105 = arith.negf %104 : vector<8x384xf32>
    %106 = math.exp %105 : vector<8x384xf32>
    %cst_36 = arith.constant 1.000000e+00 : f32
    %107 = vector.broadcast %cst_36 : f32 to vector<8x384xf32>
    %108 = arith.addf %107, %106 : vector<8x384xf32>
    %109 = arith.divf %107, %108 : vector<8x384xf32>
    %110 = vector.extract_strided_slice %109 {offsets = [0, 0], sizes = [8, 128], strides = [1, 1]} : vector<8x384xf32> to vector<8x128xf32>
    %111 = vector.extract_strided_slice %109 {offsets = [0, 128], sizes = [8, 128], strides = [1, 1]} : vector<8x384xf32> to vector<8x128xf32>
    %112 = vector.extract_strided_slice %109 {offsets = [0, 256], sizes = [8, 128], strides = [1, 1]} : vector<8x384xf32> to vector<8x128xf32>
    %113 = vector.extract_strided_slice %103 {offsets = [0, 384], sizes = [8, 128], strides = [1, 1]} : vector<8x512xf32> to vector<8x128xf32>
    %114 = math.tanh %113 : vector<8x128xf32>
    %115 = arith.mulf %111, %96 : vector<8x128xf32>
    %116 = arith.mulf %110, %114 : vector<8x128xf32>
    %117 = arith.addf %115, %116 : vector<8x128xf32>
    %118 = math.tanh %117 : vector<8x128xf32>
    %119 = arith.mulf %112, %118 : vector<8x128xf32>
    %c5_i32 = arith.constant 5 : i32
    %120 = arith.index_cast %c5_i32 : i32 to index
    %c0_37 = arith.constant 0 : index
    %c0_38 = arith.constant 0 : index
    %121 = vector.load %arg9[%120, %c0_37, %c0_38] : memref<8x8x512xf32, #tpu.memory_space<vmem>>, vector<1x8x512xf32>
    %122 = vector.shape_cast %121 : vector<1x8x512xf32> to vector<8x512xf32>
    %cst_39 = arith.constant dense<0.000000e+00> : vector<8x512xf32>
    %123 = tpu.matmul %119, %12, %cst_39 {dimension_numbers = #tpu.dot_dimension_numbers<[1], [0], [0], [1], [0, 0, 1, 1], [], []>} : vector<8x128xf32>, vector<128x512xf32>, vector<8x512xf32> -> vector<8x512xf32>
    %124 = arith.addf %122, %123 : vector<8x512xf32>
    %125 = vector.extract_strided_slice %124 {offsets = [0, 0], sizes = [8, 384], strides = [1, 1]} : vector<8x512xf32> to vector<8x384xf32>
    %126 = arith.negf %125 : vector<8x384xf32>
    %127 = math.exp %126 : vector<8x384xf32>
    %cst_40 = arith.constant 1.000000e+00 : f32
    %128 = vector.broadcast %cst_40 : f32 to vector<8x384xf32>
    %129 = arith.addf %128, %127 : vector<8x384xf32>
    %130 = arith.divf %128, %129 : vector<8x384xf32>
    %131 = vector.extract_strided_slice %130 {offsets = [0, 0], sizes = [8, 128], strides = [1, 1]} : vector<8x384xf32> to vector<8x128xf32>
    %132 = vector.extract_strided_slice %130 {offsets = [0, 128], sizes = [8, 128], strides = [1, 1]} : vector<8x384xf32> to vector<8x128xf32>
    %133 = vector.extract_strided_slice %130 {offsets = [0, 256], sizes = [8, 128], strides = [1, 1]} : vector<8x384xf32> to vector<8x128xf32>
    %134 = vector.extract_strided_slice %124 {offsets = [0, 384], sizes = [8, 128], strides = [1, 1]} : vector<8x512xf32> to vector<8x128xf32>
    %135 = math.tanh %134 : vector<8x128xf32>
    %136 = arith.mulf %132, %117 : vector<8x128xf32>
    %137 = arith.mulf %131, %135 : vector<8x128xf32>
    %138 = arith.addf %136, %137 : vector<8x128xf32>
    %139 = math.tanh %138 : vector<8x128xf32>
    %140 = arith.mulf %133, %139 : vector<8x128xf32>
    %c6_i32 = arith.constant 6 : i32
    %141 = arith.index_cast %c6_i32 : i32 to index
    %c0_41 = arith.constant 0 : index
    %c0_42 = arith.constant 0 : index
    %142 = vector.load %arg9[%141, %c0_41, %c0_42] : memref<8x8x512xf32, #tpu.memory_space<vmem>>, vector<1x8x512xf32>
    %143 = vector.shape_cast %142 : vector<1x8x512xf32> to vector<8x512xf32>
    %cst_43 = arith.constant dense<0.000000e+00> : vector<8x512xf32>
    %144 = tpu.matmul %140, %12, %cst_43 {dimension_numbers = #tpu.dot_dimension_numbers<[1], [0], [0], [1], [0, 0, 1, 1], [], []>} : vector<8x128xf32>, vector<128x512xf32>, vector<8x512xf32> -> vector<8x512xf32>
    %145 = arith.addf %143, %144 : vector<8x512xf32>
    %146 = vector.extract_strided_slice %145 {offsets = [0, 0], sizes = [8, 384], strides = [1, 1]} : vector<8x512xf32> to vector<8x384xf32>
    %147 = arith.negf %146 : vector<8x384xf32>
    %148 = math.exp %147 : vector<8x384xf32>
    %cst_44 = arith.constant 1.000000e+00 : f32
    %149 = vector.broadcast %cst_44 : f32 to vector<8x384xf32>
    %150 = arith.addf %149, %148 : vector<8x384xf32>
    %151 = arith.divf %149, %150 : vector<8x384xf32>
    %152 = vector.extract_strided_slice %151 {offsets = [0, 0], sizes = [8, 128], strides = [1, 1]} : vector<8x384xf32> to vector<8x128xf32>
    %153 = vector.extract_strided_slice %151 {offsets = [0, 128], sizes = [8, 128], strides = [1, 1]} : vector<8x384xf32> to vector<8x128xf32>
    %154 = vector.extract_strided_slice %151 {offsets = [0, 256], sizes = [8, 128], strides = [1, 1]} : vector<8x384xf32> to vector<8x128xf32>
    %155 = vector.extract_strided_slice %145 {offsets = [0, 384], sizes = [8, 128], strides = [1, 1]} : vector<8x512xf32> to vector<8x128xf32>
    %156 = math.tanh %155 : vector<8x128xf32>
    %157 = arith.mulf %153, %138 : vector<8x128xf32>
    %158 = arith.mulf %152, %156 : vector<8x128xf32>
    %159 = arith.addf %157, %158 : vector<8x128xf32>
    %160 = math.tanh %159 : vector<8x128xf32>
    %161 = arith.mulf %154, %160 : vector<8x128xf32>
    %c7_i32 = arith.constant 7 : i32
    %162 = arith.index_cast %c7_i32 : i32 to index
    %c0_45 = arith.constant 0 : index
    %c0_46 = arith.constant 0 : index
    %163 = vector.load %arg9[%162, %c0_45, %c0_46] : memref<8x8x512xf32, #tpu.memory_space<vmem>>, vector<1x8x512xf32>
    %164 = vector.shape_cast %163 : vector<1x8x512xf32> to vector<8x512xf32>
    %cst_47 = arith.constant dense<0.000000e+00> : vector<8x512xf32>
    %165 = tpu.matmul %161, %12, %cst_47 {dimension_numbers = #tpu.dot_dimension_numbers<[1], [0], [0], [1], [0, 0, 1, 1], [], []>} : vector<8x128xf32>, vector<128x512xf32>, vector<8x512xf32> -> vector<8x512xf32>
    %166 = arith.addf %164, %165 : vector<8x512xf32>
    %167 = vector.extract_strided_slice %166 {offsets = [0, 0], sizes = [8, 384], strides = [1, 1]} : vector<8x512xf32> to vector<8x384xf32>
    %168 = arith.negf %167 : vector<8x384xf32>
    %169 = math.exp %168 : vector<8x384xf32>
    %cst_48 = arith.constant 1.000000e+00 : f32
    %170 = vector.broadcast %cst_48 : f32 to vector<8x384xf32>
    %171 = arith.addf %170, %169 : vector<8x384xf32>
    %172 = arith.divf %170, %171 : vector<8x384xf32>
    %173 = vector.extract_strided_slice %172 {offsets = [0, 0], sizes = [8, 128], strides = [1, 1]} : vector<8x384xf32> to vector<8x128xf32>
    %174 = vector.extract_strided_slice %172 {offsets = [0, 128], sizes = [8, 128], strides = [1, 1]} : vector<8x384xf32> to vector<8x128xf32>
    %175 = vector.extract_strided_slice %172 {offsets = [0, 256], sizes = [8, 128], strides = [1, 1]} : vector<8x384xf32> to vector<8x128xf32>
    %176 = vector.extract_strided_slice %166 {offsets = [0, 384], sizes = [8, 128], strides = [1, 1]} : vector<8x512xf32> to vector<8x128xf32>
    %177 = math.tanh %176 : vector<8x128xf32>
    %178 = arith.mulf %174, %159 : vector<8x128xf32>
    %179 = arith.mulf %173, %177 : vector<8x128xf32>
    %180 = arith.addf %178, %179 : vector<8x128xf32>
    %181 = math.tanh %180 : vector<8x128xf32>
    %182 = arith.mulf %175, %181 : vector<8x128xf32>
    %c8_i32 = arith.constant 8 : i32
    %c0_49 = arith.constant 0 : index
    %c0_50 = arith.constant 0 : index
    %183 = vector.load %arg10[%c0_49, %c0_50] : memref<8x128xf32, #tpu.memory_space<vmem>>, vector<8x128xf32>
    tpu.vector_store %arg10[%c0_49, %c0_50], %182 {strides = array<i32>} : memref<8x128xf32, #tpu.memory_space<vmem>>, vector<8x128xf32>,
    %c0_51 = arith.constant 0 : index
    %c0_52 = arith.constant 0 : index
    %184 = vector.load %arg11[%c0_51, %c0_52] : memref<8x128xf32, #tpu.memory_space<vmem>>, vector<8x128xf32>
    tpu.vector_store %arg11[%c0_51, %c0_52], %180 {strides = array<i32>} : memref<8x128xf32, #tpu.memory_space<vmem>>, vector<8x128xf32>,
    %c0_i32_53 = arith.constant 0 : i32
    %185 = arith.cmpi eq, %arg1, %c0_i32_53 : i32
    %186 = arith.extui %185 : i1 to i32
    %c0_i32_54 = arith.constant 0 : i32
    %187 = arith.cmpi ne, %186, %c0_i32_54 : i32
    scf.if %187 {
      %c0_55 = arith.constant 0 : index
      %c0_56 = arith.constant 0 : index
      %188 = vector.load %arg6[%c0_55, %c0_56] : memref<128x128xf32, #tpu.memory_space<vmem>>, vector<128x128xf32>
      %cst_57 = arith.constant dense<0.000000e+00> : vector<8x128xf32>
      %189 = tpu.matmul %182, %188, %cst_57 {dimension_numbers = #tpu.dot_dimension_numbers<[1], [0], [0], [1], [0, 0, 1, 1], [], []>} : vector<8x128xf32>, vector<128x128xf32>, vector<8x128xf32> -> vector<8x128xf32>
      %c0_58 = arith.constant 0 : index
      %c0_59 = arith.constant 0 : index
      %190 = vector.load %arg7[%c0_58, %c0_59] : memref<1x128xf32, #tpu.memory_space<vmem>>, vector<1x128xf32>
      %191 = vector.broadcast %190 : vector<1x128xf32> to vector<8x128xf32>
      %192 = arith.addf %189, %191 : vector<8x128xf32>
      %c0_60 = arith.constant 0 : index
      %c0_61 = arith.constant 0 : index
      %193 = vector.load %arg8[%c0_60, %c0_61] : memref<8x128xf32, #tpu.memory_space<vmem>>, vector<8x128xf32>
      tpu.vector_store %arg8[%c0_60, %c0_61], %192 {strides = array<i32>} : memref<8x128xf32, #tpu.memory_space<vmem>>, vector<8x128xf32>,
    } else {
    }
    return
  }
  func.func @transform_0(%arg0: i32, %arg1: i32) -> (i32, i32, i32) {
    %c0_i32 = arith.constant 0 : i32
    %c0_i32_0 = arith.constant 0 : i32
    return %arg1, %arg0, %c0_i32 : i32, i32, i32
  }
  func.func @transform_1(%arg0: i32, %arg1: i32) -> (i32, i32) {
    %c0_i32 = arith.constant 0 : i32
    %c0_i32_0 = arith.constant 0 : i32
    %c0_i32_1 = arith.constant 0 : i32
    return %c0_i32, %c0_i32_0 : i32, i32
  }
  func.func @transform_2(%arg0: i32, %arg1: i32) -> (i32, i32) {
    %c0_i32 = arith.constant 0 : i32
    %c0_i32_0 = arith.constant 0 : i32
    %c0_i32_1 = arith.constant 0 : i32
    return %c0_i32, %c0_i32_0 : i32, i32
  }
  func.func @transform_3(%arg0: i32, %arg1: i32) -> (i32, i32) {
    %c0_i32 = arith.constant 0 : i32
    %c0_i32_0 = arith.constant 0 : i32
    %c0_i32_1 = arith.constant 0 : i32
    return %c0_i32, %c0_i32_0 : i32, i32
  }
  func.func @transform_4(%arg0: i32, %arg1: i32) -> (i32, i32) {
    %c0_i32 = arith.constant 0 : i32
    %c0_i32_0 = arith.constant 0 : i32
    %c0_i32_1 = arith.constant 0 : i32
    return %c0_i32, %c0_i32_0 : i32, i32
  }
  func.func @transform_5(%arg0: i32, %arg1: i32) -> (i32, i32) {
    %c0_i32 = arith.constant 0 : i32
    %c0_i32_0 = arith.constant 0 : i32
    %c0_i32_1 = arith.constant 0 : i32
    return %c0_i32, %c0_i32_0 : i32, i32
  }
  func.func @transform_6(%arg0: i32, %arg1: i32) -> (i32, i32) {
    %c0_i32 = arith.constant 0 : i32
    %c0_i32_0 = arith.constant 0 : i32
    return %arg0, %c0_i32 : i32, i32
  }
}

module attributes {stable_mosaic.version = 11 : i64} {
  func.func @lstm_kernel(%arg0: i32, %arg1: i32, %arg2: memref<8x8x16xf32, #tpu.memory_space<vmem>>, %arg3: memref<16x512xf32, #tpu.memory_space<vmem>>, %arg4: memref<128x512xf32, #tpu.memory_space<vmem>>, %arg5: memref<1x512xf32, #tpu.memory_space<vmem>>, %arg6: memref<128x128xf32, #tpu.memory_space<vmem>>, %arg7: memref<1x128xf32, #tpu.memory_space<vmem>>, %arg8: memref<8x128xf32, #tpu.memory_space<vmem>>, %arg9: memref<8x8x512xf32, #tpu.memory_space<vmem>>, %arg10: memref<8x128xf32, #tpu.memory_space<vmem>>, %arg11: memref<8x128xf32, #tpu.memory_space<vmem>>) attributes {dimension_semantics = [#tpu.dimension_semantics<parallel>, #tpu.dimension_semantics<arbitrary>], iteration_bounds = array<i64: 1, 1>, scalar_prefetch = 0 : i64, scratch_operands = 3 : i64, tpu.core_type = #tpu.core_type<tc>, window_params = [{transform_indices = @transform_0, window_bounds = array<i64: 8, 8, 16>}, {pipeline_mode = #tpu.pipeline_mode<synchronous>, transform_indices = @transform_1, window_bounds = array<i64: 16, 512>}, {pipeline_mode = #tpu.pipeline_mode<synchronous>, transform_indices = @transform_2, window_bounds = array<i64: 128, 512>}, {pipeline_mode = #tpu.pipeline_mode<synchronous>, transform_indices = @transform_3, window_bounds = array<i64: 1, 512>}, {pipeline_mode = #tpu.pipeline_mode<synchronous>, transform_indices = @transform_4, window_bounds = array<i64: 128, 128>}, {pipeline_mode = #tpu.pipeline_mode<synchronous>, transform_indices = @transform_5, window_bounds = array<i64: 1, 128>}, {transform_indices = @transform_6, window_bounds = array<i64: 8, 128>}]} {
    %c0_i32 = arith.constant 0 : i32
    %0 = arith.cmpi eq, %arg1, %c0_i32 : i32
    %1 = arith.extui %0 : i1 to i32
    %c0_i32_0 = arith.constant 0 : i32
    %2 = arith.cmpi ne, %1, %c0_i32_0 : i32
    scf.if %2 {
      %cst_55 = arith.constant 0.000000e+00 : f32
      %188 = vector.broadcast %cst_55 : f32 to vector<8x128xf32>
      %c0_56 = arith.constant 0 : index
      %c0_57 = arith.constant 0 : index
      %189 = vector.load %arg10[%c0_56, %c0_57] : memref<8x128xf32, #tpu.memory_space<vmem>>, vector<8x128xf32>
      tpu.vector_store %arg10[%c0_56, %c0_57], %188 {strides = array<i32>} : memref<8x128xf32, #tpu.memory_space<vmem>>, vector<8x128xf32>,
      %cst_58 = arith.constant 0.000000e+00 : f32
      %190 = vector.broadcast %cst_58 : f32 to vector<8x128xf32>
      %c0_59 = arith.constant 0 : index
      %c0_60 = arith.constant 0 : index
      %191 = vector.load %arg11[%c0_59, %c0_60] : memref<8x128xf32, #tpu.memory_space<vmem>>, vector<8x128xf32>
      tpu.vector_store %arg11[%c0_59, %c0_60], %190 {strides = array<i32>} : memref<8x128xf32, #tpu.memory_space<vmem>>, vector<8x128xf32>,
    } else {
    }
    %c0 = arith.constant 0 : index
    %c0_1 = arith.constant 0 : index
    %c0_2 = arith.constant 0 : index
    %3 = vector.load %arg2[%c0, %c0_1, %c0_2] : memref<8x8x16xf32, #tpu.memory_space<vmem>>, vector<8x8x16xf32>
    %4 = vector.shape_cast %3 : vector<8x8x16xf32> to vector<64x16xf32>
    %c0_3 = arith.constant 0 : index
    %c0_4 = arith.constant 0 : index
    %5 = vector.load %arg3[%c0_3, %c0_4] : memref<16x512xf32, #tpu.memory_space<vmem>>, vector<16x512xf32>
    %cst = arith.constant dense<0.000000e+00> : vector<64x512xf32>
    %6 = tpu.matmul %4, %5, %cst {dimension_numbers = #tpu.dot_dimension_numbers<[1], [0], [0], [1], [0, 0, 1, 1], [], []>} : vector<64x16xf32>, vector<16x512xf32>, vector<64x512xf32> -> vector<64x512xf32>
    %c0_5 = arith.constant 0 : index
    %c0_6 = arith.constant 0 : index
    %7 = vector.load %arg5[%c0_5, %c0_6] : memref<1x512xf32, #tpu.memory_space<vmem>>, vector<1x512xf32>
    %8 = vector.broadcast %7 : vector<1x512xf32> to vector<64x512xf32>
    %9 = arith.addf %6, %8 : vector<64x512xf32>
    %10 = vector.shape_cast %9 : vector<64x512xf32> to vector<8x8x512xf32>
    %c0_7 = arith.constant 0 : index
    %c0_8 = arith.constant 0 : index
    %c0_9 = arith.constant 0 : index
    %11 = vector.load %arg9[%c0_7, %c0_8, %c0_9] : memref<8x8x512xf32, #tpu.memory_space<vmem>>, vector<8x8x512xf32>
    tpu.vector_store %arg9[%c0_7, %c0_8, %c0_9], %10 {strides = array<i32>} : memref<8x8x512xf32, #tpu.memory_space<vmem>>, vector<8x8x512xf32>,
    %c0_10 = arith.constant 0 : index
    %c0_11 = arith.constant 0 : index
    %12 = vector.load %arg4[%c0_10, %c0_11] : memref<128x512xf32, #tpu.memory_space<vmem>>, vector<128x512xf32>
    %c0_12 = arith.constant 0 : index
    %c0_13 = arith.constant 0 : index
    %13 = vector.load %arg10[%c0_12, %c0_13] : memref<8x128xf32, #tpu.memory_space<vmem>>, vector<8x128xf32>
    %c0_14 = arith.constant 0 : index
    %c0_15 = arith.constant 0 : index
    %14 = vector.load %arg11[%c0_14, %c0_15] : memref<8x128xf32, #tpu.memory_space<vmem>>, vector<8x128xf32>
    %c0_i32_16 = arith.constant 0 : i32
    %15 = arith.index_cast %c0_i32_16 : i32 to index
    %c0_17 = arith.constant 0 : index
    %c0_18 = arith.constant 0 : index
    %16 = vector.load %arg9[%15, %c0_17, %c0_18] : memref<8x8x512xf32, #tpu.memory_space<vmem>>, vector<1x8x512xf32>
    %17 = vector.shape_cast %16 : vector<1x8x512xf32> to vector<8x512xf32>
    %cst_19 = arith.constant dense<0.000000e+00> : vector<8x512xf32>
    %18 = tpu.matmul %13, %12, %cst_19 {dimension_numbers = #tpu.dot_dimension_numbers<[1], [0], [0], [1], [0, 0, 1, 1], [], []>} : vector<8x128xf32>, vector<128x512xf32>, vector<8x512xf32> -> vector<8x512xf32>
    %19 = arith.addf %17, %18 : vector<8x512xf32>
    %20 = vector.extract_strided_slice %19 {offsets = [0, 0], sizes = [8, 384], strides = [1, 1]} : vector<8x512xf32> to vector<8x384xf32>
    %21 = arith.negf %20 : vector<8x384xf32>
    %22 = math.exp %21 : vector<8x384xf32>
    %cst_20 = arith.constant 1.000000e+00 : f32
    %23 = vector.broadcast %cst_20 : f32 to vector<8x384xf32>
    %24 = arith.addf %23, %22 : vector<8x384xf32>
    %25 = arith.divf %23, %24 : vector<8x384xf32>
    %26 = vector.extract_strided_slice %25 {offsets = [0, 0], sizes = [8, 128], strides = [1, 1]} : vector<8x384xf32> to vector<8x128xf32>
    %27 = vector.extract_strided_slice %25 {offsets = [0, 128], sizes = [8, 128], strides = [1, 1]} : vector<8x384xf32> to vector<8x128xf32>
    %28 = vector.extract_strided_slice %25 {offsets = [0, 256], sizes = [8, 128], strides = [1, 1]} : vector<8x384xf32> to vector<8x128xf32>
    %29 = vector.extract_strided_slice %19 {offsets = [0, 384], sizes = [8, 128], strides = [1, 1]} : vector<8x512xf32> to vector<8x128xf32>
    %30 = math.tanh %29 : vector<8x128xf32>
    %31 = arith.mulf %27, %14 : vector<8x128xf32>
    %32 = arith.mulf %26, %30 : vector<8x128xf32>
    %33 = arith.addf %31, %32 : vector<8x128xf32>
    %34 = math.tanh %33 : vector<8x128xf32>
    %35 = arith.mulf %28, %34 : vector<8x128xf32>
    %c1_i32 = arith.constant 1 : i32
    %36 = arith.index_cast %c1_i32 : i32 to index
    %c0_21 = arith.constant 0 : index
    %c0_22 = arith.constant 0 : index
    %37 = vector.load %arg9[%36, %c0_21, %c0_22] : memref<8x8x512xf32, #tpu.memory_space<vmem>>, vector<1x8x512xf32>
    %38 = vector.shape_cast %37 : vector<1x8x512xf32> to vector<8x512xf32>
    %cst_23 = arith.constant dense<0.000000e+00> : vector<8x512xf32>
    %39 = tpu.matmul %35, %12, %cst_23 {dimension_numbers = #tpu.dot_dimension_numbers<[1], [0], [0], [1], [0, 0, 1, 1], [], []>} : vector<8x128xf32>, vector<128x512xf32>, vector<8x512xf32> -> vector<8x512xf32>
    %40 = arith.addf %38, %39 : vector<8x512xf32>
    %41 = vector.extract_strided_slice %40 {offsets = [0, 0], sizes = [8, 384], strides = [1, 1]} : vector<8x512xf32> to vector<8x384xf32>
    %42 = arith.negf %41 : vector<8x384xf32>
    %43 = math.exp %42 : vector<8x384xf32>
    %cst_24 = arith.constant 1.000000e+00 : f32
    %44 = vector.broadcast %cst_24 : f32 to vector<8x384xf32>
    %45 = arith.addf %44, %43 : vector<8x384xf32>
    %46 = arith.divf %44, %45 : vector<8x384xf32>
    %47 = vector.extract_strided_slice %46 {offsets = [0, 0], sizes = [8, 128], strides = [1, 1]} : vector<8x384xf32> to vector<8x128xf32>
    %48 = vector.extract_strided_slice %46 {offsets = [0, 128], sizes = [8, 128], strides = [1, 1]} : vector<8x384xf32> to vector<8x128xf32>
    %49 = vector.extract_strided_slice %46 {offsets = [0, 256], sizes = [8, 128], strides = [1, 1]} : vector<8x384xf32> to vector<8x128xf32>
    %50 = vector.extract_strided_slice %40 {offsets = [0, 384], sizes = [8, 128], strides = [1, 1]} : vector<8x512xf32> to vector<8x128xf32>
    %51 = math.tanh %50 : vector<8x128xf32>
    %52 = arith.mulf %48, %33 : vector<8x128xf32>
    %53 = arith.mulf %47, %51 : vector<8x128xf32>
    %54 = arith.addf %52, %53 : vector<8x128xf32>
    %55 = math.tanh %54 : vector<8x128xf32>
    %56 = arith.mulf %49, %55 : vector<8x128xf32>
    %c2_i32 = arith.constant 2 : i32
    %57 = arith.index_cast %c2_i32 : i32 to index
    %c0_25 = arith.constant 0 : index
    %c0_26 = arith.constant 0 : index
    %58 = vector.load %arg9[%57, %c0_25, %c0_26] : memref<8x8x512xf32, #tpu.memory_space<vmem>>, vector<1x8x512xf32>
    %59 = vector.shape_cast %58 : vector<1x8x512xf32> to vector<8x512xf32>
    %cst_27 = arith.constant dense<0.000000e+00> : vector<8x512xf32>
    %60 = tpu.matmul %56, %12, %cst_27 {dimension_numbers = #tpu.dot_dimension_numbers<[1], [0], [0], [1], [0, 0, 1, 1], [], []>} : vector<8x128xf32>, vector<128x512xf32>, vector<8x512xf32> -> vector<8x512xf32>
    %61 = arith.addf %59, %60 : vector<8x512xf32>
    %62 = vector.extract_strided_slice %61 {offsets = [0, 0], sizes = [8, 384], strides = [1, 1]} : vector<8x512xf32> to vector<8x384xf32>
    %63 = arith.negf %62 : vector<8x384xf32>
    %64 = math.exp %63 : vector<8x384xf32>
    %cst_28 = arith.constant 1.000000e+00 : f32
    %65 = vector.broadcast %cst_28 : f32 to vector<8x384xf32>
    %66 = arith.addf %65, %64 : vector<8x384xf32>
    %67 = arith.divf %65, %66 : vector<8x384xf32>
    %68 = vector.extract_strided_slice %67 {offsets = [0, 0], sizes = [8, 128], strides = [1, 1]} : vector<8x384xf32> to vector<8x128xf32>
    %69 = vector.extract_strided_slice %67 {offsets = [0, 128], sizes = [8, 128], strides = [1, 1]} : vector<8x384xf32> to vector<8x128xf32>
    %70 = vector.extract_strided_slice %67 {offsets = [0, 256], sizes = [8, 128], strides = [1, 1]} : vector<8x384xf32> to vector<8x128xf32>
    %71 = vector.extract_strided_slice %61 {offsets = [0, 384], sizes = [8, 128], strides = [1, 1]} : vector<8x512xf32> to vector<8x128xf32>
    %72 = math.tanh %71 : vector<8x128xf32>
    %73 = arith.mulf %69, %54 : vector<8x128xf32>
    %74 = arith.mulf %68, %72 : vector<8x128xf32>
    %75 = arith.addf %73, %74 : vector<8x128xf32>
    %76 = math.tanh %75 : vector<8x128xf32>
    %77 = arith.mulf %70, %76 : vector<8x128xf32>
    %c3_i32 = arith.constant 3 : i32
    %78 = arith.index_cast %c3_i32 : i32 to index
    %c0_29 = arith.constant 0 : index
    %c0_30 = arith.constant 0 : index
    %79 = vector.load %arg9[%78, %c0_29, %c0_30] : memref<8x8x512xf32, #tpu.memory_space<vmem>>, vector<1x8x512xf32>
    %80 = vector.shape_cast %79 : vector<1x8x512xf32> to vector<8x512xf32>
    %cst_31 = arith.constant dense<0.000000e+00> : vector<8x512xf32>
    %81 = tpu.matmul %77, %12, %cst_31 {dimension_numbers = #tpu.dot_dimension_numbers<[1], [0], [0], [1], [0, 0, 1, 1], [], []>} : vector<8x128xf32>, vector<128x512xf32>, vector<8x512xf32> -> vector<8x512xf32>
    %82 = arith.addf %80, %81 : vector<8x512xf32>
    %83 = vector.extract_strided_slice %82 {offsets = [0, 0], sizes = [8, 384], strides = [1, 1]} : vector<8x512xf32> to vector<8x384xf32>
    %84 = arith.negf %83 : vector<8x384xf32>
    %85 = math.exp %84 : vector<8x384xf32>
    %cst_32 = arith.constant 1.000000e+00 : f32
    %86 = vector.broadcast %cst_32 : f32 to vector<8x384xf32>
    %87 = arith.addf %86, %85 : vector<8x384xf32>
    %88 = arith.divf %86, %87 : vector<8x384xf32>
    %89 = vector.extract_strided_slice %88 {offsets = [0, 0], sizes = [8, 128], strides = [1, 1]} : vector<8x384xf32> to vector<8x128xf32>
    %90 = vector.extract_strided_slice %88 {offsets = [0, 128], sizes = [8, 128], strides = [1, 1]} : vector<8x384xf32> to vector<8x128xf32>
    %91 = vector.extract_strided_slice %88 {offsets = [0, 256], sizes = [8, 128], strides = [1, 1]} : vector<8x384xf32> to vector<8x128xf32>
    %92 = vector.extract_strided_slice %82 {offsets = [0, 384], sizes = [8, 128], strides = [1, 1]} : vector<8x512xf32> to vector<8x128xf32>
    %93 = math.tanh %92 : vector<8x128xf32>
    %94 = arith.mulf %90, %75 : vector<8x128xf32>
    %95 = arith.mulf %89, %93 : vector<8x128xf32>
    %96 = arith.addf %94, %95 : vector<8x128xf32>
    %97 = math.tanh %96 : vector<8x128xf32>
    %98 = arith.mulf %91, %97 : vector<8x128xf32>
    %c4_i32 = arith.constant 4 : i32
    %99 = arith.index_cast %c4_i32 : i32 to index
    %c0_33 = arith.constant 0 : index
    %c0_34 = arith.constant 0 : index
    %100 = vector.load %arg9[%99, %c0_33, %c0_34] : memref<8x8x512xf32, #tpu.memory_space<vmem>>, vector<1x8x512xf32>
    %101 = vector.shape_cast %100 : vector<1x8x512xf32> to vector<8x512xf32>
    %cst_35 = arith.constant dense<0.000000e+00> : vector<8x512xf32>
    %102 = tpu.matmul %98, %12, %cst_35 {dimension_numbers = #tpu.dot_dimension_numbers<[1], [0], [0], [1], [0, 0, 1, 1], [], []>} : vector<8x128xf32>, vector<128x512xf32>, vector<8x512xf32> -> vector<8x512xf32>
    %103 = arith.addf %101, %102 : vector<8x512xf32>
    %104 = vector.extract_strided_slice %103 {offsets = [0, 0], sizes = [8, 384], strides = [1, 1]} : vector<8x512xf32> to vector<8x384xf32>
    %105 = arith.negf %104 : vector<8x384xf32>
    %106 = math.exp %105 : vector<8x384xf32>
    %cst_36 = arith.constant 1.000000e+00 : f32
    %107 = vector.broadcast %cst_36 : f32 to vector<8x384xf32>
    %108 = arith.addf %107, %106 : vector<8x384xf32>
    %109 = arith.divf %107, %108 : vector<8x384xf32>
    %110 = vector.extract_strided_slice %109 {offsets = [0, 0], sizes = [8, 128], strides = [1, 1]} : vector<8x384xf32> to vector<8x128xf32>
    %111 = vector.extract_strided_slice %109 {offsets = [0, 128], sizes = [8, 128], strides = [1, 1]} : vector<8x384xf32> to vector<8x128xf32>
    %112 = vector.extract_strided_slice %109 {offsets = [0, 256], sizes = [8, 128], strides = [1, 1]} : vector<8x384xf32> to vector<8x128xf32>
    %113 = vector.extract_strided_slice %103 {offsets = [0, 384], sizes = [8, 128], strides = [1, 1]} : vector<8x512xf32> to vector<8x128xf32>
    %114 = math.tanh %113 : vector<8x128xf32>
    %115 = arith.mulf %111, %96 : vector<8x128xf32>
    %116 = arith.mulf %110, %114 : vector<8x128xf32>
    %117 = arith.addf %115, %116 : vector<8x128xf32>
    %118 = math.tanh %117 : vector<8x128xf32>
    %119 = arith.mulf %112, %118 : vector<8x128xf32>
    %c5_i32 = arith.constant 5 : i32
    %120 = arith.index_cast %c5_i32 : i32 to index
    %c0_37 = arith.constant 0 : index
    %c0_38 = arith.constant 0 : index
    %121 = vector.load %arg9[%120, %c0_37, %c0_38] : memref<8x8x512xf32, #tpu.memory_space<vmem>>, vector<1x8x512xf32>
    %122 = vector.shape_cast %121 : vector<1x8x512xf32> to vector<8x512xf32>
    %cst_39 = arith.constant dense<0.000000e+00> : vector<8x512xf32>
    %123 = tpu.matmul %119, %12, %cst_39 {dimension_numbers = #tpu.dot_dimension_numbers<[1], [0], [0], [1], [0, 0, 1, 1], [], []>} : vector<8x128xf32>, vector<128x512xf32>, vector<8x512xf32> -> vector<8x512xf32>
    %124 = arith.addf %122, %123 : vector<8x512xf32>
    %125 = vector.extract_strided_slice %124 {offsets = [0, 0], sizes = [8, 384], strides = [1, 1]} : vector<8x512xf32> to vector<8x384xf32>
    %126 = arith.negf %125 : vector<8x384xf32>
    %127 = math.exp %126 : vector<8x384xf32>
    %cst_40 = arith.constant 1.000000e+00 : f32
    %128 = vector.broadcast %cst_40 : f32 to vector<8x384xf32>
    %129 = arith.addf %128, %127 : vector<8x384xf32>
    %130 = arith.divf %128, %129 : vector<8x384xf32>
    %131 = vector.extract_strided_slice %130 {offsets = [0, 0], sizes = [8, 128], strides = [1, 1]} : vector<8x384xf32> to vector<8x128xf32>
    %132 = vector.extract_strided_slice %130 {offsets = [0, 128], sizes = [8, 128], strides = [1, 1]} : vector<8x384xf32> to vector<8x128xf32>
    %133 = vector.extract_strided_slice %130 {offsets = [0, 256], sizes = [8, 128], strides = [1, 1]} : vector<8x384xf32> to vector<8x128xf32>
    %134 = vector.extract_strided_slice %124 {offsets = [0, 384], sizes = [8, 128], strides = [1, 1]} : vector<8x512xf32> to vector<8x128xf32>
    %135 = math.tanh %134 : vector<8x128xf32>
    %136 = arith.mulf %132, %117 : vector<8x128xf32>
    %137 = arith.mulf %131, %135 : vector<8x128xf32>
    %138 = arith.addf %136, %137 : vector<8x128xf32>
    %139 = math.tanh %138 : vector<8x128xf32>
    %140 = arith.mulf %133, %139 : vector<8x128xf32>
    %c6_i32 = arith.constant 6 : i32
    %141 = arith.index_cast %c6_i32 : i32 to index
    %c0_41 = arith.constant 0 : index
    %c0_42 = arith.constant 0 : index
    %142 = vector.load %arg9[%141, %c0_41, %c0_42] : memref<8x8x512xf32, #tpu.memory_space<vmem>>, vector<1x8x512xf32>
    %143 = vector.shape_cast %142 : vector<1x8x512xf32> to vector<8x512xf32>
    %cst_43 = arith.constant dense<0.000000e+00> : vector<8x512xf32>
    %144 = tpu.matmul %140, %12, %cst_43 {dimension_numbers = #tpu.dot_dimension_numbers<[1], [0], [0], [1], [0, 0, 1, 1], [], []>} : vector<8x128xf32>, vector<128x512xf32>, vector<8x512xf32> -> vector<8x512xf32>
    %145 = arith.addf %143, %144 : vector<8x512xf32>
    %146 = vector.extract_strided_slice %145 {offsets = [0, 0], sizes = [8, 384], strides = [1, 1]} : vector<8x512xf32> to vector<8x384xf32>
    %147 = arith.negf %146 : vector<8x384xf32>
    %148 = math.exp %147 : vector<8x384xf32>
    %cst_44 = arith.constant 1.000000e+00 : f32
    %149 = vector.broadcast %cst_44 : f32 to vector<8x384xf32>
    %150 = arith.addf %149, %148 : vector<8x384xf32>
    %151 = arith.divf %149, %150 : vector<8x384xf32>
    %152 = vector.extract_strided_slice %151 {offsets = [0, 0], sizes = [8, 128], strides = [1, 1]} : vector<8x384xf32> to vector<8x128xf32>
    %153 = vector.extract_strided_slice %151 {offsets = [0, 128], sizes = [8, 128], strides = [1, 1]} : vector<8x384xf32> to vector<8x128xf32>
    %154 = vector.extract_strided_slice %151 {offsets = [0, 256], sizes = [8, 128], strides = [1, 1]} : vector<8x384xf32> to vector<8x128xf32>
    %155 = vector.extract_strided_slice %145 {offsets = [0, 384], sizes = [8, 128], strides = [1, 1]} : vector<8x512xf32> to vector<8x128xf32>
    %156 = math.tanh %155 : vector<8x128xf32>
    %157 = arith.mulf %153, %138 : vector<8x128xf32>
    %158 = arith.mulf %152, %156 : vector<8x128xf32>
    %159 = arith.addf %157, %158 : vector<8x128xf32>
    %160 = math.tanh %159 : vector<8x128xf32>
    %161 = arith.mulf %154, %160 : vector<8x128xf32>
    %c7_i32 = arith.constant 7 : i32
    %162 = arith.index_cast %c7_i32 : i32 to index
    %c0_45 = arith.constant 0 : index
    %c0_46 = arith.constant 0 : index
    %163 = vector.load %arg9[%162, %c0_45, %c0_46] : memref<8x8x512xf32, #tpu.memory_space<vmem>>, vector<1x8x512xf32>
    %164 = vector.shape_cast %163 : vector<1x8x512xf32> to vector<8x512xf32>
    %cst_47 = arith.constant dense<0.000000e+00> : vector<8x512xf32>
    %165 = tpu.matmul %161, %12, %cst_47 {dimension_numbers = #tpu.dot_dimension_numbers<[1], [0], [0], [1], [0, 0, 1, 1], [], []>} : vector<8x128xf32>, vector<128x512xf32>, vector<8x512xf32> -> vector<8x512xf32>
    %166 = arith.addf %164, %165 : vector<8x512xf32>
    %167 = vector.extract_strided_slice %166 {offsets = [0, 0], sizes = [8, 384], strides = [1, 1]} : vector<8x512xf32> to vector<8x384xf32>
    %168 = arith.negf %167 : vector<8x384xf32>
    %169 = math.exp %168 : vector<8x384xf32>
    %cst_48 = arith.constant 1.000000e+00 : f32
    %170 = vector.broadcast %cst_48 : f32 to vector<8x384xf32>
    %171 = arith.addf %170, %169 : vector<8x384xf32>
    %172 = arith.divf %170, %171 : vector<8x384xf32>
    %173 = vector.extract_strided_slice %172 {offsets = [0, 0], sizes = [8, 128], strides = [1, 1]} : vector<8x384xf32> to vector<8x128xf32>
    %174 = vector.extract_strided_slice %172 {offsets = [0, 128], sizes = [8, 128], strides = [1, 1]} : vector<8x384xf32> to vector<8x128xf32>
    %175 = vector.extract_strided_slice %172 {offsets = [0, 256], sizes = [8, 128], strides = [1, 1]} : vector<8x384xf32> to vector<8x128xf32>
    %176 = vector.extract_strided_slice %166 {offsets = [0, 384], sizes = [8, 128], strides = [1, 1]} : vector<8x512xf32> to vector<8x128xf32>
    %177 = math.tanh %176 : vector<8x128xf32>
    %178 = arith.mulf %174, %159 : vector<8x128xf32>
    %179 = arith.mulf %173, %177 : vector<8x128xf32>
    %180 = arith.addf %178, %179 : vector<8x128xf32>
    %181 = math.tanh %180 : vector<8x128xf32>
    %182 = arith.mulf %175, %181 : vector<8x128xf32>
    %c8_i32 = arith.constant 8 : i32
    %c0_49 = arith.constant 0 : index
    %c0_50 = arith.constant 0 : index
    %183 = vector.load %arg10[%c0_49, %c0_50] : memref<8x128xf32, #tpu.memory_space<vmem>>, vector<8x128xf32>
    tpu.vector_store %arg10[%c0_49, %c0_50], %182 {strides = array<i32>} : memref<8x128xf32, #tpu.memory_space<vmem>>, vector<8x128xf32>,
    %c0_51 = arith.constant 0 : index
    %c0_52 = arith.constant 0 : index
    %184 = vector.load %arg11[%c0_51, %c0_52] : memref<8x128xf32, #tpu.memory_space<vmem>>, vector<8x128xf32>
    tpu.vector_store %arg11[%c0_51, %c0_52], %180 {strides = array<i32>} : memref<8x128xf32, #tpu.memory_space<vmem>>, vector<8x128xf32>,
    %c0_i32_53 = arith.constant 0 : i32
    %185 = arith.cmpi eq, %arg1, %c0_i32_53 : i32
    %186 = arith.extui %185 : i1 to i32
    %c0_i32_54 = arith.constant 0 : i32
    %187 = arith.cmpi ne, %186, %c0_i32_54 : i32
    scf.if %187 {
      %c0_55 = arith.constant 0 : index
      %c0_56 = arith.constant 0 : index
      %188 = vector.load %arg6[%c0_55, %c0_56] : memref<128x128xf32, #tpu.memory_space<vmem>>, vector<128x128xf32>
      %cst_57 = arith.constant dense<0.000000e+00> : vector<8x128xf32>
      %189 = tpu.matmul %182, %188, %cst_57 {dimension_numbers = #tpu.dot_dimension_numbers<[1], [0], [0], [1], [0, 0, 1, 1], [], []>} : vector<8x128xf32>, vector<128x128xf32>, vector<8x128xf32> -> vector<8x128xf32>
      %c0_58 = arith.constant 0 : index
      %c0_59 = arith.constant 0 : index
      %190 = vector.load %arg7[%c0_58, %c0_59] : memref<1x128xf32, #tpu.memory_space<vmem>>, vector<1x128xf32>
      %191 = vector.broadcast %190 : vector<1x128xf32> to vector<8x128xf32>
      %192 = arith.addf %189, %191 : vector<8x128xf32>
      %c0_60 = arith.constant 0 : index
      %c0_61 = arith.constant 0 : index
      %193 = vector.load %arg8[%c0_60, %c0_61] : memref<8x128xf32, #tpu.memory_space<vmem>>, vector<8x128xf32>
      tpu.vector_store %arg8[%c0_60, %c0_61], %192 {strides = array<i32>} : memref<8x128xf32, #tpu.memory_space<vmem>>, vector<8x128xf32>,
    } else {
    }
    return
  }
  func.func @transform_0(%arg0: i32, %arg1: i32) -> (i32, i32, i32) {
    %c0_i32 = arith.constant 0 : i32
    %c0_i32_0 = arith.constant 0 : i32
    return %arg1, %arg0, %c0_i32 : i32, i32, i32
  }
  func.func @transform_1(%arg0: i32, %arg1: i32) -> (i32, i32) {
    %c0_i32 = arith.constant 0 : i32
    %c0_i32_0 = arith.constant 0 : i32
    %c0_i32_1 = arith.constant 0 : i32
    return %c0_i32, %c0_i32_0 : i32, i32
  }
  func.func @transform_2(%arg0: i32, %arg1: i32) -> (i32, i32) {
    %c0_i32 = arith.constant 0 : i32
    %c0_i32_0 = arith.constant 0 : i32
    %c0_i32_1 = arith.constant 0 : i32
    return %c0_i32, %c0_i32_0 : i32, i32
  }
  func.func @transform_3(%arg0: i32, %arg1: i32) -> (i32, i32) {
    %c0_i32 = arith.constant 0 : i32
    %c0_i32_0 = arith.constant 0 : i32
    %c0_i32_1 = arith.constant 0 : i32
    return %c0_i32, %c0_i32_0 : i32, i32
  }
  func.func @transform_4(%arg0: i32, %arg1: i32) -> (i32, i32) {
    %c0_i32 = arith.constant 0 : i32
    %c0_i32_0 = arith.constant 0 : i32
    %c0_i32_1 = arith.constant 0 : i32
    return %c0_i32, %c0_i32_0 : i32, i32
  }
  func.func @transform_5(%arg0: i32, %arg1: i32) -> (i32, i32) {
    %c0_i32 = arith.constant 0 : i32
    %c0_i32_0 = arith.constant 0 : i32
    %c0_i32_1 = arith.constant 0 : i32
    return %c0_i32, %c0_i32_0 : i32, i32
  }
  func.func @transform_6(%arg0: i32, %arg1: i32) -> (i32, i32) {
    %c0_i32 = arith.constant 0 : i32
    %c0_i32_0 = arith.constant 0 : i32
    return %arg0, %c0_i32 : i32, i32
  }
}

</mosaic_0001>

<bundles_post_ra>
// kernel: tpu_custom_call.1
= control target key start
LH: loop header
LB: loop body
LE: loop exit
PB: predicated region body
PF: predicated region fallthrough
CT: control target
= control target key end

     0   :  { %11 = vsyncpa [#allocation6], 0  ;;  %s3134_s0 = inlined_call_operand.hbm [shape: f32[8,8,16], index: 0, kind: input, shape index: {}]   ;;  %s3135_s1 = inlined_call_operand.hbm [shape: f32[16,512], index: 1, kind: input, shape index: {}]   ;;  %s3136_s2 = inlined_call_operand.hbm [shape: f32[128,512], index: 2, kind: input, shape index: {}]   ;;  %s3137_s3 = inlined_call_operand.hbm [shape: f32[1,512], index: 3, kind: input, shape index: {}]   ;;  %s3138_s4 = inlined_call_operand.hbm [shape: f32[128,128], index: 4, kind: input, shape index: {}]   ;;  %s3139_s5 = inlined_call_operand.vmem [shape: f32[1,128], index: 5, kind: input, shape index: {}]   ;;  %s3140_s6 = inlined_call_operand.hbm [shape: f32[8,128], index: 6, kind: output, shape index: {}]  }
   0x1   :  { %12 = vsyncpa [#allocation9], 0 }
   0x2   :  { %13 = vsyncpa [#allocation12], 0  ;;  %s32_s23 = sshll.u32 %s3135_s1, 4  ;;  %s33_s23 = int_to_ptr.hbm [resolvable:$true] %s32_s23 }
   0x3   :  { %14 = vsyncpa [#allocation7], 0  ;;  %s2117_s24 = smov [#allocation8]   ;;  %s59_s28 = sshll.u32 %s3137_s3, 4  ;;  %s60_s28 = int_to_ptr.hbm [resolvable:$true] %s59_s28 }
   0x4   :  { %s34_s25 = sshll.u32 %s2117_s24, 4  ;;  %s2118_s29 = smov 512   ;;  %s35_s25 = int_to_ptr.vmem [resolvable:$true] %s34_s25 }
   0x5   :  { %s2119_s30 = smov 32   ;;  %s2120_s7 = smov [#allocation11]  }
   0x6   :  { %40 = dma.hbm_to_vmem [thread:$0]  %s33_s23, 1024, %s35_s25, [#allocation9], %s2118_s29, %s2118_s29, %s2119_s30  }
   0x7   :  { %s61_s8 = sshll.u32 %s2120_s7, 4  ;;  %s19_s11 = sshll.u32 %s3134_s0, 4  ;;  %s62_s8 = int_to_ptr.vmem [resolvable:$true] %s61_s8  ;;  %s20_s11 = int_to_ptr.hbm [resolvable:$true] %s19_s11 }
   0x8   :  { %64 = dma.hbm_to_vmem [thread:$0]  %s60_s28, 64, %s62_s8, [#allocation12]  }
   0x9   :  { %s2121_s1 = smov [#allocation5]   ;;  %s45_s3 = sshll.u32 %s3136_s2, 4  ;;  %s46_s3 = int_to_ptr.hbm [resolvable:$true] %s45_s3 }
   0xa   :  { %s21_s12 = sshll.u32 %s2121_s1, 4  ;;  %s2122_s15 = smov 128   ;;  %s22_s12 = int_to_ptr.vmem [resolvable:$true] %s21_s12 }
   0xb   :  { %s2123_s16 = smov 8   ;;  %s2124_s17 = smov [#allocation10]  }
   0xc   :  { %27 = dma.hbm_to_vmem [thread:$0]  %s20_s11, 1024, %s22_s12, [#allocation6], %s2122_s15, %s2122_s15, %s2123_s16  }
   0xd   :  { %s47_s18 = sshll.u32 %s2124_s17, 4  ;;  %s69_s0 = sshll.u32 %s3138_s4, 4  ;;  %s48_s18 = int_to_ptr.vmem [resolvable:$true] %s47_s18  ;;  %s70_s0 = int_to_ptr.hbm [resolvable:$true] %s69_s0 }
   0xe   :  { %53 = dma.hbm_to_vmem [thread:$0]  %s46_s3, 8192, %s48_s18, [#allocation9], %s2118_s29, %s2118_s29, %s2119_s30  }
   0xf   :  { %s2125_s21 = smov [#allocation13]  }
  0x10   :  { %s71_s22 = sshll.u32 %s2125_s21, 4  ;;  %s72_s22 = int_to_ptr.vmem [resolvable:$true] %s71_s22 }
  0x11   :  { %77 = dma.hbm_to_vmem [thread:$0]  %s70_s0, 2048, %s72_s22, [#allocation12], %s2122_s15, %s2122_s15, %s2123_s16  }
  0x12   :  { %2109 = dma.done.wait [#allocation6], 1024  }
  0x13   :  { %2110 = vsyncadd [#allocation6], 4294966272 }
  0x14   :  { %2111 = dma.done.wait [#allocation9], 9216  }
  0x15   :  { %2112 = vsyncadd [#allocation9], 4294958080 }
  0x16   :  { %2113 = dma.done.wait [#allocation12], 2112  }
  0x17   :  { %2114 = vsyncadd [#allocation12], 4294965184  ;;  %v118_v0 = vld [vmem:[#allocation8 + $0x20] sm:$0xff]  ;;  %vm132_vm0 = vcmask 130048   ;;  %v2178_v3 = vld [vmem:[#allocation5 + $0x28] sm:$0xff]  ;;  %s2127_s23 = smov [#allocation14]  }
  0x18   :  { %v114_v1 = vld [vmem:[#allocation8] sm:$0xff]  ;;  %171 = vmatpush.msra.mxu0 %v118_v0  ;;  %1755 = vmatpush.msra.mxu1 %v118_v0  ;;  %v2180_v4 = vld [vmem:[#allocation5 + $0x30] sm:$0xff]  ;;  %v2182_v5 = vld [vmem:[#allocation5 + $0x38] sm:$0xff]  ;;  %s1685_s24 = sshll.u32 %s2127_s23, 4  ;;  %s1687_s27 = sshll.u32 %s3140_s6, 4  ;;  %s1686_s24 = int_to_ptr.vmem [resolvable:$true] %s1685_s24  ;;  %s1688_s27 = int_to_ptr.hbm [resolvable:$true] %s1687_s27 }
  0x19   :  { %1756 = vmatpush.msra.mxu2 %v118_v0  ;;  %1757 = vmatpush.msra.mxu3 %v118_v0  ;;  %v106_v2 = vld [vmem:[#allocation5] sm:$0xff]  ;;  %v119_v6 = vld [vmem:[#allocation8 + $0x28] sm:$0xff]  ;;  %v120_v7 = vld [vmem:[#allocation8 + $0x30] sm:$0xff] }
  0x1a   :  { %172 = vmatpush.msra.mxu0 %v114_v1  ;;  %1758 = vmatpush.msra.mxu1 %v114_v1  ;;  %v121_v8 = vld [vmem:[#allocation8 + $0x38] sm:$0xff]  ;;  %v2187_v9 = vld [vmem:[#allocation10 + $0x1e0] sm:$0xff]  ;;  %v115_v10 = vld [vmem:[#allocation8 + $0x8] sm:$0xff] }
  0x1b   :  { %1759 = vmatpush.msra.mxu2 %v114_v1  ;;  %1760 = vmatpush.msra.mxu3 %v114_v1  ;;  %v116_v11 = vld [vmem:[#allocation8 + $0x10] sm:$0xff]  ;;  %v117_v12 = vld [vmem:[#allocation8 + $0x18] sm:$0xff]  ;;  %v2193_v13 = vld [vmem:[#allocation10 + $0x1e8] sm:$0xff] }
  0x1c   :  { %1699 = vmatmul.msk.f32.vlgmr.msra.gmra.mxu0 %vm132_vm0, %v106_v2  ;;  %1704 = vmatmul.msk.f32.vlgmr.msra.gmra.mxu1 %vm132_vm0, %v2178_v3  ;;  %v2196_v14 = vld [vmem:[#allocation10 + $0x1c0] sm:$0xff]  ;;  %v2198_v15 = vld [vmem:[#allocation10 + $0x1f0] sm:$0xff]  ;;  %v2200_v16 = vld [vmem:[#allocation10 + $0x1c8] sm:$0xff] }
  0x1d   :  { %1705 = vmatmul.msk.f32.vlgmr.msra.gmra.mxu2 %vm132_vm0, %v2180_v4  ;;  %1706 = vmatmul.msk.f32.vlgmr.msra.gmra.mxu3 %vm132_vm0, %v2182_v5  ;;  %v2202_v17 = vld [vmem:[#allocation10 + $0x1f8] sm:$0xff]  ;;  %v107_v18 = vld [vmem:[#allocation5 + $0x8] sm:$0xff]  ;;  %v2208_v19 = vld [vmem:[#allocation10 + $0x1a0] sm:$0xff] }
  0x1e   :  { %212 = vmatpush.msrb.mxu1 %v119_v6  ;;  %253 = vmatpush.msrb.mxu2 %v120_v7  ;;  %v2210_v20 = vld [vmem:[#allocation10 + $0x1a8] sm:$0xff]  ;;  %v2215_v21 = vld [vmem:[#allocation10 + $0x1d0] sm:$0xff]  ;;  %v2217_v22 = vld [vmem:[#allocation10 + $0x1d8] sm:$0xff] }
  0x1f   :  { %294 = vmatpush.msrb.mxu3 %v121_v8  ;;  %423 = vmatpush.msrb.mxu0 %v2187_v9  ;;  %v2221_v23 = vld [vmem:[#allocation10 + $0x180] sm:$0xff]  ;;  %v2223_v24 = vld [vmem:[#allocation10 + $0x188] sm:$0xff]  ;;  %v2227_v25 = vld [vmem:[#allocation10 + $0x1b0] sm:$0xff] }
  0x20   :  { %213 = vmatpush.msrb.mxu1 %v115_v10  ;;  %254 = vmatpush.msrb.mxu2 %v116_v11  ;;  %v2229_v26 = vld [vmem:[#allocation10 + $0x1b8] sm:$0xff]  ;;  %v2231_v27 = vld [vmem:[#allocation10 + $0x160] sm:$0xff]  ;;  %v2234_v28 = vld [vmem:[#allocation10 + $0x168] sm:$0xff] }
  0x21   :  { %295 = vmatpush.msrb.mxu3 %v117_v12  ;;  %424 = vmatpush.msrb.mxu0 %v2196_v14  ;;  %v2239_v29 = vld [vmem:[#allocation10 + $0x190] sm:$0xff]  ;;  %v2241_v30 = vld [vmem:[#allocation10 + $0x198] sm:$0xff]  ;;  %v2247_v32 = vld [vmem:[#allocation10 + $0x140] sm:$0xff] }
  0x22   :  { %443 = vmatpush.msra.mxu1 %v2193_v13  ;;  %463 = vmatpush.msra.mxu2 %v2198_v15  ;;  %v108_v31 = vld [vmem:[#allocation5 + $0x10] sm:$0xff]  ;;  %v2250_v33 = vld [vmem:[#allocation10 + $0x148] sm:$0xff]  ;;  %v2257_v35 = vld [vmem:[#allocation10 + $0x178] sm:$0xff] }
  0x23   :  { %483 = vmatpush.msra.mxu3 %v2202_v17  ;;  %425 = vmatpush.msrb.mxu0 %v2208_v19  ;;  %v2255_v34 = vld [vmem:[#allocation10 + $0x170] sm:$0xff]  ;;  %v2261_v36 = vld [vmem:[#allocation10 + $0x120] sm:$0xff]  ;;  %v2263_v37 = vld [vmem:[#allocation10 + $0x128] sm:$0xff] }
  0x24   :  { %444 = vmatpush.msra.mxu1 %v2200_v16  ;;  %1700 = vmatmul.msk.f32.gmra.mxu0 %vm132_vm0, %v107_v18  ;;  %v2267_v38 = vld [vmem:[#allocation10 + $0x150] sm:$0xff]  ;;  %v2269_v39 = vld [vmem:[#allocation10 + $0x158] sm:$0xff]  ;;  %v2271_v40 = vld [vmem:[#allocation10 + $0x100] sm:$0xff] }
  0x25   :  { %1707 = vmatmul.msk.f32.vlgmr.msrb.gmra.mxu1 %vm132_vm0, %v106_v2  ;;  %1715 = vmatmul.msk.f32.vlgmr.msrb.gmra.mxu2 %vm132_vm0, %v106_v2  ;;  %v2274_v41 = vld [vmem:[#allocation10 + $0x108] sm:$0xff]  ;;  %v2279_v42 = vld [vmem:[#allocation10 + $0x130] sm:$0xff]  ;;  %v2281_v43 = vld [vmem:[#allocation10 + $0x138] sm:$0xff] }
  0x26   :  { %1723 = vmatmul.msk.f32.vlgmr.msrb.gmra.mxu3 %vm132_vm0, %v106_v2  ;;  %445 = vmatpush.msra.mxu1 %v2210_v20  ;;  %v109_v44 = vld [vmem:[#allocation5 + $0x18] sm:$0xff]  ;;  %v2287_v45 = vld [vmem:[#allocation10 + $0xe0] sm:$0xff]  ;;  %v2290_v46 = vld [vmem:[#allocation10 + $0xe8] sm:$0xff] }
  0x27   :  { %464 = vmatpush.msra.mxu2 %v2215_v21  ;;  %484 = vmatpush.msra.mxu3 %v2217_v22  ;;  %v2295_v47 = vld [vmem:[#allocation10 + $0x110] sm:$0xff]  ;;  %v2297_v48 = vld [vmem:[#allocation10 + $0x118] sm:$0xff]  ;;  %v2301_v49 = vld [vmem:[#allocation10 + $0xc0] sm:$0xff] }
  0x28   :  { %426 = vmatpush.msrb.mxu0 %v2221_v23  ;;  %446 = vmatpush.msra.mxu1 %v2223_v24  ;;  %v2303_v50 = vld [vmem:[#allocation10 + $0xc8] sm:$0xff]  ;;  %v2307_v51 = vld [vmem:[#allocation10 + $0xf0] sm:$0xff]  ;;  %v2309_v52 = vld [vmem:[#allocation10 + $0xf8] sm:$0xff] }
  0x29   :  { %465 = vmatpush.msra.mxu2 %v2227_v25  ;;  %485 = vmatpush.msra.mxu3 %v2229_v26  ;;  %v2311_v53 = vld [vmem:[#allocation10 + $0xa0] sm:$0xff]  ;;  %v2314_v54 = vld [vmem:[#allocation10 + $0xa8] sm:$0xff]  ;;  %v2319_v55 = vld [vmem:[#allocation10 + $0xd0] sm:$0xff] }
  0x2a   :  { %427 = vmatpush.msrb.mxu0 %v2231_v27  ;;  %447 = vmatpush.msra.mxu1 %v2234_v28  ;;  %3238 = vst [vmem:[#allocation19_spill] sm:$0xff] %v2311_v53  ;;  %v2321_v56 = vld [vmem:[#allocation10 + $0xd8] sm:$0xff]  ;;  %v2323_v57 = vld [vmem:[#allocation10 + $0x80] sm:$0xff]  ;;  %v2335_v60 = vld [vmem:[#allocation10 + $0x88] sm:$0xff] }
  0x2b   :  { %466 = vmatpush.msra.mxu2 %v2239_v29  ;;  %486 = vmatpush.msra.mxu3 %v2241_v30  ;;  %3239 = vst [vmem:[#allocation20_spill] sm:$0xff] %v2314_v54  ;;  %v110_v58 = vld [vmem:[#allocation5 + $0x20] sm:$0xff]  ;;  %v2337_v61 = vld [vmem:[#allocation10 + $0xb0] sm:$0xff]  ;;  %v2343_v63 = vld [vmem:[#allocation10 + $0xb8] sm:$0xff] }
  0x2c   :  { %1701 = vmatmul.msk.f32.gmra.mxu0 %vm132_vm0, %v108_v31  ;;  %448 = vmatpush.msra.mxu1 %v2250_v33  ;;  %3240 = vst [vmem:[#allocation21_spill] sm:$0xff] %v2319_v55  ;;  %v2329_v59 = vld [vmem:[#allocation10 + $0x60] sm:$0xff]  ;;  %v2347_v0 = vld [vmem:[#allocation10 + $0x68] sm:$0xff]  ;;  %v2349_v1 = vld [vmem:[#allocation10 + $0x90] sm:$0xff] }
  0x2d   :  { %1708 = vmatmul.msk.f32.gmra.mxu1 %vm132_vm0, %v107_v18  ;;  %1716 = vmatmul.msk.f32.gmra.mxu2 %vm132_vm0, %v107_v18  ;;  %3241 = vst [vmem:[#allocation22_spill] sm:$0xff] %v2321_v56  ;;  %v2341_v62 = vld [vmem:[#allocation10 + $0x40] sm:$0xff]  ;;  %v2355_v6 = vld [vmem:[#allocation10 + $0x98] sm:$0xff]  ;;  %v2358_v7 = vld [vmem:[#allocation10 + $0x48] sm:$0xff] }
  0x2e   :  { %1724 = vmatmul.msk.f32.gmra.mxu3 %vm132_vm0, %v107_v18  ;;  %428 = vmatpush.msrb.mxu0 %v2247_v32  ;;  %3242 = vst [vmem:[#allocation23_spill] sm:$0xff] %v2323_v57  ;;  %v2351_v2 = vld [vmem:[#allocation10 + $0x20] sm:$0xff]  ;;  %v2360_v8 = vld [vmem:[#allocation10 + $0x70] sm:$0xff]  ;;  %v2371_v11 = vld [vmem:[#allocation10 + $0x28] sm:$0xff] }
  0x2f   :  { %467 = vmatpush.msra.mxu2 %v2255_v34  ;;  %487 = vmatpush.msra.mxu3 %v2257_v35  ;;  %3243 = vst [vmem:[#allocation24_spill] sm:$0xff] %v2329_v59  ;;  %v2363_v10 = vld [vmem:[#allocation10] sm:$0xff]  ;;  %v2375_v12 = vld [vmem:[#allocation10 + $0x50] sm:$0xff]  ;;  %v2377_v18 = vld [vmem:[#allocation10 + $0x78] sm:$0xff] }
  0x30   :  { %429 = vmatpush.msrb.mxu0 %v2261_v36  ;;  %449 = vmatpush.msra.mxu1 %v2263_v37  ;;  %3244 = vst [vmem:[#allocation25_spill] sm:$0xff] %v2335_v60 }
  0x31   :  { %468 = vmatpush.msra.mxu2 %v2267_v38  ;;  %488 = vmatpush.msra.mxu3 %v2269_v39  ;;  %3245 = vst [vmem:[#allocation26_spill] sm:$0xff] %v2337_v61 }
  0x32   :  { %430 = vmatpush.msrb.mxu0 %v2271_v40  ;;  %450 = vmatpush.msra.mxu1 %v2274_v41  ;;  %3246 = vst [vmem:[#allocation27_spill] sm:$0xff] %v2341_v62 }
  0x33   :  { %469 = vmatpush.msra.mxu2 %v2279_v42  ;;  %489 = vmatpush.msra.mxu3 %v2281_v43  ;;  %3247 = vst [vmem:[#allocation28_spill] sm:$0xff] %v2343_v63 }
  0x34   :  { %1702 = vmatmul.msk.f32.gmra.mxu0 %vm132_vm0, %v109_v44  ;;  %451 = vmatpush.msra.mxu1 %v2290_v46  ;;  %3248 = vst [vmem:[#allocation29_spill] sm:$0xff] %v2347_v0 }
  0x35   :  { %1709 = vmatmul.msk.f32.gmra.mxu1 %vm132_vm0, %v108_v31  ;;  %1717 = vmatmul.msk.f32.gmra.mxu2 %vm132_vm0, %v108_v31  ;;  %3249 = vst [vmem:[#allocation30_spill] sm:$0xff] %v2349_v1 }
  0x36   :  { %1725 = vmatmul.msk.f32.gmra.mxu3 %vm132_vm0, %v108_v31  ;;  %431 = vmatpush.msrb.mxu0 %v2287_v45  ;;  %3250 = vst [vmem:[#allocation31_spill] sm:$0xff] %v2351_v2  ;;  %v2126_v31 = vmov 0.0  }
  0x37   :  { %470 = vmatpush.msra.mxu2 %v2295_v47  ;;  %490 = vmatpush.msra.mxu3 %v2297_v48  ;;  %3251 = vst [vmem:[#allocation32_spill] sm:$0xff] %v2355_v6 }
  0x38   :  { %432 = vmatpush.msrb.mxu0 %v2301_v49  ;;  %452 = vmatpush.msra.mxu1 %v2303_v50  ;;  %3252 = vst [vmem:[#allocation33_spill] sm:$0xff] %v2358_v7 }
  0x39   :  { %471 = vmatpush.msra.mxu2 %v2307_v51  ;;  %491 = vmatpush.msra.mxu3 %v2309_v52  ;;  %3253 = vst [vmem:[#allocation34_spill] sm:$0xff] %v2360_v8 }
  0x3a   :  { %433 = vmatpush.msrb.mxu0 %v2311_v53  ;;  %453 = vmatpush.msra.mxu1 %v2314_v54  ;;  %3254 = vst [vmem:[#allocation35_spill] sm:$0xff] %v2363_v10 }
  0x3b   :  { %472 = vmatpush.msra.mxu2 %v2319_v55  ;;  %492 = vmatpush.msra.mxu3 %v2321_v56  ;;  %3255 = vst [vmem:[#allocation36_spill] sm:$0xff] %v2371_v11 }
  0x3c   :  { %434 = vmatpush.msrb.mxu0 %v2323_v57  ;;  %454 = vmatpush.msra.mxu1 %v2335_v60  ;;  %3256 = vst [vmem:[#allocation37_spill] sm:$0xff] %v2375_v12 }
  0x3d   :  { %1710 = vmatmul.msk.f32.gmra.mxu1 %vm132_vm0, %v109_v44  ;;  %1703 = vmatmul.msk.f32.gmra.mxu0 %vm132_vm0, %v110_v58  ;;  %3257 = vst [vmem:[#allocation38_spill] sm:$0xff] %v2377_v18 }
  0x3e   :  { %1718 = vmatmul.msk.f32.gmra.mxu2 %vm132_vm0, %v109_v44  ;;  %1726 = vmatmul.msk.f32.gmra.mxu3 %vm132_vm0, %v109_v44  ;;  %v2381_v44 = vld [vmem:[#allocation10 + $0x8] sm:$0xff] }
  0x3f   :  { %435 = vmatpush.msrb.mxu0 %v2329_v59  ;;  %473 = vmatpush.msra.mxu2 %v2337_v61  ;;  %3258 = vst [vmem:[#allocation39_spill] sm:$0xff] %v2381_v44 }
  0x40   :  { %493 = vmatpush.msra.mxu3 %v2343_v63  ;;  %455 = vmatpush.msra.mxu1 %v2347_v0 }
  0x41   :  { %436 = vmatpush.msrb.mxu0 %v2341_v62  ;;  %474 = vmatpush.msra.mxu2 %v2349_v1  ;;  %v2394_v62 = vld [vmem:[#allocation10 + $0x10] sm:$0xff] }
  0x42   :  { %494 = vmatpush.msra.mxu3 %v2355_v6  ;;  %456 = vmatpush.msra.mxu1 %v2358_v7  ;;  %v2392_v7 = vld [vmem:[#allocation10 + $0x38] sm:$0xff]  ;;  %3262 = vst [vmem:[#allocation43_spill] sm:$0xff] %v2394_v62 }
  0x43   :  { %437 = vmatpush.msrb.mxu0 %v2351_v2  ;;  %475 = vmatpush.msra.mxu2 %v2360_v8  ;;  %v2385_v2 = vld [vmem:[#allocation10 + $0x58] sm:$0xff]  ;;  %3261 = vst [vmem:[#allocation42_spill] sm:$0xff] %v2392_v7 }
  0x44   :  { %457 = vmatpush.msra.mxu1 %v2371_v11  ;;  %3259 = vst [vmem:[#allocation40_spill] sm:$0xff] %v2385_v2  ;;  %495 = vmatpush.msra.mxu3 %v2377_v18 }
  0x45   :  { %438 = vmatpush.msrb.mxu0 %v2363_v10  ;;  %1711 = vmatmul.msk.f32.gmra.mxu1 %vm132_vm0, %v110_v58  ;;  %v2387_v10 = vld [vmem:[#allocation10 + $0x30] sm:$0xff] }
  0x46   :  { %1719 = vmatmul.msk.f32.gmra.mxu2 %vm132_vm0, %v110_v58  ;;  %439 = vmatmul.f32.vlgmr.msrb.gmra.mxu0 %v2126_v31  ;;  %3260 = vst [vmem:[#allocation41_spill] sm:$0xff] %v2387_v10 }
  0x47   :  { %1727 = vmatmul.msk.f32.gmra.mxu3 %vm132_vm0, %v110_v58  ;;  %476 = vmatpush.msra.mxu2 %v2375_v12  ;;  %v2399_v58 = vld [vmem:[#allocation10 + $0x18] sm:$0xff] }
  0x48   :  { %458 = vmatpush.msra.mxu1 %v2381_v44  ;;  %575 = vmatpush.msra.mxu0 %v2187_v9  ;;  %3263 = vst [vmem:[#allocation44_spill] sm:$0xff] %v2399_v58 }
  0x49   :  { %496 = vmatpush.msra.mxu3 %v2385_v2  ;;  %477 = vmatpush.msra.mxu2 %v2387_v10 }
  0x4a   :  { %595 = vmatpush.msrb.mxu1 %v2193_v13  ;;  %576 = vmatpush.msra.mxu0 %v2196_v14 }
  0x4b   :  { %497 = vmatpush.msra.mxu3 %v2392_v7  ;;  %478 = vmatpush.msra.mxu2 %v2394_v62 }
  0x4c   :  { %596 = vmatpush.msrb.mxu1 %v2200_v16  ;;  %577 = vmatpush.msra.mxu0 %v2208_v19 }
  0x4d   :  { %1712 = vmatmul.msk.f32.gmra.mxu1 %vm132_vm0, %v2178_v3  ;;  %615 = vmatpush.msrb.mxu2 %v2198_v15 }
  0x4e   :  { %1720 = vmatmul.msk.f32.gmra.mxu2 %vm132_vm0, %v2178_v3  ;;  %498 = vmatpush.msra.mxu3 %v2399_v58 }
  0x4f   :  { %1728 = vmatmul.msk.f32.gmra.mxu3 %vm132_vm0, %v2178_v3  ;;  %616 = vmatpush.msrb.mxu2 %v2215_v21  ;;  %v3264_v3 = vld [vmem:[#allocation27_spill] sm:$0xff] }
  0x50   :  { %635 = vmatpush.msrb.mxu3 %v2202_v17  ;;  %597 = vmatpush.msrb.mxu1 %v2210_v20 }
  0x51   :  { %617 = vmatpush.msrb.mxu2 %v2227_v25  ;;  %578 = vmatpush.msra.mxu0 %v2221_v23 }
  0x52   :  { %636 = vmatpush.msrb.mxu3 %v2217_v22  ;;  %598 = vmatpush.msrb.mxu1 %v2223_v24 }
  0x53   :  { %618 = vmatpush.msrb.mxu2 %v2239_v29  ;;  %579 = vmatpush.msra.mxu0 %v2231_v27 }
  0x54   :  { %637 = vmatpush.msrb.mxu3 %v2229_v26  ;;  %599 = vmatpush.msrb.mxu1 %v2234_v28 }
  0x55   :  { %1713 = vmatmul.msk.f32.gmra.mxu1 %vm132_vm0, %v2180_v4  ;;  %619 = vmatpush.msrb.mxu2 %v2255_v34 }
  0x56   :  { %1721 = vmatmul.msk.f32.gmra.mxu2 %vm132_vm0, %v2180_v4  ;;  %638 = vmatpush.msrb.mxu3 %v2241_v30 }
  0x57   :  { %1729 = vmatmul.msk.f32.gmra.mxu3 %vm132_vm0, %v2180_v4  ;;  %580 = vmatpush.msra.mxu0 %v2247_v32  ;;  %v3265_v4 = vld [vmem:[#allocation33_spill] sm:$0xff] }
  0x58   :  { %639 = vmatpush.msrb.mxu3 %v2257_v35  ;;  %600 = vmatpush.msrb.mxu1 %v2250_v33 }
  0x59   :  { %620 = vmatpush.msrb.mxu2 %v2267_v38  ;;  %581 = vmatpush.msra.mxu0 %v2261_v36 }
  0x5a   :  { %640 = vmatpush.msrb.mxu3 %v2269_v39  ;;  %601 = vmatpush.msrb.mxu1 %v2263_v37 }
  0x5b   :  { %621 = vmatpush.msrb.mxu2 %v2279_v42  ;;  %582 = vmatpush.msra.mxu0 %v2271_v40 }
  0x5c   :  { %641 = vmatpush.msrb.mxu3 %v2281_v43  ;;  %602 = vmatpush.msrb.mxu1 %v2274_v41 }
  0x5d   :  { %1714 = vmatmul.msk.f32.gmra.mxu1 %vm132_vm0, %v2182_v5  ;;  %622 = vmatpush.msrb.mxu2 %v2295_v47 }
  0x5e   :  { %1722 = vmatmul.msk.f32.gmra.mxu2 %vm132_vm0, %v2182_v5  ;;  %642 = vmatpush.msrb.mxu3 %v2297_v48 }
  0x5f   :  { %1730 = vmatmul.msk.f32.gmra.mxu3 %vm132_vm0, %v2182_v5  ;;  %583 = vmatpush.msra.mxu0 %v2287_v45  ;;  %v3266_v5 = vld [vmem:[#allocation31_spill] sm:$0xff] }
  0x60   :  { %603 = vmatpush.msrb.mxu1 %v2290_v46  ;;  %623 = vmatpush.msrb.mxu2 %v2307_v51 }
  0x61   :  { %643 = vmatpush.msrb.mxu3 %v2309_v52  ;;  %584 = vmatpush.msra.mxu0 %v2301_v49 }
  0x62   :  { %604 = vmatpush.msrb.mxu1 %v2303_v50  ;;  %624 = vmatpush.msrb.mxu2 %v2319_v55 }
  0x63   :  { %644 = vmatpush.msrb.mxu3 %v2321_v56  ;;  %585 = vmatpush.msra.mxu0 %v2311_v53 }
  0x64   :  { %625 = vmatpush.msrb.mxu2 %v2337_v61  ;;  %605 = vmatpush.msrb.mxu1 %v2314_v54 }
  0x65   :  { %459 = vmatmul.f32.vlgmr.msra.gmra.mxu1 %v2126_v31  ;;  %586 = vmatpush.msra.mxu0 %v2323_v57 }
  0x66   :  { %479 = vmatmul.f32.vlgmr.msra.gmra.mxu2 %v2126_v31  ;;  %645 = vmatpush.msrb.mxu3 %v2343_v63 }
  0x67   :  { %499 = vmatmul.f32.vlgmr.msra.gmra.mxu3 %v2126_v31  ;;  %606 = vmatpush.msrb.mxu1 %v2335_v60  ;;  %v3267_v31 = vld [vmem:[#allocation35_spill] sm:$0xff] }
  0x68   :  { %626 = vmatpush.msrb.mxu2 %v2349_v1  ;;  %587 = vmatpush.msra.mxu0 %v2329_v59 }
  0x69   :  { %646 = vmatpush.msrb.mxu3 %v2355_v6  ;;  %607 = vmatpush.msrb.mxu1 %v2347_v0 }
  0x6a   :  { %627 = vmatpush.msrb.mxu2 %v2360_v8  ;;  %588 = vmatpush.msra.mxu0 %v3264_v3 }
  0x6b   :  { %647 = vmatpush.msrb.mxu3 %v2377_v18  ;;  %608 = vmatpush.msrb.mxu1 %v3265_v4 }
  0x6c   :  { %628 = vmatpush.msrb.mxu2 %v2375_v12  ;;  %589 = vmatpush.msra.mxu0 %v3266_v5 }
  0x6d   :  { %648 = vmatpush.msrb.mxu3 %v2385_v2  ;;  %609 = vmatpush.msrb.mxu1 %v2371_v11 }
  0x6e   :  { %629 = vmatpush.msrb.mxu2 %v2387_v10  ;;  %590 = vmatpush.msra.mxu0 %v3267_v31 }
  0x6f   :  { %649 = vmatpush.msrb.mxu3 %v2392_v7  ;;  %610 = vmatpush.msrb.mxu1 %v2381_v44 }
  0x70   :  { %630 = vmatpush.msrb.mxu2 %v2394_v62  ;;  %727 = vmatpush.msrb.mxu0 %v2187_v9 }
  0x71   :  { %650 = vmatpush.msrb.mxu3 %v2399_v58  ;;  %747 = vmatpush.msra.mxu1 %v2193_v13 }
  0x72   :  { %767 = vmatpush.msra.mxu2 %v2198_v15  ;;  %728 = vmatpush.msrb.mxu0 %v2196_v14 }
  0x73   :  { %787 = vmatpush.msra.mxu3 %v2202_v17  ;;  %748 = vmatpush.msra.mxu1 %v2200_v16 }
  0x74   :  { %768 = vmatpush.msra.mxu2 %v2215_v21  ;;  %729 = vmatpush.msrb.mxu0 %v2208_v19 }
  0x75   :  { %788 = vmatpush.msra.mxu3 %v2217_v22  ;;  %749 = vmatpush.msra.mxu1 %v2210_v20 }
  0x76   :  { %769 = vmatpush.msra.mxu2 %v2227_v25  ;;  %730 = vmatpush.msrb.mxu0 %v2221_v23 }
  0x77   :  { %789 = vmatpush.msra.mxu3 %v2229_v26  ;;  %750 = vmatpush.msra.mxu1 %v2223_v24 }
  0x78   :  { %770 = vmatpush.msra.mxu2 %v2239_v29  ;;  %731 = vmatpush.msrb.mxu0 %v2231_v27 }
  0x79   :  { %790 = vmatpush.msra.mxu3 %v2241_v30  ;;  %751 = vmatpush.msra.mxu1 %v2234_v28 }
  0x7a   :  { %771 = vmatpush.msra.mxu2 %v2255_v34  ;;  %732 = vmatpush.msrb.mxu0 %v2247_v32 }
  0x7b   :  { %791 = vmatpush.msra.mxu3 %v2257_v35  ;;  %752 = vmatpush.msra.mxu1 %v2250_v33 }
  0x7c   :  { %772 = vmatpush.msra.mxu2 %v2267_v38  ;;  %733 = vmatpush.msrb.mxu0 %v2261_v36 }
  0x7d   :  { %792 = vmatpush.msra.mxu3 %v2269_v39  ;;  %753 = vmatpush.msra.mxu1 %v2263_v37 }
  0x7e   :  { %773 = vmatpush.msra.mxu2 %v2279_v42  ;;  %734 = vmatpush.msrb.mxu0 %v2271_v40 }
  0x7f   :  { %793 = vmatpush.msra.mxu3 %v2281_v43  ;;  %754 = vmatpush.msra.mxu1 %v2274_v41 }
  0x80   :  { %774 = vmatpush.msra.mxu2 %v2295_v47  ;;  %735 = vmatpush.msrb.mxu0 %v2287_v45 }
  0x81   :  { %794 = vmatpush.msra.mxu3 %v2297_v48  ;;  %755 = vmatpush.msra.mxu1 %v2290_v46 }
  0x82   :  { %775 = vmatpush.msra.mxu2 %v2307_v51  ;;  %736 = vmatpush.msrb.mxu0 %v2301_v49 }
  0x83   :  { %795 = vmatpush.msra.mxu3 %v2309_v52  ;;  %756 = vmatpush.msra.mxu1 %v2303_v50 }
  0x84   :  { %776 = vmatpush.msra.mxu2 %v2319_v55  ;;  %737 = vmatpush.msrb.mxu0 %v2311_v53 }
  0x85   :  { %796 = vmatpush.msra.mxu3 %v2321_v56  ;;  %757 = vmatpush.msra.mxu1 %v2314_v54 }
  0x86   :  { %777 = vmatpush.msra.mxu2 %v2337_v61  ;;  %738 = vmatpush.msrb.mxu0 %v2323_v57 }
  0x87   :  { %797 = vmatpush.msra.mxu3 %v2343_v63  ;;  %758 = vmatpush.msra.mxu1 %v2335_v60 }
  0x88   :  { %778 = vmatpush.msra.mxu2 %v2349_v1  ;;  %739 = vmatpush.msrb.mxu0 %v2329_v59 }
  0x89   :  { %798 = vmatpush.msra.mxu3 %v2355_v6  ;;  %759 = vmatpush.msra.mxu1 %v2347_v0 }
  0x8a   :  { %779 = vmatpush.msra.mxu2 %v2360_v8  ;;  %740 = vmatpush.msrb.mxu0 %v3264_v3 }
  0x8b   :  { %799 = vmatpush.msra.mxu3 %v2377_v18  ;;  %760 = vmatpush.msra.mxu1 %v3265_v4  ;;  %v122_v4 = vld [vmem:[#allocation11] sm:$0xf] }
  0x8c   :  { %780 = vmatpush.msra.mxu2 %v2375_v12  ;;  %741 = vmatpush.msrb.mxu0 %v3266_v5  ;;  %v124_v12 = vperm.slane %v122_v4, 0 }
  0x8d   :  { %800 = vmatpush.msra.mxu3 %v2385_v2  ;;  %761 = vmatpush.msra.mxu1 %v2371_v11 }
  0x8e   :  { %781 = vmatpush.msra.mxu2 %v2387_v10  ;;  %742 = vmatpush.msrb.mxu0 %v3267_v31 }
  0x8f   :  { %801 = vmatpush.msra.mxu3 %v2392_v7  ;;  %762 = vmatpush.msra.mxu1 %v2381_v44  ;;  %v125_v44 = vperm.slane %v122_v4, 1 }
  0x90   :  { %782 = vmatpush.msra.mxu2 %v2394_v62 }
  0x91   :  { %802 = vmatpush.msra.mxu3 %v2399_v58 }
  0x99   :  { %v174_v3 = vpop.f32.mrf.mxu0  ;;  %v189_v2 = vpop.f32.mrf.mxu1 }
  0x9a   :  { %v2552_v18 = vadd.f32 %v189_v2, %v124_v12 }
  0x9c   :  { %3268 = vst [vmem:[#allocation45_spill] sm:$0xff] %v2552_v18  ;;  %v126_v18 = vperm.slane %v122_v4, 2 }
  0xa0   :  { %v192_v5 = vpop.f32.mrf.mxu2  ;;  %v195_v11 = vpop.f32.mrf.mxu3 }
  0xa1   :  { %v2554_v8 = vadd.f32 %v192_v5, %v124_v12  ;;  %v2556_v10 = vadd.f32 %v195_v11, %v124_v12  ;;  %v177_v7 = vpop.f32.mrf.mxu0  ;;  %v2568_v5 = vperm.slane %v122_v4, 3 }
  0xa2   :  { %v215_v31 = vpop.f32.mrf.mxu1  ;;  %v2558_v0 = vadd.f32 %v177_v7, %v124_v12 }
  0xa3   :  { %3269 = vst [vmem:[#allocation46_spill] sm:$0xff] %v2554_v8 }
  0xa4   :  { %3270 = vst [vmem:[#allocation47_spill] sm:$0xff] %v2556_v10 }
  0xa5   :  { %3271 = vst [vmem:[#allocation48_spill] sm:$0xff] %v2558_v0 }
  0xa8   :  { %v2560_v62 = vpop.f32.mrf.mxu2 }
  0xa9   :  { %v2562_v58 = vpop.f32.mrf.mxu3  ;;  %v180_v59 = vpop.f32.mrf.mxu0 }
  0xaa   :  { %v218_v6 = vpop.f32.mrf.mxu1  ;;  %v2564_v1 = vadd.f32 %v180_v59, %v124_v12 }
  0xab   :  { %v2566_v2 = vadd.f32 %v218_v6, %v125_v44 }
  0xac   :  { %3272 = vst [vmem:[#allocation49_spill] sm:$0xff] %v2564_v1 }
  0xad   :  { %3273 = vst [vmem:[#allocation50_spill] sm:$0xff] %v2566_v2 }
  0xb0   :  { %v259_v11 = vpop.f32.mrf.mxu2 }
  0xb1   :  { %v300_v10 = vpop.f32.mrf.mxu3  ;;  %v2570_v8 = vadd.f32 %v259_v11, %v126_v18  ;;  %v183_v0 = vpop.f32.mrf.mxu0 }
  0xb2   :  { %v2573_v7 = vadd.f32 %v300_v10, %v2568_v5  ;;  %v221_v60 = vpop.f32.mrf.mxu1  ;;  %v2575_v57 = vadd.f32 %v183_v0, %v124_v12 }
  0xb3   :  { %3274 = vst [vmem:[#allocation51_spill] sm:$0xff] %v2570_v8  ;;  %v2577_v63 = vadd.f32 %v221_v60, %v125_v44 }
  0xb4   :  { %3275 = vst [vmem:[#allocation52_spill] sm:$0xff] %v2573_v7 }
  0xb5   :  { %3276 = vst [vmem:[#allocation53_spill] sm:$0xff] %v2575_v57 }
  0xb6   :  { %3277 = vst [vmem:[#allocation54_spill] sm:$0xff] %v2577_v63 }
  0xb8   :  { %v262_v59 = vpop.f32.mrf.mxu2 }
  0xb9   :  { %v303_v1 = vpop.f32.mrf.mxu3  ;;  %v2579_v6 = vadd.f32 %v262_v59, %v126_v18 }
  0xba   :  { %v2582_v4 = vadd.f32 %v303_v1, %v2568_v5  ;;  %v224_v2 = vpop.f32.mrf.mxu1  ;;  %v186_v61 = vpop.f32.mrf.mxu0 }
  0xbb   :  { %3278 = vst [vmem:[#allocation55_spill] sm:$0xff] %v2579_v6  ;;  %v2584_v11 = vadd.f32 %v224_v2, %v125_v44  ;;  %v2586_v8 = vadd.f32 %v186_v61, %v124_v12 }
  0xbc   :  { %3279 = vst [vmem:[#allocation56_spill] sm:$0xff] %v2582_v4 }
  0xbd   :  { %3280 = vst [vmem:[#allocation57_spill] sm:$0xff] %v2584_v11 }
  0xbe   :  { %3281 = vst [vmem:[#allocation58_spill] sm:$0xff] %v2586_v8 }
  0xc1   :  { %v265_v10 = vpop.f32.mrf.mxu2  ;;  %v306_v0 = vpop.f32.mrf.mxu3 }
  0xc2   :  { %v2588_v7 = vadd.f32 %v265_v10, %v126_v18  ;;  %v227_v57 = vpop.f32.mrf.mxu1  ;;  %v2591_v60 = vadd.f32 %v306_v0, %v2568_v5  ;;  %v175_v10 = vadd.f32 %v174_v3, %v124_v12 }
  0xc3   :  { %v2593_v63 = vadd.f32 %v227_v57, %v125_v44  ;;  %v440_v8 = vpop.f32.mrf.mxu0 }
  0xc4   :  { %3282 = vst [vmem:[#allocation59_spill] sm:$0xff] %v2588_v7  ;;  %v503_v7 = vadd.f32 %v440_v8, %v175_v10  ;;  %v216_v10 = vadd.f32 %v215_v31, %v125_v44 }
  0xc5   :  { %3283 = vst [vmem:[#allocation60_spill] sm:$0xff] %v2591_v60 }
  0xc6   :  { %3284 = vst [vmem:[#allocation61_spill] sm:$0xff] %v2593_v63  ;;  %v1731_v57 = vmul.f32 -1.442695, %v503_v7 }
  0xc8   :  { %1773 = vpow2.f32 %v1731_v57 }
  0xc9   :  { %v268_v59 = vpop.f32.mrf.mxu2 }
  0xca   :  { %v2595_v6 = vadd.f32 %v268_v59, %v126_v18  ;;  %v309_v1 = vpop.f32.mrf.mxu3  ;;  %v230_v4 = vpop.f32.mrf.mxu1 }
  0xcb   :  { %v2598_v2 = vadd.f32 %v309_v1, %v2568_v5  ;;  %v2600_v61 = vadd.f32 %v230_v4, %v125_v44 }
  0xcc   :  { %3285 = vst [vmem:[#allocation62_spill] sm:$0xff] %v2595_v6 }
  0xcd   :  { %3286 = vst [vmem:[#allocation63_spill] sm:$0xff] %v2598_v2 }
  0xce   :  { %3287 = vst [vmem:[#allocation64_spill] sm:$0xff] %v2600_v61  ;;  %v1774_v3 = vpop.eup %1773 }
  0xd1   :  { %v271_v11 = vpop.f32.mrf.mxu2 }
  0xd2   :  { %v2602_v54 = vadd.f32 %v271_v11, %v126_v18  ;;  %v312_v0 = vpop.f32.mrf.mxu3  ;;  %v233_v60 = vpop.f32.mrf.mxu1  ;;  %v516_v11 = vadd.f32 1.0, %v1774_v3 }
  0xd3   :  { %v2605_v63 = vadd.f32 %v312_v0, %v2568_v5  ;;  %v2607_v59 = vadd.f32 %v233_v60, %v125_v44 }
  0xd4   :  { %3288 = vst [vmem:[#allocation65_spill] sm:$0xff] %v2602_v54  ;;  %1775 = vrcp.f32 %v516_v11  ;;  %vm524_vm2 = vweird.f32 %v516_v11 }
  0xd5   :  { %3289 = vst [vmem:[#allocation66_spill] sm:$0xff] %v2605_v63 }
  0xd6   :  { %3290 = vst [vmem:[#allocation67_spill] sm:$0xff] %v2607_v59 }
  0xd9   :  { %v274_v6 = vpop.f32.mrf.mxu2 }
  0xda   :  { %v2609_v1 = vadd.f32 %v274_v6, %v126_v18  ;;  %v315_v4 = vpop.f32.mrf.mxu3  ;;  %v236_v61 = vpop.f32.mrf.mxu1 }
  0xdb   :  { %v2612_v12 = vadd.f32 %v315_v4, %v2568_v5  ;;  %v2614_v8 = vadd.f32 %v236_v61, %v125_v44  ;;  %v257_v4 = vadd.f32 %v2560_v62, %v126_v18  ;;  %v1776_v61 = vpop.eup %1775 }
  0xdc   :  { %3291 = vst [vmem:[#allocation68_spill] sm:$0xff] %v2609_v1  ;;  %v520_v44 = vmul.f32 %v1776_v61, %v516_v11  ;;  %vm525_vm1 = vweird.f32 %v1776_v61 }
  0xdd   :  { %3292 = vst [vmem:[#allocation69_spill] sm:$0xff] %v2612_v12  ;;  %vm526_vm4 = vmor %vm524_vm2, %vm525_vm1 }
  0xde   :  { %3293 = vst [vmem:[#allocation70_spill] sm:$0xff] %v2614_v8 }
  0xe1   :  { %v277_v7 = vpop.f32.mrf.mxu2 }
  0xe2   :  { %v2616_v54 = vadd.f32 %v277_v7, %v126_v18  ;;  %v318_v0 = vpop.f32.mrf.mxu3  ;;  %v460_v60 = vpop.f32.mrf.mxu1  ;;  %v521_v7 = vsub.f32 1.0, %v520_v44 }
  0xe3   :  { %v2619_v57 = vadd.f32 %v318_v0, %v2568_v5  ;;  %v504_v6 = vadd.f32 %v460_v60, %v216_v10  ;;  %v298_v0 = vadd.f32 %v2562_v58, %v2568_v5 }
  0xe4   :  { %3294 = vst [vmem:[#allocation71_spill] sm:$0xff] %v2616_v54 }
  0xe5   :  { %3295 = vst [vmem:[#allocation72_spill] sm:$0xff] %v2619_v57  ;;  %v1732_v1 = vmul.f32 -1.442695, %v504_v6 }
  0xe7   :  { %1777 = vpow2.f32 %v1732_v1  ;;  %v522_v1 = vmul.f32 %v1776_v61, %v521_v7 }
  0xe9   :  { %v480_v12 = vpop.f32.mrf.mxu2 }
  0xea   :  { %v505_v8 = vadd.f32 %v480_v12, %v257_v4  ;;  %v500_v54 = vpop.f32.mrf.mxu3  ;;  %v523_v12 = vadd.f32 %v1776_v61, %v522_v1 }
  0xeb   :  { %v506_v60 = vadd.f32 %v500_v54, %v298_v0 }
  0xec   :  { %v1733_v59 = vmul.f32 -1.442695, %v505_v8  ;;  %v527_v54 = vsel %vm526_vm4, %v1776_v61, %v523_v12 }
  0xed   :  { %v1778_v3 = vpop.eup %1777 }
  0xee   :  { %v517_v31 = vadd.f32 1.0, %v1778_v3  ;;  %1779 = vpow2.f32 %v1733_v59  ;;  %v530_v59 = vand.u32 2147483648, %v516_v11  ;;  %v528_v3 = vand.u32 2147483647, %v516_v11 }
  0xf0   :  { %1781 = vrcp.f32 %v517_v31  ;;  %v545_v8 = vand.u32 2147483648, %v517_v31  ;;  %v543_v44 = vand.u32 2147483647, %v517_v31  ;;  %vm539_vm5 = vweird.f32 %v517_v31 }
  0xf1   :  { %v531_v63 = vor.u32 1.1754944e-38, %v530_v59  ;;  %vm529_vm7 = vcmp.eq.f32.partialorder %v528_v3, 8.507059e+37 }
  0xf2   :  { %v546_v0 = vor.u32 1.1754944e-38, %v545_v8  ;;  %vm544_vm8 = vcmp.eq.f32.partialorder %v543_v44, 8.507059e+37 }
  0xf4   :  { %v1780_v10 = vpop.eup %1779 }
  0xf5   :  { %v518_v6 = vadd.f32 1.0, %v1780_v10 }
  0xf6   :  { %v1782_v57 = vpop.eup %1781 }
  0xf7   :  { %v535_v62 = vmul.f32 %v1782_v57, %v517_v31  ;;  %1783 = vrcp.f32 %v518_v6  ;;  %vm540_vm3 = vweird.f32 %v1782_v57  ;;  %v560_v61 = vand.u32 2147483648, %v518_v6 }
  0xf8   :  { %1785 = vtanh.f32 %v506_v60  ;;  %vm541_vm6 = vmor %vm539_vm5, %vm540_vm3  ;;  %vm554_vm10 = vweird.f32 %v518_v6  ;;  %v558_v31 = vand.u32 2147483647, %v518_v6 }
  0xf9   :  { %v536_v18 = vsub.f32 1.0, %v535_v62  ;;  %v532_v62 = vsel %vm529_vm7, %v531_v63, %v527_v54  ;;  %v561_v8 = vor.u32 1.1754944e-38, %v560_v61  ;;  %v3325_v54 = vld [vmem:[#allocation52_spill] sm:$0xff] }
  0xfa   :  { %vm559_vm12 = vcmp.eq.f32.partialorder %v558_v31, 8.507059e+37 }
  0xfb   :  { %v537_v4 = vmul.f32 %v1782_v57, %v536_v18 }
  0xfd   :  { %v1784_v58 = vpop.eup %1783  ;;  %v538_v5 = vadd.f32 %v1782_v57, %v537_v4 }
  0xfe   :  { %v1786_v7 = vpop.eup %1785  ;;  %v550_v10 = vmul.f32 %v1784_v58, %v518_v6  ;;  %vm555_vm9 = vweird.f32 %v1784_v58 }
  0xff   :  { %v542_v60 = vsel %vm541_vm6, %v1782_v57, %v538_v5  ;;  %v566_v11 = vmul.f32 %v1786_v7, %v532_v62  ;;  %vm556_vm11 = vmor %vm554_vm10, %vm555_vm9 }
 0x100   :  { %v551_v1 = vsub.f32 1.0, %v550_v10  ;;  %v547_v2 = vsel %vm544_vm8, %v546_v0, %v542_v60 }
 0x101   :  { %v565_v18 = vmul.f32 0.0, %v547_v2 }
 0x102   :  { %v552_v53 = vmul.f32 %v1784_v58, %v551_v1 }
 0x103   :  { %v2624_v56 = vadd.f32 %v566_v11, %v565_v18 }
 0x104   :  { %v553_v55 = vadd.f32 %v1784_v58, %v552_v53 }
 0x105   :  { %1787 = vtanh.f32 %v2624_v56 }
 0x106   :  { %v557_v12 = vsel %vm556_vm11, %v1784_v58, %v553_v55 }
 0x107   :  { %v562_v59 = vsel %vm559_vm12, %v561_v8, %v557_v12 }
 0x10b   :  { %v1788_v57 = vpop.eup %1787 }
 0x10c   :  { %v569_v63 = vmul.f32 %v1788_v57, %v562_v59 }
 0x10e   :  { %591 = vmatmul.f32.vlgmr.msra.gmra.mxu0 %v569_v63  ;;  %611 = vmatmul.f32.vlgmr.msrb.gmra.mxu1 %v569_v63 }
 0x10f   :  { %631 = vmatmul.f32.vlgmr.msrb.gmra.mxu2 %v569_v63  ;;  %651 = vmatmul.f32.vlgmr.msrb.gmra.mxu3 %v569_v63 }
 0x110   :  { %879 = vmatpush.msra.mxu0 %v2187_v9  ;;  %899 = vmatpush.msrb.mxu1 %v2193_v13  ;;  %v3296_v9 = vld [vmem:[#allocation21_spill] sm:$0xff]  ;;  %v3297_v13 = vld [vmem:[#allocation22_spill] sm:$0xff] }
 0x111   :  { %919 = vmatpush.msrb.mxu2 %v2198_v15  ;;  %939 = vmatpush.msrb.mxu3 %v2202_v17  ;;  %v3299_v15 = vld [vmem:[#allocation20_spill] sm:$0xff] }
 0x112   :  { %880 = vmatpush.msra.mxu0 %v2196_v14  ;;  %900 = vmatpush.msrb.mxu1 %v2200_v16  ;;  %v3298_v14 = vld [vmem:[#allocation19_spill] sm:$0xff]  ;;  %v3300_v16 = vld [vmem:[#allocation26_spill] sm:$0xff]  ;;  %v3301_v17 = vld [vmem:[#allocation28_spill] sm:$0xff] }
 0x113   :  { %920 = vmatpush.msrb.mxu2 %v2215_v21  ;;  %940 = vmatpush.msrb.mxu3 %v2217_v22  ;;  %v3304_v21 = vld [vmem:[#allocation30_spill] sm:$0xff]  ;;  %v3305_v22 = vld [vmem:[#allocation32_spill] sm:$0xff] }
 0x114   :  { %881 = vmatpush.msra.mxu0 %v2208_v19  ;;  %901 = vmatpush.msrb.mxu1 %v2210_v20  ;;  %v3302_v19 = vld [vmem:[#allocation23_spill] sm:$0xff]  ;;  %v3303_v20 = vld [vmem:[#allocation25_spill] sm:$0xff] }
 0x115   :  { %921 = vmatpush.msrb.mxu2 %v2227_v25  ;;  %941 = vmatpush.msrb.mxu3 %v2229_v26  ;;  %v3308_v25 = vld [vmem:[#allocation34_spill] sm:$0xff] }
 0x116   :  { %882 = vmatpush.msra.mxu0 %v2221_v23  ;;  %902 = vmatpush.msrb.mxu1 %v2223_v24  ;;  %v3306_v23 = vld [vmem:[#allocation24_spill] sm:$0xff]  ;;  %v3307_v24 = vld [vmem:[#allocation29_spill] sm:$0xff]  ;;  %v3309_v26 = vld [vmem:[#allocation38_spill] sm:$0xff] }
 0x117   :  { %922 = vmatpush.msrb.mxu2 %v2239_v29  ;;  %942 = vmatpush.msrb.mxu3 %v2241_v30  ;;  %v3312_v29 = vld [vmem:[#allocation37_spill] sm:$0xff]  ;;  %v3313_v30 = vld [vmem:[#allocation40_spill] sm:$0xff] }
 0x118   :  { %883 = vmatpush.msra.mxu0 %v2231_v27  ;;  %903 = vmatpush.msrb.mxu1 %v2234_v28  ;;  %v3310_v27 = vld [vmem:[#allocation27_spill] sm:$0xff]  ;;  %v3311_v28 = vld [vmem:[#allocation33_spill] sm:$0xff] }
 0x119   :  { %923 = vmatpush.msrb.mxu2 %v2255_v34  ;;  %943 = vmatpush.msrb.mxu3 %v2257_v35  ;;  %v3316_v34 = vld [vmem:[#allocation41_spill] sm:$0xff]  ;;  %v3317_v35 = vld [vmem:[#allocation42_spill] sm:$0xff] }
 0x11a   :  { %884 = vmatpush.msra.mxu0 %v2247_v32  ;;  %904 = vmatpush.msrb.mxu1 %v2250_v33  ;;  %v3314_v32 = vld [vmem:[#allocation31_spill] sm:$0xff]  ;;  %v3315_v33 = vld [vmem:[#allocation36_spill] sm:$0xff] }
 0x11b   :  { %924 = vmatpush.msrb.mxu2 %v2267_v38  ;;  %944 = vmatpush.msrb.mxu3 %v2269_v39  ;;  %v3320_v38 = vld [vmem:[#allocation43_spill] sm:$0xff]  ;;  %v3321_v39 = vld [vmem:[#allocation44_spill] sm:$0xff] }
 0x11c   :  { %885 = vmatpush.msra.mxu0 %v2261_v36  ;;  %905 = vmatpush.msrb.mxu1 %v2263_v37  ;;  %v3318_v36 = vld [vmem:[#allocation35_spill] sm:$0xff] }
 0x11d   :  { %925 = vmatpush.msrb.mxu2 %v2279_v42  ;;  %945 = vmatpush.msrb.mxu3 %v2281_v43  ;;  %v3319_v37 = vld [vmem:[#allocation39_spill] sm:$0xff]  ;;  %v3322_v42 = vld [vmem:[#allocation48_spill] sm:$0xff] }
 0x11e   :  { %886 = vmatpush.msra.mxu0 %v2271_v40  ;;  %906 = vmatpush.msrb.mxu1 %v2274_v41 }
 0x11f   :  { %926 = vmatpush.msrb.mxu2 %v2295_v47  ;;  %946 = vmatpush.msrb.mxu3 %v2297_v48 }
 0x120   :  { %887 = vmatpush.msra.mxu0 %v2287_v45  ;;  %907 = vmatpush.msrb.mxu1 %v2290_v46  ;;  %v3323_v45 = vld [vmem:[#allocation50_spill] sm:$0xff] }
 0x121   :  { %927 = vmatpush.msrb.mxu2 %v2307_v51  ;;  %947 = vmatpush.msrb.mxu3 %v2309_v52 }
 0x122   :  { %888 = vmatpush.msra.mxu0 %v2301_v49  ;;  %908 = vmatpush.msrb.mxu1 %v2303_v50  ;;  %v3324_v50 = vld [vmem:[#allocation51_spill] sm:$0xff] }
 0x123   :  { %928 = vmatpush.msrb.mxu2 %v3296_v9  ;;  %948 = vmatpush.msrb.mxu3 %v3297_v13 }
 0x124   :  { %889 = vmatpush.msra.mxu0 %v3298_v14  ;;  %909 = vmatpush.msrb.mxu1 %v3299_v15 }
 0x125   :  { %929 = vmatpush.msrb.mxu2 %v3300_v16  ;;  %949 = vmatpush.msrb.mxu3 %v3301_v17 }
 0x126   :  { %890 = vmatpush.msra.mxu0 %v3302_v19  ;;  %910 = vmatpush.msrb.mxu1 %v3303_v20 }
 0x127   :  { %930 = vmatpush.msrb.mxu2 %v3304_v21  ;;  %950 = vmatpush.msrb.mxu3 %v3305_v22 }
 0x128   :  { %891 = vmatpush.msra.mxu0 %v3306_v23  ;;  %911 = vmatpush.msrb.mxu1 %v3307_v24 }
 0x129   :  { %931 = vmatpush.msrb.mxu2 %v3308_v25  ;;  %951 = vmatpush.msrb.mxu3 %v3309_v26 }
 0x12a   :  { %892 = vmatpush.msra.mxu0 %v3310_v27  ;;  %912 = vmatpush.msrb.mxu1 %v3311_v28 }
 0x12b   :  { %932 = vmatpush.msrb.mxu2 %v3312_v29  ;;  %952 = vmatpush.msrb.mxu3 %v3313_v30 }
 0x12c   :  { %893 = vmatpush.msra.mxu0 %v3314_v32  ;;  %913 = vmatpush.msrb.mxu1 %v3315_v33 }
 0x12d   :  { %933 = vmatpush.msrb.mxu2 %v3316_v34  ;;  %953 = vmatpush.msrb.mxu3 %v3317_v35 }
 0x12e   :  { %894 = vmatpush.msra.mxu0 %v3318_v36  ;;  %914 = vmatpush.msrb.mxu1 %v3319_v37 }
 0x12f   :  { %934 = vmatpush.msrb.mxu2 %v3320_v38  ;;  %954 = vmatpush.msrb.mxu3 %v3321_v39 }
 0x18b   :  { %v592_v40 = vpop.f32.mrf.mxu0  ;;  %v612_v41 = vpop.f32.mrf.mxu1 }
 0x18c   :  { %v655_v43 = vadd.f32 %v592_v40, %v3322_v42  ;;  %v656_v46 = vadd.f32 %v612_v41, %v3323_v45 }
 0x18e   :  { %v1734_v47 = vmul.f32 -1.442695, %v655_v43  ;;  %v1735_v48 = vmul.f32 -1.442695, %v656_v46  ;;  %v2702_v46 = vld [vmem:[#allocation10 + $0x1e8] sm:$0xff] }
 0x190   :  { %1789 = vpow2.f32 %v1734_v47  ;;  %v2705_v47 = vld [vmem:[#allocation10 + $0x1f0] sm:$0xff] }
 0x191   :  { %1791 = vpow2.f32 %v1735_v48  ;;  %v2708_v48 = vld [vmem:[#allocation10 + $0x1f8] sm:$0xff] }
 0x192   :  { %v632_v49 = vpop.f32.mrf.mxu2  ;;  %v652_v4 = vpop.f32.mrf.mxu3 }
 0x193   :  { %v657_v51 = vadd.f32 %v632_v49, %v3324_v50  ;;  %v658_v5 = vadd.f32 %v652_v4, %v3325_v54  ;;  %v2711_v49 = vld [vmem:[#allocation10 + $0x1c0] sm:$0xff]  ;;  %v2714_v50 = vld [vmem:[#allocation10 + $0x1c8] sm:$0xff] }
 0x194   :  { %v2735_v4 = vld [vmem:[#allocation10 + $0x180] sm:$0xff] }
 0x195   :  { %v1736_v52 = vmul.f32 -1.442695, %v657_v51  ;;  %v2717_v51 = vld [vmem:[#allocation10 + $0x1d0] sm:$0xff]  ;;  %v2747_v54 = vld [vmem:[#allocation10 + $0x160] sm:$0xff] }
 0x196   :  { %v1790_v53 = vpop.eup %1789 }
 0x197   :  { %v1792_v55 = vpop.eup %1791  ;;  %v668_v2 = vadd.f32 1.0, %v1790_v53  ;;  %1793 = vpow2.f32 %v1736_v52  ;;  %v2720_v52 = vld [vmem:[#allocation10 + $0x1d8] sm:$0xff]  ;;  %v2723_v53 = vld [vmem:[#allocation10 + $0x1a0] sm:$0xff] }
 0x198   :  { %v669_v6 = vadd.f32 1.0, %v1792_v55  ;;  %v2726_v55 = vld [vmem:[#allocation10 + $0x1a8] sm:$0xff] }
 0x199   :  { %1795 = vrcp.f32 %v668_v2  ;;  %v682_v62 = vand.u32 2147483648, %v668_v2  ;;  %v680_v61 = vand.u32 2147483647, %v668_v2  ;;  %vm676_vm15 = vweird.f32 %v668_v2 }
 0x19a   :  { %1797 = vrcp.f32 %v669_v6  ;;  %v697_v18 = vand.u32 2147483648, %v669_v6  ;;  %v695_v12 = vand.u32 2147483647, %v669_v6  ;;  %vm691_vm0 = vweird.f32 %v669_v6 }
 0x19b   :  { %v683_v63 = vor.u32 1.1754944e-38, %v682_v62  ;;  %vm681_vm3 = vcmp.eq.f32.partialorder %v680_v61, 8.507059e+37  ;;  %v2768_v62 = vld [vmem:[#allocation10 + $0x158] sm:$0xff]  ;;  %v2777_v61 = vld [vmem:[#allocation10 + $0x130] sm:$0xff] }
 0x19c   :  { %v698_v13 = vor.u32 1.1754944e-38, %v697_v18  ;;  %vm696_vm4 = vcmp.eq.f32.partialorder %v695_v12, 8.507059e+37  ;;  %v2771_v18 = vld [vmem:[#allocation10 + $0x120] sm:$0xff] }
 0x19d   :  { %v1794_v3 = vpop.eup %1793  ;;  %v2783_v12 = vld [vmem:[#allocation10 + $0x100] sm:$0xff] }
 0x19e   :  { %v670_v44 = vadd.f32 1.0, %v1794_v3  ;;  %v2738_v3 = vld [vmem:[#allocation10 + $0x188] sm:$0xff] }
 0x19f   :  { %v1796_v58 = vpop.eup %1795 }
 0x1a0   :  { %v1798_v7 = vpop.eup %1797  ;;  %v672_v0 = vmul.f32 %v1796_v58, %v668_v2  ;;  %1799 = vrcp.f32 %v670_v44  ;;  %vm677_vm13 = vweird.f32 %v1796_v58  ;;  %v712_v32 = vand.u32 2147483648, %v670_v44  ;;  %v2729_v2 = vld [vmem:[#allocation10 + $0x1b0] sm:$0xff] }
 0x1a1   :  { %v687_v10 = vmul.f32 %v1798_v7, %v669_v6  ;;  %1801 = vtanh.f32 %v658_v5  ;;  %vm692_vm14 = vweird.f32 %v1798_v7  ;;  %vm678_vm1 = vmor %vm676_vm15, %vm677_vm13  ;;  %vm706_vm6 = vweird.f32 %v670_v44  ;;  %v2732_v6 = vld [vmem:[#allocation10 + $0x1b8] sm:$0xff]  ;;  %v2750_v5 = vld [vmem:[#allocation10 + $0x168] sm:$0xff] }
 0x1a2   :  { %v673_v60 = vsub.f32 1.0, %v672_v0  ;;  %vm693_vm2 = vmor %vm691_vm0, %vm692_vm14  ;;  %v710_v36 = vand.u32 2147483647, %v670_v44  ;;  %v713_v41 = vor.u32 1.1754944e-38, %v712_v32  ;;  %v2756_v0 = vld [vmem:[#allocation10 + $0x178] sm:$0xff]  ;;  %v2834_v32 = vld [vmem:[#allocation10 + $0x88] sm:$0xff] }
 0x1a3   :  { %v688_v1 = vsub.f32 1.0, %v687_v10  ;;  %v2759_v10 = vld [vmem:[#allocation10 + $0x140] sm:$0xff]  ;;  %3333 = vst [vmem:[#allocation25_spill] sm:$0xff] %v2834_v32 }
 0x1a4   :  { %v674_v11 = vmul.f32 %v1796_v58, %v673_v60  ;;  %vm711_vm8 = vcmp.eq.f32.partialorder %v710_v36, 8.507059e+37  ;;  %v2762_v60 = vld [vmem:[#allocation10 + $0x148] sm:$0xff]  ;;  %v2837_v36 = vld [vmem:[#allocation10 + $0x90] sm:$0xff] }
 0x1a5   :  { %v689_v31 = vmul.f32 %v1798_v7, %v688_v1  ;;  %v2765_v1 = vld [vmem:[#allocation10 + $0x150] sm:$0xff]  ;;  %3334 = vst [vmem:[#allocation30_spill] sm:$0xff] %v2837_v36 }
 0x1a6   :  { %v1800_v8 = vpop.eup %1799  ;;  %v675_v57 = vadd.f32 %v1796_v58, %v674_v11  ;;  %v2774_v11 = vld [vmem:[#allocation10 + $0x128] sm:$0xff] }
 0x1a7   :  { %v702_v59 = vmul.f32 %v1800_v8, %v670_v44  ;;  %v690_v9 = vadd.f32 %v1798_v7, %v689_v31  ;;  %v1802_v15 = vpop.eup %1801  ;;  %vm707_vm5 = vweird.f32 %v1800_v8  ;;  %v2741_v44 = vld [vmem:[#allocation10 + $0x190] sm:$0xff]  ;;  %v2780_v31 = vld [vmem:[#allocation10 + $0x138] sm:$0xff] }
 0x1a8   :  { %v679_v14 = vsel %vm678_vm1, %v1796_v58, %v675_v57  ;;  %vm708_vm7 = vmor %vm706_vm6, %vm707_vm5  ;;  %v2744_v58 = vld [vmem:[#allocation10 + $0x198] sm:$0xff]  ;;  %v2789_v57 = vld [vmem:[#allocation10 + $0x110] sm:$0xff] }
 0x1a9   :  { %v703_v16 = vsub.f32 1.0, %v702_v59  ;;  %v684_v17 = vsel %vm681_vm3, %v683_v63, %v679_v14  ;;  %v694_v19 = vsel %vm693_vm2, %v1798_v7, %v690_v9  ;;  %v2753_v7 = vld [vmem:[#allocation10 + $0x170] sm:$0xff]  ;;  %v2792_v59 = vld [vmem:[#allocation10 + $0x118] sm:$0xff]  ;;  %v2795_v63 = vld [vmem:[#allocation10 + $0xe0] sm:$0xff] }
 0x1aa   :  { %v699_v20 = vsel %vm696_vm4, %v698_v13, %v694_v19  ;;  %v718_v21 = vmul.f32 %v1802_v15, %v684_v17  ;;  %v2798_v9 = vld [vmem:[#allocation10 + $0xe8] sm:$0xff]  ;;  %v2801_v13 = vld [vmem:[#allocation10 + $0xf0] sm:$0xff]  ;;  %v2804_v14 = vld [vmem:[#allocation10 + $0xf8] sm:$0xff] }
 0x1ab   :  { %v717_v23 = vmul.f32 %v699_v20, %v2624_v56  ;;  %v704_v24 = vmul.f32 %v1800_v8, %v703_v16  ;;  %v2699_v56 = vld [vmem:[#allocation10 + $0x1e0] sm:$0xff]  ;;  %v2810_v16 = vld [vmem:[#allocation10 + $0xc8] sm:$0xff]  ;;  %v2813_v17 = vld [vmem:[#allocation10 + $0xd0] sm:$0xff] }
 0x1ac   :  { %v2807_v15 = vld [vmem:[#allocation10 + $0xc0] sm:$0xff]  ;;  %3326 = vst [vmem:[#allocation21_spill] sm:$0xff] %v2813_v17  ;;  %v2816_v19 = vld [vmem:[#allocation10 + $0xd8] sm:$0xff] }
 0x1ad   :  { %v2696_v27 = vadd.f32 %v718_v21, %v717_v23  ;;  %v705_v28 = vadd.f32 %v1800_v8, %v704_v24  ;;  %3327 = vst [vmem:[#allocation22_spill] sm:$0xff] %v2816_v19  ;;  %v2819_v20 = vld [vmem:[#allocation10 + $0xa0] sm:$0xff]  ;;  %v2822_v21 = vld [vmem:[#allocation10 + $0xa8] sm:$0xff]  ;;  %v2825_v23 = vld [vmem:[#allocation10 + $0xb0] sm:$0xff] }
 0x1ae   :  { %3328 = vst [vmem:[#allocation19_spill] sm:$0xff] %v2819_v20  ;;  %v2828_v24 = vld [vmem:[#allocation10 + $0xb8] sm:$0xff] }
 0x1af   :  { %1803 = vtanh.f32 %v2696_v27  ;;  %v709_v40 = vsel %vm708_vm7, %v1800_v8, %v705_v28  ;;  %v2786_v8 = vld [vmem:[#allocation10 + $0x108] sm:$0xff]  ;;  %3329 = vst [vmem:[#allocation20_spill] sm:$0xff] %v2822_v21  ;;  %v2831_v28 = vld [vmem:[#allocation10 + $0x80] sm:$0xff] }
 0x1b0   :  { %v714_v43 = vsel %vm711_vm8, %v713_v41, %v709_v40  ;;  %3330 = vst [vmem:[#allocation26_spill] sm:$0xff] %v2825_v23  ;;  %v2841_v40 = vld [vmem:[#allocation10 + $0x60] sm:$0xff]  ;;  %v2844_v41 = vld [vmem:[#allocation10 + $0x68] sm:$0xff] }
 0x1b1   :  { %3331 = vst [vmem:[#allocation28_spill] sm:$0xff] %v2828_v24 }
 0x1b2   :  { %3332 = vst [vmem:[#allocation23_spill] sm:$0xff] %v2831_v28 }
 0x1b3   :  { %3335 = vst [vmem:[#allocation32_spill] sm:$0xff] %v2841_v40 }
 0x1b4   :  { %3336 = vst [vmem:[#allocation24_spill] sm:$0xff] %v2844_v41 }
 0x1b5   :  { %v1804_v42 = vpop.eup %1803 }
 0x1b6   :  { %v721_v45 = vmul.f32 %v1804_v42, %v714_v43  ;;  %v2849_v42 = vld [vmem:[#allocation10 + $0x40] sm:$0xff]  ;;  %v2852_v43 = vld [vmem:[#allocation10 + $0x48] sm:$0xff] }
 0x1b7   :  { %3337 = vst [vmem:[#allocation29_spill] sm:$0xff] %v2849_v42 }
 0x1b8   :  { %743 = vmatmul.f32.vlgmr.msrb.gmra.mxu0 %v721_v45  ;;  %763 = vmatmul.f32.vlgmr.msra.gmra.mxu1 %v721_v45  ;;  %3338 = vst [vmem:[#allocation34_spill] sm:$0xff] %v2852_v43 }
 0x1b9   :  { %783 = vmatmul.f32.vlgmr.msra.gmra.mxu2 %v721_v45  ;;  %803 = vmatmul.f32.vlgmr.msra.gmra.mxu3 %v721_v45 }
 0x1ba   :  { %1031 = vmatpush.msrb.mxu0 %v2699_v56  ;;  %1051 = vmatpush.msra.mxu1 %v2702_v46 }
 0x1bb   :  { %1071 = vmatpush.msra.mxu2 %v2705_v47  ;;  %1091 = vmatpush.msra.mxu3 %v2708_v48 }
 0x1bc   :  { %1032 = vmatpush.msrb.mxu0 %v2711_v49  ;;  %1052 = vmatpush.msra.mxu1 %v2714_v50 }
 0x1bd   :  { %1072 = vmatpush.msra.mxu2 %v2717_v51  ;;  %1092 = vmatpush.msra.mxu3 %v2720_v52 }
 0x1be   :  { %1033 = vmatpush.msrb.mxu0 %v2723_v53  ;;  %1053 = vmatpush.msra.mxu1 %v2726_v55 }
 0x1bf   :  { %1073 = vmatpush.msra.mxu2 %v2729_v2  ;;  %1093 = vmatpush.msra.mxu3 %v2732_v6 }
 0x1c0   :  { %1034 = vmatpush.msrb.mxu0 %v2735_v4  ;;  %1054 = vmatpush.msra.mxu1 %v2738_v3 }
 0x1c1   :  { %1074 = vmatpush.msra.mxu2 %v2741_v44  ;;  %1094 = vmatpush.msra.mxu3 %v2744_v58 }
 0x1c2   :  { %1035 = vmatpush.msrb.mxu0 %v2747_v54  ;;  %1055 = vmatpush.msra.mxu1 %v2750_v5 }
 0x1c3   :  { %1075 = vmatpush.msra.mxu2 %v2753_v7  ;;  %1095 = vmatpush.msra.mxu3 %v2756_v0 }
 0x1c4   :  { %1036 = vmatpush.msrb.mxu0 %v2759_v10  ;;  %1056 = vmatpush.msra.mxu1 %v2762_v60 }
 0x1c5   :  { %1076 = vmatpush.msra.mxu2 %v2765_v1  ;;  %1096 = vmatpush.msra.mxu3 %v2768_v62 }
 0x1c6   :  { %1037 = vmatpush.msrb.mxu0 %v2771_v18  ;;  %1057 = vmatpush.msra.mxu1 %v2774_v11 }
 0x1c7   :  { %1077 = vmatpush.msra.mxu2 %v2777_v61  ;;  %1097 = vmatpush.msra.mxu3 %v2780_v31 }
 0x1c8   :  { %1038 = vmatpush.msrb.mxu0 %v2783_v12  ;;  %1058 = vmatpush.msra.mxu1 %v2786_v8 }
 0x1c9   :  { %1078 = vmatpush.msra.mxu2 %v2789_v57  ;;  %1098 = vmatpush.msra.mxu3 %v2792_v59 }
 0x1ca   :  { %1039 = vmatpush.msrb.mxu0 %v2795_v63  ;;  %1059 = vmatpush.msra.mxu1 %v2798_v9 }
 0x1cb   :  { %1079 = vmatpush.msra.mxu2 %v2801_v13  ;;  %1099 = vmatpush.msra.mxu3 %v2804_v14 }
 0x1cc   :  { %1040 = vmatpush.msrb.mxu0 %v2807_v15  ;;  %1060 = vmatpush.msra.mxu1 %v2810_v16 }
 0x1cd   :  { %1080 = vmatpush.msra.mxu2 %v2813_v17  ;;  %1100 = vmatpush.msra.mxu3 %v2816_v19 }
 0x1ce   :  { %1041 = vmatpush.msrb.mxu0 %v2819_v20  ;;  %1061 = vmatpush.msra.mxu1 %v2822_v21 }
 0x1cf   :  { %1081 = vmatpush.msra.mxu2 %v2825_v23  ;;  %1101 = vmatpush.msra.mxu3 %v2828_v24 }
 0x1d0   :  { %1042 = vmatpush.msrb.mxu0 %v2831_v28  ;;  %1062 = vmatpush.msra.mxu1 %v2834_v32 }
 0x1d1   :  { %1082 = vmatpush.msra.mxu2 %v2837_v36  ;;  %1102 = vmatpush.msra.mxu3 %v3305_v22  ;;  %v2857_v22 = vld [vmem:[#allocation10 + $0x20] sm:$0xff] }
 0x1d2   :  { %1043 = vmatpush.msrb.mxu0 %v2841_v40  ;;  %1063 = vmatpush.msra.mxu1 %v2844_v41  ;;  %3339 = vst [vmem:[#allocation38_spill] sm:$0xff] %v2857_v22 }
 0x1d3   :  { %1083 = vmatpush.msra.mxu2 %v3308_v25  ;;  %1103 = vmatpush.msra.mxu3 %v3309_v26  ;;  %v2863_v25 = vld [vmem:[#allocation10] sm:$0xff] }
 0x1d4   :  { %1044 = vmatpush.msrb.mxu0 %v2849_v42  ;;  %1064 = vmatpush.msra.mxu1 %v2852_v43  ;;  %3340 = vst [vmem:[#allocation27_spill] sm:$0xff] %v2863_v25  ;;  %v3343_v42 = vld [vmem:[#allocation55_spill] sm:$0xff] }
 0x1d5   :  { %1084 = vmatpush.msra.mxu2 %v3312_v29  ;;  %1104 = vmatpush.msra.mxu3 %v3313_v30  ;;  %v3341_v30 = vld [vmem:[#allocation49_spill] sm:$0xff] }
 0x1d6   :  { %1045 = vmatpush.msrb.mxu0 %v2857_v22  ;;  %1065 = vmatpush.msra.mxu1 %v3315_v33  ;;  %v3342_v22 = vld [vmem:[#allocation54_spill] sm:$0xff] }
 0x1d7   :  { %1085 = vmatpush.msra.mxu2 %v3316_v34  ;;  %1105 = vmatpush.msra.mxu3 %v3317_v35 }
 0x1d8   :  { %1046 = vmatpush.msrb.mxu0 %v2863_v25  ;;  %1066 = vmatpush.msra.mxu1 %v3319_v37 }
 0x1d9   :  { %1086 = vmatpush.msra.mxu2 %v3320_v38  ;;  %1106 = vmatpush.msra.mxu3 %v3321_v39 }
 0x235   :  { %v744_v26 = vpop.f32.mrf.mxu0  ;;  %v764_v29 = vpop.f32.mrf.mxu1 }
 0x236   :  { %v807_v45 = vadd.f32 %v744_v26, %v3341_v30  ;;  %v808_v33 = vadd.f32 %v764_v29, %v3342_v22  ;;  %v3344_v22 = vld [vmem:[#allocation56_spill] sm:$0xff] }
 0x238   :  { %v1737_v43 = vmul.f32 -1.442695, %v807_v45  ;;  %v1738_v34 = vmul.f32 -1.442695, %v808_v33 }
 0x23a   :  { %1805 = vpow2.f32 %v1737_v43 }
 0x23b   :  { %1807 = vpow2.f32 %v1738_v34 }
 0x23c   :  { %v784_v35 = vpop.f32.mrf.mxu2  ;;  %v804_v39 = vpop.f32.mrf.mxu3 }
 0x23d   :  { %v809_v41 = vadd.f32 %v784_v35, %v3343_v42  ;;  %v810_v29 = vadd.f32 %v804_v39, %v3344_v22 }
 0x23f   :  { %v1739_v25 = vmul.f32 -1.442695, %v809_v41 }
 0x240   :  { %v1806_v40 = vpop.eup %1805 }
 0x241   :  { %v1808_v37 = vpop.eup %1807  ;;  %v820_v36 = vadd.f32 1.0, %v1806_v40  ;;  %1809 = vpow2.f32 %v1739_v25 }
 0x242   :  { %v821_v38 = vadd.f32 1.0, %v1808_v37 }
 0x243   :  { %1811 = vrcp.f32 %v820_v36  ;;  %v834_v41 = vand.u32 2147483648, %v820_v36  ;;  %v832_v25 = vand.u32 2147483647, %v820_v36  ;;  %vm828_vm11 = vweird.f32 %v820_v36 }
 0x244   :  { %1813 = vrcp.f32 %v821_v38  ;;  %v849_v35 = vand.u32 2147483648, %v821_v38  ;;  %v847_v28 = vand.u32 2147483647, %v821_v38  ;;  %vm843_vm12 = vweird.f32 %v821_v38 }
 0x245   :  { %v835_v22 = vor.u32 1.1754944e-38, %v834_v41  ;;  %vm833_vm15 = vcmp.eq.f32.partialorder %v832_v25, 8.507059e+37 }
 0x246   :  { %vm848_vm0 = vcmp.eq.f32.partialorder %v847_v28, 8.507059e+37 }
 0x247   :  { %v1810_v32 = vpop.eup %1809 }
 0x248   :  { %v822_v26 = vadd.f32 1.0, %v1810_v32 }
 0x249   :  { %v1812_v30 = vpop.eup %1811 }
 0x24a   :  { %v1814_v45 = vpop.eup %1813  ;;  %v824_v43 = vmul.f32 %v1812_v30, %v820_v36  ;;  %1815 = vrcp.f32 %v822_v26  ;;  %vm829_vm9 = vweird.f32 %v1812_v30  ;;  %v864_v41 = vand.u32 2147483648, %v822_v26 }
 0x24b   :  { %v839_v33 = vmul.f32 %v1814_v45, %v821_v38  ;;  %1817 = vtanh.f32 %v810_v29  ;;  %vm844_vm10 = vweird.f32 %v1814_v45  ;;  %vm830_vm13 = vmor %vm828_vm11, %vm829_vm9  ;;  %vm858_vm2 = vweird.f32 %v822_v26 }
 0x24c   :  { %v825_v34 = vsub.f32 1.0, %v824_v43  ;;  %vm845_vm14 = vmor %vm843_vm12, %vm844_vm10  ;;  %v850_v43 = vor.u32 1.1754944e-38, %v849_v35  ;;  %v865_v25 = vor.u32 1.1754944e-38, %v864_v41  ;;  %v3363_v41 = vld [vmem:[#allocation38_spill] sm:$0xff] }
 0x24d   :  { %v840_v42 = vsub.f32 1.0, %v839_v33 }
 0x24e   :  { %v826_v40 = vmul.f32 %v1812_v30, %v825_v34 }
 0x24f   :  { %v841_v37 = vmul.f32 %v1814_v45, %v840_v42 }
 0x250   :  { %v1816_v24 = vpop.eup %1815  ;;  %v827_v32 = vadd.f32 %v1812_v30, %v826_v40 }
 0x251   :  { %v854_v39 = vmul.f32 %v1816_v24, %v822_v26  ;;  %v842_v23 = vadd.f32 %v1814_v45, %v841_v37  ;;  %v1818_v29 = vpop.eup %1817  ;;  %vm859_vm1 = vweird.f32 %v1816_v24  ;;  %v3352_v37 = vld [vmem:[#allocation25_spill] sm:$0xff] }
 0x252   :  { %v831_v33 = vsel %vm830_vm13, %v1812_v30, %v827_v32  ;;  %v862_v30 = vand.u32 2147483647, %v822_v26  ;;  %vm860_vm3 = vmor %vm858_vm2, %vm859_vm1  ;;  %v3350_v26 = vld [vmem:[#allocation28_spill] sm:$0xff]  ;;  %v3353_v32 = vld [vmem:[#allocation30_spill] sm:$0xff] }
 0x253   :  { %v855_v21 = vsub.f32 1.0, %v854_v39  ;;  %v836_v34 = vsel %vm833_vm15, %v835_v22, %v831_v33  ;;  %v846_v20 = vsel %vm845_vm14, %v1814_v45, %v842_v23  ;;  %v3351_v45 = vld [vmem:[#allocation23_spill] sm:$0xff]  ;;  %v2924_v39 = vld [vmem:[#allocation10 + $0x98] sm:$0xff] }
 0x254   :  { %v851_v42 = vsel %vm848_vm0, %v850_v43, %v846_v20  ;;  %v870_v19 = vmul.f32 %v1818_v29, %v836_v34  ;;  %vm863_vm4 = vcmp.eq.f32.partialorder %v862_v30, 8.507059e+37  ;;  %3354 = vst [vmem:[#allocation33_spill] sm:$0xff] %v2924_v39  ;;  %v3355_v22 = vld [vmem:[#allocation32_spill] sm:$0xff]  ;;  %v3359_v34 = vld [vmem:[#allocation29_spill] sm:$0xff]  ;;  %v2944_v30 = vld [vmem:[#allocation10 + $0x28] sm:$0xff] }
 0x255   :  { %v869_v17 = vmul.f32 %v851_v42, %v2696_v27  ;;  %v856_v40 = vmul.f32 %v1816_v24, %v855_v21  ;;  %v3345_v27 = vld [vmem:[#allocation21_spill] sm:$0xff]  ;;  %v3348_v21 = vld [vmem:[#allocation20_spill] sm:$0xff]  ;;  %v3360_v42 = vld [vmem:[#allocation34_spill] sm:$0xff]  ;;  %3364 = vst [vmem:[#allocation41_spill] sm:$0xff] %v2944_v30 }
 0x256   :  { %v3356_v43 = vld [vmem:[#allocation24_spill] sm:$0xff] }
 0x257   :  { %v2874_v36 = vadd.f32 %v870_v19, %v869_v17  ;;  %v857_v38 = vadd.f32 %v1816_v24, %v856_v40  ;;  %v3346_v17 = vld [vmem:[#allocation22_spill] sm:$0xff]  ;;  %v3347_v19 = vld [vmem:[#allocation19_spill] sm:$0xff]  ;;  %v2932_v29 = vld [vmem:[#allocation10 + $0x78] sm:$0xff] }
 0x258   :  { %v2929_v33 = vld [vmem:[#allocation10 + $0x70] sm:$0xff]  ;;  %3358 = vst [vmem:[#allocation40_spill] sm:$0xff] %v2932_v29 }
 0x259   :  { %1819 = vtanh.f32 %v2874_v36  ;;  %v861_v35 = vsel %vm860_vm3, %v1816_v24, %v857_v38  ;;  %v3349_v24 = vld [vmem:[#allocation26_spill] sm:$0xff]  ;;  %3357 = vst [vmem:[#allocation37_spill] sm:$0xff] %v2929_v33  ;;  %v2937_v40 = vld [vmem:[#allocation10 + $0x50] sm:$0xff]  ;;  %v2940_v38 = vld [vmem:[#allocation10 + $0x58] sm:$0xff] }
 0x25a   :  { %v866_v28 = vsel %vm863_vm4, %v865_v25, %v861_v35  ;;  %3361 = vst [vmem:[#allocation31_spill] sm:$0xff] %v2937_v40  ;;  %v2947_v35 = vld [vmem:[#allocation10 + $0x30] sm:$0xff]  ;;  %v2950_v25 = vld [vmem:[#allocation10 + $0x38] sm:$0xff] }
 0x25b   :  { %3362 = vst [vmem:[#allocation36_spill] sm:$0xff] %v2940_v38 }
 0x25c   :  { %3365 = vst [vmem:[#allocation42_spill] sm:$0xff] %v2947_v35 }
 0x25d   :  { %3366 = vst [vmem:[#allocation35_spill] sm:$0xff] %v2950_v25 }
 0x25f   :  { %v1820_v23 = vpop.eup %1819 }
 0x260   :  { %v873_v20 = vmul.f32 %v1820_v23, %v866_v28  ;;  %v3367_v23 = vld [vmem:[#allocation27_spill] sm:$0xff] }
 0x261   :  { %v2954_v28 = vld [vmem:[#allocation10 + $0x8] sm:$0xff] }
 0x262   :  { %895 = vmatmul.f32.vlgmr.msra.gmra.mxu0 %v873_v20  ;;  %915 = vmatmul.f32.vlgmr.msrb.gmra.mxu1 %v873_v20  ;;  %3368 = vst [vmem:[#allocation39_spill] sm:$0xff] %v2954_v28 }
 0x263   :  { %935 = vmatmul.f32.vlgmr.msrb.gmra.mxu2 %v873_v20  ;;  %955 = vmatmul.f32.vlgmr.msrb.gmra.mxu3 %v873_v20  ;;  %v2957_v20 = vld [vmem:[#allocation10 + $0x10] sm:$0xff] }
 0x264   :  { %1183 = vmatpush.msra.mxu0 %v2699_v56  ;;  %1203 = vmatpush.msrb.mxu1 %v2702_v46  ;;  %3369 = vst [vmem:[#allocation43_spill] sm:$0xff] %v2957_v20 }
 0x265   :  { %1223 = vmatpush.msrb.mxu2 %v2705_v47  ;;  %1243 = vmatpush.msrb.mxu3 %v2708_v48 }
 0x266   :  { %1184 = vmatpush.msra.mxu0 %v2711_v49  ;;  %1204 = vmatpush.msrb.mxu1 %v2714_v50 }
 0x267   :  { %1224 = vmatpush.msrb.mxu2 %v2717_v51  ;;  %1244 = vmatpush.msrb.mxu3 %v2720_v52 }
 0x268   :  { %1185 = vmatpush.msra.mxu0 %v2723_v53  ;;  %1205 = vmatpush.msrb.mxu1 %v2726_v55 }
 0x269   :  { %1225 = vmatpush.msrb.mxu2 %v2729_v2  ;;  %1245 = vmatpush.msrb.mxu3 %v2732_v6 }
 0x26a   :  { %1186 = vmatpush.msra.mxu0 %v2735_v4  ;;  %1206 = vmatpush.msrb.mxu1 %v2738_v3 }
 0x26b   :  { %1226 = vmatpush.msrb.mxu2 %v2741_v44  ;;  %1246 = vmatpush.msrb.mxu3 %v2744_v58 }
 0x26c   :  { %1187 = vmatpush.msra.mxu0 %v2747_v54  ;;  %1207 = vmatpush.msrb.mxu1 %v2750_v5 }
 0x26d   :  { %1227 = vmatpush.msrb.mxu2 %v2753_v7  ;;  %1247 = vmatpush.msrb.mxu3 %v2756_v0 }
 0x26e   :  { %1188 = vmatpush.msra.mxu0 %v2759_v10  ;;  %1208 = vmatpush.msrb.mxu1 %v2762_v60 }
 0x26f   :  { %1228 = vmatpush.msrb.mxu2 %v2765_v1  ;;  %1248 = vmatpush.msrb.mxu3 %v2768_v62 }
 0x270   :  { %1189 = vmatpush.msra.mxu0 %v2771_v18  ;;  %1209 = vmatpush.msrb.mxu1 %v2774_v11 }
 0x271   :  { %1229 = vmatpush.msrb.mxu2 %v2777_v61  ;;  %1249 = vmatpush.msrb.mxu3 %v2780_v31 }
 0x272   :  { %1190 = vmatpush.msra.mxu0 %v2783_v12  ;;  %1210 = vmatpush.msrb.mxu1 %v2786_v8 }
 0x273   :  { %1230 = vmatpush.msrb.mxu2 %v2789_v57  ;;  %1250 = vmatpush.msrb.mxu3 %v2792_v59 }
 0x274   :  { %1191 = vmatpush.msra.mxu0 %v2795_v63  ;;  %1211 = vmatpush.msrb.mxu1 %v2798_v9 }
 0x275   :  { %1231 = vmatpush.msrb.mxu2 %v2801_v13  ;;  %1251 = vmatpush.msrb.mxu3 %v2804_v14 }
 0x276   :  { %1192 = vmatpush.msra.mxu0 %v2807_v15  ;;  %1212 = vmatpush.msrb.mxu1 %v2810_v16 }
 0x277   :  { %1232 = vmatpush.msrb.mxu2 %v3345_v27  ;;  %1252 = vmatpush.msrb.mxu3 %v3346_v17 }
 0x278   :  { %1193 = vmatpush.msra.mxu0 %v3347_v19  ;;  %1213 = vmatpush.msrb.mxu1 %v3348_v21 }
 0x279   :  { %1233 = vmatpush.msrb.mxu2 %v3349_v24  ;;  %1253 = vmatpush.msrb.mxu3 %v3350_v26 }
 0x27a   :  { %1194 = vmatpush.msra.mxu0 %v3351_v45  ;;  %1214 = vmatpush.msrb.mxu1 %v3352_v37 }
 0x27b   :  { %1234 = vmatpush.msrb.mxu2 %v3353_v32  ;;  %1254 = vmatpush.msrb.mxu3 %v2924_v39 }
 0x27c   :  { %1195 = vmatpush.msra.mxu0 %v3355_v22  ;;  %1215 = vmatpush.msrb.mxu1 %v3356_v43 }
 0x27d   :  { %1235 = vmatpush.msrb.mxu2 %v2929_v33  ;;  %1255 = vmatpush.msrb.mxu3 %v2932_v29 }
 0x27e   :  { %1196 = vmatpush.msra.mxu0 %v3359_v34  ;;  %1216 = vmatpush.msrb.mxu1 %v3360_v42  ;;  %v3372_v42 = vld [vmem:[#allocation57_spill] sm:$0xff] }
 0x27f   :  { %1236 = vmatpush.msrb.mxu2 %v2937_v40  ;;  %1256 = vmatpush.msrb.mxu3 %v2940_v38  ;;  %v3371_v38 = vld [vmem:[#allocation53_spill] sm:$0xff] }
 0x280   :  { %1197 = vmatpush.msra.mxu0 %v3363_v41  ;;  %1217 = vmatpush.msrb.mxu1 %v2944_v30  ;;  %v2960_v41 = vld [vmem:[#allocation10 + $0x18] sm:$0xff] }
 0x281   :  { %1237 = vmatpush.msrb.mxu2 %v2947_v35  ;;  %1257 = vmatpush.msrb.mxu3 %v2950_v25  ;;  %3370 = vst [vmem:[#allocation44_spill] sm:$0xff] %v2960_v41 }
 0x282   :  { %1198 = vmatpush.msra.mxu0 %v3367_v23  ;;  %1218 = vmatpush.msrb.mxu1 %v2954_v28  ;;  %v3373_v28 = vld [vmem:[#allocation59_spill] sm:$0xff] }
 0x283   :  { %1238 = vmatpush.msrb.mxu2 %v2957_v20  ;;  %1258 = vmatpush.msrb.mxu3 %v2960_v41 }
 0x2df   :  { %v896_v30 = vpop.f32.mrf.mxu0  ;;  %v916_v35 = vpop.f32.mrf.mxu1 }
 0x2e0   :  { %v959_v40 = vadd.f32 %v896_v30, %v3371_v38  ;;  %v960_v25 = vadd.f32 %v916_v35, %v3372_v42  ;;  %v3374_v42 = vld [vmem:[#allocation60_spill] sm:$0xff] }
 0x2e2   :  { %v1740_v34 = vmul.f32 -1.442695, %v959_v40  ;;  %v1741_v23 = vmul.f32 -1.442695, %v960_v25 }
 0x2e4   :  { %1821 = vpow2.f32 %v1740_v34 }
 0x2e5   :  { %1823 = vpow2.f32 %v1741_v23 }
 0x2e6   :  { %v936_v29 = vpop.f32.mrf.mxu2  ;;  %v956_v41 = vpop.f32.mrf.mxu3 }
 0x2e7   :  { %v961_v33 = vadd.f32 %v936_v29, %v3373_v28  ;;  %v962_v40 = vadd.f32 %v956_v41, %v3374_v42 }
 0x2e9   :  { %v1742_v43 = vmul.f32 -1.442695, %v961_v33 }
 0x2ea   :  { %v1822_v22 = vpop.eup %1821 }
 0x2eb   :  { %v1824_v20 = vpop.eup %1823  ;;  %v972_v39 = vadd.f32 1.0, %v1822_v22  ;;  %1825 = vpow2.f32 %v1742_v43 }
 0x2ec   :  { %v973_v32 = vadd.f32 1.0, %v1824_v20 }
 0x2ed   :  { %1827 = vrcp.f32 %v972_v39  ;;  %v986_v33 = vand.u32 2147483648, %v972_v39  ;;  %v984_v43 = vand.u32 2147483647, %v972_v39  ;;  %vm980_vm7 = vweird.f32 %v972_v39 }
 0x2ee   :  { %1829 = vrcp.f32 %v973_v32  ;;  %v1001_v28 = vand.u32 2147483648, %v973_v32  ;;  %v999_v45 = vand.u32 2147483647, %v973_v32  ;;  %vm995_vm8 = vweird.f32 %v973_v32 }
 0x2ef   :  { %v987_v42 = vor.u32 1.1754944e-38, %v986_v33  ;;  %vm985_vm11 = vcmp.eq.f32.partialorder %v984_v43, 8.507059e+37 }
 0x2f0   :  { %vm1000_vm12 = vcmp.eq.f32.partialorder %v999_v45, 8.507059e+37 }
 0x2f1   :  { %v1826_v37 = vpop.eup %1825 }
 0x2f2   :  { %v974_v38 = vadd.f32 1.0, %v1826_v37 }
 0x2f3   :  { %v1828_v30 = vpop.eup %1827 }
 0x2f4   :  { %v1830_v35 = vpop.eup %1829  ;;  %v976_v34 = vmul.f32 %v1828_v30, %v972_v39  ;;  %1831 = vrcp.f32 %v974_v38  ;;  %vm981_vm5 = vweird.f32 %v1828_v30  ;;  %v1016_v33 = vand.u32 2147483648, %v974_v38 }
 0x2f5   :  { %v991_v25 = vmul.f32 %v1830_v35, %v973_v32  ;;  %1833 = vtanh.f32 %v962_v40  ;;  %vm996_vm6 = vweird.f32 %v1830_v35  ;;  %vm982_vm9 = vmor %vm980_vm7, %vm981_vm5  ;;  %vm1010_vm14 = vweird.f32 %v974_v38 }
 0x2f6   :  { %v977_v23 = vsub.f32 1.0, %v976_v34  ;;  %vm997_vm10 = vmor %vm995_vm8, %vm996_vm6  ;;  %v1002_v34 = vor.u32 1.1754944e-38, %v1001_v28  ;;  %v1017_v43 = vor.u32 1.1754944e-38, %v1016_v33  ;;  %v3393_v33 = vld [vmem:[#allocation38_spill] sm:$0xff] }
 0x2f7   :  { %v992_v29 = vsub.f32 1.0, %v991_v25 }
 0x2f8   :  { %v978_v22 = vmul.f32 %v1828_v30, %v977_v23 }
 0x2f9   :  { %v993_v20 = vmul.f32 %v1830_v35, %v992_v29 }
 0x2fa   :  { %v1832_v26 = vpop.eup %1831  ;;  %v979_v37 = vadd.f32 %v1828_v30, %v978_v22 }
 0x2fb   :  { %v1006_v41 = vmul.f32 %v1832_v26, %v974_v38  ;;  %v994_v24 = vadd.f32 %v1830_v35, %v993_v20  ;;  %v1834_v40 = vpop.eup %1833  ;;  %vm1011_vm13 = vweird.f32 %v1832_v26  ;;  %v3382_v20 = vld [vmem:[#allocation25_spill] sm:$0xff] }
 0x2fc   :  { %v983_v25 = vsel %vm982_vm9, %v1828_v30, %v979_v37  ;;  %v1014_v30 = vand.u32 2147483647, %v974_v38  ;;  %vm1012_vm15 = vmor %vm1010_vm14, %vm1011_vm13  ;;  %v3380_v38 = vld [vmem:[#allocation28_spill] sm:$0xff]  ;;  %v3383_v37 = vld [vmem:[#allocation30_spill] sm:$0xff] }
 0x2fd   :  { %v1007_v21 = vsub.f32 1.0, %v1006_v41  ;;  %v988_v23 = vsel %vm985_vm11, %v987_v42, %v983_v25  ;;  %v998_v19 = vsel %vm997_vm10, %v1830_v35, %v994_v24  ;;  %v3381_v35 = vld [vmem:[#allocation23_spill] sm:$0xff]  ;;  %v3384_v41 = vld [vmem:[#allocation33_spill] sm:$0xff]  ;;  %v3385_v42 = vld [vmem:[#allocation32_spill] sm:$0xff] }
 0x2fe   :  { %v1003_v29 = vsel %vm1000_vm12, %v1002_v34, %v998_v19  ;;  %v1022_v17 = vmul.f32 %v1834_v40, %v988_v23  ;;  %vm1015_vm0 = vcmp.eq.f32.partialorder %v1014_v30, 8.507059e+37  ;;  %v3386_v34 = vld [vmem:[#allocation24_spill] sm:$0xff]  ;;  %v3387_v25 = vld [vmem:[#allocation37_spill] sm:$0xff] }
 0x2ff   :  { %v1021_v27 = vmul.f32 %v1003_v29, %v2874_v36  ;;  %v1008_v22 = vmul.f32 %v1832_v26, %v1007_v21  ;;  %v3375_v36 = vld [vmem:[#allocation21_spill] sm:$0xff]  ;;  %v3378_v21 = vld [vmem:[#allocation20_spill] sm:$0xff]  ;;  %v3390_v29 = vld [vmem:[#allocation34_spill] sm:$0xff] }
 0x300   :  { %v3388_v40 = vld [vmem:[#allocation40_spill] sm:$0xff]  ;;  %v3389_v23 = vld [vmem:[#allocation29_spill] sm:$0xff] }
 0x301   :  { %v2968_v39 = vadd.f32 %v1022_v17, %v1021_v27  ;;  %v1009_v32 = vadd.f32 %v1832_v26, %v1008_v22  ;;  %v3376_v27 = vld [vmem:[#allocation22_spill] sm:$0xff]  ;;  %v3377_v17 = vld [vmem:[#allocation19_spill] sm:$0xff]  ;;  %v3394_v30 = vld [vmem:[#allocation41_spill] sm:$0xff] }
 0x302   :  { %v3391_v22 = vld [vmem:[#allocation31_spill] sm:$0xff] }
 0x303   :  { %1835 = vtanh.f32 %v2968_v39  ;;  %v1013_v28 = vsel %vm1012_vm15, %v1832_v26, %v1009_v32  ;;  %v3379_v26 = vld [vmem:[#allocation26_spill] sm:$0xff]  ;;  %v3392_v32 = vld [vmem:[#allocation36_spill] sm:$0xff] }
 0x304   :  { %v1018_v45 = vsel %vm1015_vm0, %v1017_v43, %v1013_v28  ;;  %v3395_v28 = vld [vmem:[#allocation42_spill] sm:$0xff]  ;;  %v3396_v43 = vld [vmem:[#allocation35_spill] sm:$0xff] }
 0x309   :  { %v1836_v24 = vpop.eup %1835 }
 0x30a   :  { %v1025_v19 = vmul.f32 %v1836_v24, %v1018_v45  ;;  %v3397_v24 = vld [vmem:[#allocation27_spill] sm:$0xff] }
 0x30b   :  { %v3398_v45 = vld [vmem:[#allocation39_spill] sm:$0xff] }
 0x30c   :  { %1047 = vmatmul.f32.vlgmr.msrb.gmra.mxu0 %v1025_v19  ;;  %1067 = vmatmul.f32.vlgmr.msra.gmra.mxu1 %v1025_v19 }
 0x30d   :  { %1087 = vmatmul.f32.vlgmr.msra.gmra.mxu2 %v1025_v19  ;;  %1107 = vmatmul.f32.vlgmr.msra.gmra.mxu3 %v1025_v19  ;;  %v3399_v19 = vld [vmem:[#allocation43_spill] sm:$0xff] }
 0x30e   :  { %1335 = vmatpush.msrb.mxu0 %v2699_v56  ;;  %1355 = vmatpush.msra.mxu1 %v2702_v46 }
 0x30f   :  { %1375 = vmatpush.msra.mxu2 %v2705_v47  ;;  %1395 = vmatpush.msra.mxu3 %v2708_v48 }
 0x310   :  { %1336 = vmatpush.msrb.mxu0 %v2711_v49  ;;  %1356 = vmatpush.msra.mxu1 %v2714_v50 }
 0x311   :  { %1376 = vmatpush.msra.mxu2 %v2717_v51  ;;  %1396 = vmatpush.msra.mxu3 %v2720_v52 }
 0x312   :  { %1337 = vmatpush.msrb.mxu0 %v2723_v53  ;;  %1357 = vmatpush.msra.mxu1 %v2726_v55 }
 0x313   :  { %1377 = vmatpush.msra.mxu2 %v2729_v2  ;;  %1397 = vmatpush.msra.mxu3 %v2732_v6 }
 0x314   :  { %1338 = vmatpush.msrb.mxu0 %v2735_v4  ;;  %1358 = vmatpush.msra.mxu1 %v2738_v3 }
 0x315   :  { %1378 = vmatpush.msra.mxu2 %v2741_v44  ;;  %1398 = vmatpush.msra.mxu3 %v2744_v58 }
 0x316   :  { %1339 = vmatpush.msrb.mxu0 %v2747_v54  ;;  %1359 = vmatpush.msra.mxu1 %v2750_v5 }
 0x317   :  { %1379 = vmatpush.msra.mxu2 %v2753_v7  ;;  %1399 = vmatpush.msra.mxu3 %v2756_v0 }
 0x318   :  { %1340 = vmatpush.msrb.mxu0 %v2759_v10  ;;  %1360 = vmatpush.msra.mxu1 %v2762_v60 }
 0x319   :  { %1380 = vmatpush.msra.mxu2 %v2765_v1  ;;  %1400 = vmatpush.msra.mxu3 %v2768_v62 }
 0x31a   :  { %1341 = vmatpush.msrb.mxu0 %v2771_v18  ;;  %1361 = vmatpush.msra.mxu1 %v2774_v11 }
 0x31b   :  { %1381 = vmatpush.msra.mxu2 %v2777_v61  ;;  %1401 = vmatpush.msra.mxu3 %v2780_v31 }
 0x31c   :  { %1342 = vmatpush.msrb.mxu0 %v2783_v12  ;;  %1362 = vmatpush.msra.mxu1 %v2786_v8 }
 0x31d   :  { %1382 = vmatpush.msra.mxu2 %v2789_v57  ;;  %1402 = vmatpush.msra.mxu3 %v2792_v59 }
 0x31e   :  { %1343 = vmatpush.msrb.mxu0 %v2795_v63  ;;  %1363 = vmatpush.msra.mxu1 %v2798_v9 }
 0x31f   :  { %1383 = vmatpush.msra.mxu2 %v2801_v13  ;;  %1403 = vmatpush.msra.mxu3 %v2804_v14 }
 0x320   :  { %1344 = vmatpush.msrb.mxu0 %v2807_v15  ;;  %1364 = vmatpush.msra.mxu1 %v2810_v16 }
 0x321   :  { %1384 = vmatpush.msra.mxu2 %v3375_v36  ;;  %1404 = vmatpush.msra.mxu3 %v3376_v27 }
 0x322   :  { %1345 = vmatpush.msrb.mxu0 %v3377_v17  ;;  %1365 = vmatpush.msra.mxu1 %v3378_v21 }
 0x323   :  { %1385 = vmatpush.msra.mxu2 %v3379_v26  ;;  %1405 = vmatpush.msra.mxu3 %v3380_v38 }
 0x324   :  { %1346 = vmatpush.msrb.mxu0 %v3381_v35  ;;  %1366 = vmatpush.msra.mxu1 %v3382_v20 }
 0x325   :  { %1386 = vmatpush.msra.mxu2 %v3383_v37  ;;  %1406 = vmatpush.msra.mxu3 %v3384_v41 }
 0x326   :  { %1347 = vmatpush.msrb.mxu0 %v3385_v42  ;;  %1367 = vmatpush.msra.mxu1 %v3386_v34 }
 0x327   :  { %1387 = vmatpush.msra.mxu2 %v3387_v25  ;;  %1407 = vmatpush.msra.mxu3 %v3388_v40  ;;  %v3401_v40 = vld [vmem:[#allocation58_spill] sm:$0xff]  ;;  %v3402_v25 = vld [vmem:[#allocation61_spill] sm:$0xff] }
 0x328   :  { %1348 = vmatpush.msrb.mxu0 %v3389_v23  ;;  %1368 = vmatpush.msra.mxu1 %v3390_v29  ;;  %v3400_v23 = vld [vmem:[#allocation44_spill] sm:$0xff] }
 0x329   :  { %1388 = vmatpush.msra.mxu2 %v3391_v22  ;;  %1408 = vmatpush.msra.mxu3 %v3392_v32 }
 0x32a   :  { %1349 = vmatpush.msrb.mxu0 %v3393_v33  ;;  %1369 = vmatpush.msra.mxu1 %v3394_v30 }
 0x32b   :  { %1389 = vmatpush.msra.mxu2 %v3395_v28  ;;  %1409 = vmatpush.msra.mxu3 %v3396_v43  ;;  %v3403_v43 = vld [vmem:[#allocation62_spill] sm:$0xff] }
 0x32c   :  { %1350 = vmatpush.msrb.mxu0 %v3397_v24  ;;  %1370 = vmatpush.msra.mxu1 %v3398_v45 }
 0x32d   :  { %1390 = vmatpush.msra.mxu2 %v3399_v19  ;;  %1410 = vmatpush.msra.mxu3 %v3400_v23 }
 0x389   :  { %v1048_v29 = vpop.f32.mrf.mxu0  ;;  %v1068_v22 = vpop.f32.mrf.mxu1 }
 0x38a   :  { %v1111_v32 = vadd.f32 %v1048_v29, %v3401_v40  ;;  %v1112_v33 = vadd.f32 %v1068_v22, %v3402_v25  ;;  %v3404_v25 = vld [vmem:[#allocation63_spill] sm:$0xff] }
 0x38c   :  { %v1743_v34 = vmul.f32 -1.442695, %v1111_v32  ;;  %v1744_v30 = vmul.f32 -1.442695, %v1112_v33 }
 0x38e   :  { %1837 = vpow2.f32 %v1743_v34 }
 0x38f   :  { %1839 = vpow2.f32 %v1744_v30 }
 0x390   :  { %v1088_v28 = vpop.f32.mrf.mxu2  ;;  %v1108_v23 = vpop.f32.mrf.mxu3 }
 0x391   :  { %v1113_v42 = vadd.f32 %v1088_v28, %v3403_v43  ;;  %v1114_v22 = vadd.f32 %v1108_v23, %v3404_v25 }
 0x393   :  { %v1745_v24 = vmul.f32 -1.442695, %v1113_v42 }
 0x394   :  { %v1838_v41 = vpop.eup %1837 }
 0x395   :  { %v1840_v45 = vpop.eup %1839  ;;  %v1124_v37 = vadd.f32 1.0, %v1838_v41  ;;  %1841 = vpow2.f32 %v1745_v24 }
 0x396   :  { %v1125_v19 = vadd.f32 1.0, %v1840_v45 }
 0x397   :  { %1843 = vrcp.f32 %v1124_v37  ;;  %v1138_v42 = vand.u32 2147483648, %v1124_v37  ;;  %v1136_v24 = vand.u32 2147483647, %v1124_v37  ;;  %vm1132_vm3 = vweird.f32 %v1124_v37 }
 0x398   :  { %1845 = vrcp.f32 %v1125_v19  ;;  %v1153_v43 = vand.u32 2147483648, %v1125_v19  ;;  %v1151_v35 = vand.u32 2147483647, %v1125_v19  ;;  %vm1147_vm4 = vweird.f32 %v1125_v19 }
 0x399   :  { %v1139_v25 = vor.u32 1.1754944e-38, %v1138_v42  ;;  %vm1137_vm7 = vcmp.eq.f32.partialorder %v1136_v24, 8.507059e+37 }
 0x39a   :  { %vm1152_vm8 = vcmp.eq.f32.partialorder %v1151_v35, 8.507059e+37 }
 0x39b   :  { %v1842_v20 = vpop.eup %1841 }
 0x39c   :  { %v1126_v40 = vadd.f32 1.0, %v1842_v20 }
 0x39d   :  { %v1844_v29 = vpop.eup %1843 }
 0x39e   :  { %v1846_v32 = vpop.eup %1845  ;;  %v1128_v34 = vmul.f32 %v1844_v29, %v1124_v37  ;;  %1847 = vrcp.f32 %v1126_v40  ;;  %vm1133_vm1 = vweird.f32 %v1844_v29  ;;  %v1168_v42 = vand.u32 2147483648, %v1126_v40 }
 0x39f   :  { %v1143_v33 = vmul.f32 %v1846_v32, %v1125_v19  ;;  %1849 = vtanh.f32 %v1114_v22  ;;  %vm1148_vm2 = vweird.f32 %v1846_v32  ;;  %vm1134_vm5 = vmor %vm1132_vm3, %vm1133_vm1  ;;  %vm1162_vm10 = vweird.f32 %v1126_v40 }
 0x3a0   :  { %v1129_v30 = vsub.f32 1.0, %v1128_v34  ;;  %vm1149_vm6 = vmor %vm1147_vm4, %vm1148_vm2  ;;  %v1154_v34 = vor.u32 1.1754944e-38, %v1153_v43  ;;  %v1169_v24 = vor.u32 1.1754944e-38, %v1168_v42 }
 0x3a1   :  { %v1144_v28 = vsub.f32 1.0, %v1143_v33 }
 0x3a2   :  { %v1130_v41 = vmul.f32 %v1844_v29, %v1129_v30 }
 0x3a3   :  { %v1145_v45 = vmul.f32 %v1846_v32, %v1144_v28 }
 0x3a4   :  { %v1848_v38 = vpop.eup %1847  ;;  %v1131_v20 = vadd.f32 %v1844_v29, %v1130_v41 }
 0x3a5   :  { %v1158_v23 = vmul.f32 %v1848_v38, %v1126_v40  ;;  %v1146_v26 = vadd.f32 %v1846_v32, %v1145_v45  ;;  %v1850_v22 = vpop.eup %1849  ;;  %vm1163_vm9 = vweird.f32 %v1848_v38 }
 0x3a6   :  { %v1135_v33 = vsel %vm1134_vm5, %v1844_v29, %v1131_v20  ;;  %v1166_v29 = vand.u32 2147483647, %v1126_v40  ;;  %vm1164_vm11 = vmor %vm1162_vm10, %vm1163_vm9  ;;  %v3434_v20 = vld [vmem:[#allocation66_spill] sm:$0xff] }
 0x3a7   :  { %v1159_v21 = vsub.f32 1.0, %v1158_v23  ;;  %v1140_v30 = vsel %vm1137_vm7, %v1139_v25, %v1135_v33  ;;  %v1150_v17 = vsel %vm1149_vm6, %v1846_v32, %v1146_v26 }
 0x3a8   :  { %v1155_v28 = vsel %vm1152_vm8, %v1154_v34, %v1150_v17  ;;  %v1174_v27 = vmul.f32 %v1850_v22, %v1140_v30  ;;  %vm1167_vm12 = vcmp.eq.f32.partialorder %v1166_v29, 8.507059e+37 }
 0x3a9   :  { %v1173_v36 = vmul.f32 %v1155_v28, %v2968_v39  ;;  %v1160_v41 = vmul.f32 %v1848_v38, %v1159_v21 }
 0x3ab   :  { %v3040_v37 = vadd.f32 %v1174_v27, %v1173_v36  ;;  %v1161_v19 = vadd.f32 %v1848_v38, %v1160_v41 }
 0x3ad   :  { %1851 = vtanh.f32 %v3040_v37  ;;  %v1165_v43 = vsel %vm1164_vm11, %v1848_v38, %v1161_v19 }
 0x3ae   :  { %v1170_v35 = vsel %vm1167_vm12, %v1169_v24, %v1165_v43 }
 0x3b3   :  { %v1852_v26 = vpop.eup %1851 }
 0x3b4   :  { %v1177_v17 = vmul.f32 %v1852_v26, %v1170_v35 }
 0x3b6   :  { %1199 = vmatmul.f32.vlgmr.msra.gmra.mxu0 %v1177_v17  ;;  %1219 = vmatmul.f32.vlgmr.msrb.gmra.mxu1 %v1177_v17 }
 0x3b7   :  { %1239 = vmatmul.f32.vlgmr.msrb.gmra.mxu2 %v1177_v17  ;;  %1259 = vmatmul.f32.vlgmr.msrb.gmra.mxu3 %v1177_v17 }
 0x3b8   :  { %1487 = vmatpush.msra.mxu0 %v2699_v56  ;;  %1507 = vmatpush.msrb.mxu1 %v2702_v46  ;;  %v3405_v56 = vld [vmem:[#allocation21_spill] sm:$0xff]  ;;  %v3406_v46 = vld [vmem:[#allocation22_spill] sm:$0xff] }
 0x3b9   :  { %1527 = vmatpush.msrb.mxu2 %v2705_v47  ;;  %1547 = vmatpush.msrb.mxu3 %v2708_v48  ;;  %v3407_v47 = vld [vmem:[#allocation19_spill] sm:$0xff]  ;;  %v3408_v48 = vld [vmem:[#allocation20_spill] sm:$0xff] }
 0x3ba   :  { %1488 = vmatpush.msra.mxu0 %v2711_v49  ;;  %1508 = vmatpush.msrb.mxu1 %v2714_v50  ;;  %v3409_v49 = vld [vmem:[#allocation26_spill] sm:$0xff]  ;;  %v3410_v50 = vld [vmem:[#allocation28_spill] sm:$0xff] }
 0x3bb   :  { %1528 = vmatpush.msrb.mxu2 %v2717_v51  ;;  %1548 = vmatpush.msrb.mxu3 %v2720_v52  ;;  %v3411_v51 = vld [vmem:[#allocation23_spill] sm:$0xff]  ;;  %v3412_v52 = vld [vmem:[#allocation25_spill] sm:$0xff] }
 0x3bc   :  { %1489 = vmatpush.msra.mxu0 %v2723_v53  ;;  %1509 = vmatpush.msrb.mxu1 %v2726_v55  ;;  %v3413_v53 = vld [vmem:[#allocation30_spill] sm:$0xff]  ;;  %v3414_v55 = vld [vmem:[#allocation33_spill] sm:$0xff] }
 0x3bd   :  { %1529 = vmatpush.msrb.mxu2 %v2729_v2  ;;  %1549 = vmatpush.msrb.mxu3 %v2732_v6  ;;  %v3415_v2 = vld [vmem:[#allocation32_spill] sm:$0xff] }
 0x3be   :  { %1490 = vmatpush.msra.mxu0 %v2735_v4  ;;  %1510 = vmatpush.msrb.mxu1 %v2738_v3  ;;  %v3416_v6 = vld [vmem:[#allocation24_spill] sm:$0xff]  ;;  %v3417_v4 = vld [vmem:[#allocation37_spill] sm:$0xff] }
 0x3bf   :  { %1530 = vmatpush.msrb.mxu2 %v2741_v44  ;;  %1550 = vmatpush.msrb.mxu3 %v2744_v58  ;;  %v3418_v3 = vld [vmem:[#allocation40_spill] sm:$0xff]  ;;  %v3419_v44 = vld [vmem:[#allocation29_spill] sm:$0xff]  ;;  %v3420_v58 = vld [vmem:[#allocation34_spill] sm:$0xff] }
 0x3c0   :  { %1491 = vmatpush.msra.mxu0 %v2747_v54  ;;  %1511 = vmatpush.msrb.mxu1 %v2750_v5  ;;  %v3421_v54 = vld [vmem:[#allocation31_spill] sm:$0xff]  ;;  %v3422_v5 = vld [vmem:[#allocation36_spill] sm:$0xff] }
 0x3c1   :  { %1531 = vmatpush.msrb.mxu2 %v2753_v7  ;;  %1551 = vmatpush.msrb.mxu3 %v2756_v0  ;;  %v3423_v7 = vld [vmem:[#allocation38_spill] sm:$0xff]  ;;  %v3424_v0 = vld [vmem:[#allocation41_spill] sm:$0xff] }
 0x3c2   :  { %1492 = vmatpush.msra.mxu0 %v2759_v10  ;;  %1512 = vmatpush.msrb.mxu1 %v2762_v60  ;;  %v3425_v10 = vld [vmem:[#allocation42_spill] sm:$0xff]  ;;  %v3426_v60 = vld [vmem:[#allocation35_spill] sm:$0xff] }
 0x3c3   :  { %1532 = vmatpush.msrb.mxu2 %v2765_v1  ;;  %1552 = vmatpush.msrb.mxu3 %v2768_v62  ;;  %v3427_v1 = vld [vmem:[#allocation27_spill] sm:$0xff] }
 0x3c4   :  { %1493 = vmatpush.msra.mxu0 %v2771_v18  ;;  %1513 = vmatpush.msrb.mxu1 %v2774_v11  ;;  %v3428_v62 = vld [vmem:[#allocation39_spill] sm:$0xff]  ;;  %v3430_v11 = vld [vmem:[#allocation44_spill] sm:$0xff] }
 0x3c5   :  { %1533 = vmatpush.msrb.mxu2 %v2777_v61  ;;  %1553 = vmatpush.msrb.mxu3 %v2780_v31  ;;  %v3429_v18 = vld [vmem:[#allocation43_spill] sm:$0xff] }
 0x3c6   :  { %1494 = vmatpush.msra.mxu0 %v2783_v12  ;;  %1514 = vmatpush.msrb.mxu1 %v2786_v8  ;;  %v3431_v12 = vld [vmem:[#allocation45_spill] sm:$0xff] }
 0x3c7   :  { %1534 = vmatpush.msrb.mxu2 %v2789_v57  ;;  %1554 = vmatpush.msrb.mxu3 %v2792_v59  ;;  %v3432_v57 = vld [vmem:[#allocation64_spill] sm:$0xff] }
 0x3c8   :  { %1495 = vmatpush.msra.mxu0 %v2795_v63  ;;  %1515 = vmatpush.msrb.mxu1 %v2798_v9 }
 0x3c9   :  { %1535 = vmatpush.msrb.mxu2 %v2801_v13  ;;  %1555 = vmatpush.msrb.mxu3 %v2804_v14  ;;  %v3433_v14 = vld [vmem:[#allocation65_spill] sm:$0xff] }
 0x3ca   :  { %1496 = vmatpush.msra.mxu0 %v2807_v15  ;;  %1516 = vmatpush.msrb.mxu1 %v2810_v16 }
 0x3cb   :  { %1536 = vmatpush.msrb.mxu2 %v3405_v56  ;;  %1556 = vmatpush.msrb.mxu3 %v3406_v46 }
 0x3cc   :  { %1497 = vmatpush.msra.mxu0 %v3407_v47  ;;  %1517 = vmatpush.msrb.mxu1 %v3408_v48 }
 0x3cd   :  { %1537 = vmatpush.msrb.mxu2 %v3409_v49  ;;  %1557 = vmatpush.msrb.mxu3 %v3410_v50 }
 0x3ce   :  { %1498 = vmatpush.msra.mxu0 %v3411_v51  ;;  %1518 = vmatpush.msrb.mxu1 %v3412_v52 }
 0x3cf   :  { %1538 = vmatpush.msrb.mxu2 %v3413_v53  ;;  %1558 = vmatpush.msrb.mxu3 %v3414_v55 }
 0x3d0   :  { %1499 = vmatpush.msra.mxu0 %v3415_v2  ;;  %1519 = vmatpush.msrb.mxu1 %v3416_v6 }
 0x3d1   :  { %1539 = vmatpush.msrb.mxu2 %v3417_v4  ;;  %1559 = vmatpush.msrb.mxu3 %v3418_v3 }
 0x3d2   :  { %1500 = vmatpush.msra.mxu0 %v3419_v44  ;;  %1520 = vmatpush.msrb.mxu1 %v3420_v58 }
 0x3d3   :  { %1540 = vmatpush.msrb.mxu2 %v3421_v54  ;;  %1560 = vmatpush.msrb.mxu3 %v3422_v5 }
 0x3d4   :  { %1501 = vmatpush.msra.mxu0 %v3423_v7  ;;  %1521 = vmatpush.msrb.mxu1 %v3424_v0 }
 0x3d5   :  { %1541 = vmatpush.msrb.mxu2 %v3425_v10  ;;  %1561 = vmatpush.msrb.mxu3 %v3426_v60  ;;  %v3435_v60 = vld [vmem:[#allocation46_spill] sm:$0xff] }
 0x3d6   :  { %1502 = vmatpush.msra.mxu0 %v3427_v1  ;;  %1522 = vmatpush.msrb.mxu1 %v3428_v62  ;;  %v3436_v62 = vld [vmem:[#allocation67_spill] sm:$0xff] }
 0x3d7   :  { %1542 = vmatpush.msrb.mxu2 %v3429_v18  ;;  %1562 = vmatpush.msrb.mxu3 %v3430_v11 }
 0x433   :  { %v1200_v61 = vpop.f32.mrf.mxu0  ;;  %v1220_v31 = vpop.f32.mrf.mxu1 }
 0x434   :  { %v1263_v8 = vadd.f32 %v1200_v61, %v3431_v12  ;;  %v1264_v59 = vadd.f32 %v1220_v31, %v3432_v57  ;;  %v3437_v12 = vld [vmem:[#allocation68_spill] sm:$0xff] }
 0x436   :  { %v1746_v63 = vmul.f32 -1.442695, %v1263_v8  ;;  %v1747_v9 = vmul.f32 -1.442695, %v1264_v59 }
 0x438   :  { %1853 = vpow2.f32 %v1746_v63 }
 0x439   :  { %1855 = vpow2.f32 %v1747_v9 }
 0x43a   :  { %v1240_v13 = vpop.f32.mrf.mxu2  ;;  %v1260_v38 = vpop.f32.mrf.mxu3 }
 0x43b   :  { %v1265_v15 = vadd.f32 %v1240_v13, %v3433_v14  ;;  %v1266_v23 = vadd.f32 %v1260_v38, %v3434_v20 }
 0x43d   :  { %v1748_v16 = vmul.f32 -1.442695, %v1265_v15 }
 0x43e   :  { %v1854_v39 = vpop.eup %1853 }
 0x43f   :  { %v1856_v36 = vpop.eup %1855  ;;  %v1276_v27 = vadd.f32 1.0, %v1854_v39  ;;  %1857 = vpow2.f32 %v1748_v16 }
 0x440   :  { %v1277_v21 = vadd.f32 1.0, %v1856_v36  ;;  %v3438_v36 = vld [vmem:[#allocation69_spill] sm:$0xff] }
 0x441   :  { %1859 = vrcp.f32 %v1276_v27  ;;  %v1290_v28 = vand.u32 2147483648, %v1276_v27  ;;  %v1288_v42 = vand.u32 2147483647, %v1276_v27  ;;  %vm1284_vm15 = vweird.f32 %v1276_v27 }
 0x442   :  { %1861 = vrcp.f32 %v1277_v21  ;;  %v1305_v41 = vand.u32 2147483648, %v1277_v21  ;;  %v1303_v43 = vand.u32 2147483647, %v1277_v21  ;;  %vm1299_vm0 = vweird.f32 %v1277_v21 }
 0x443   :  { %v1291_v17 = vor.u32 1.1754944e-38, %v1290_v28  ;;  %vm1289_vm3 = vcmp.eq.f32.partialorder %v1288_v42, 8.507059e+37 }
 0x444   :  { %v1306_v46 = vor.u32 1.1754944e-38, %v1305_v41  ;;  %vm1304_vm4 = vcmp.eq.f32.partialorder %v1303_v43, 8.507059e+37 }
 0x445   :  { %v1858_v40 = vpop.eup %1857 }
 0x446   :  { %v1278_v32 = vadd.f32 1.0, %v1858_v40 }
 0x447   :  { %v1860_v45 = vpop.eup %1859 }
 0x448   :  { %v1862_v25 = vpop.eup %1861  ;;  %v1280_v34 = vmul.f32 %v1860_v45, %v1276_v27  ;;  %1863 = vrcp.f32 %v1278_v32  ;;  %vm1285_vm13 = vweird.f32 %v1860_v45  ;;  %v1320_v3 = vand.u32 2147483648, %v1278_v32 }
 0x449   :  { %v1295_v33 = vmul.f32 %v1862_v25, %v1277_v21  ;;  %1865 = vtanh.f32 %v1266_v23  ;;  %vm1300_vm14 = vweird.f32 %v1862_v25  ;;  %vm1286_vm1 = vmor %vm1284_vm15, %vm1285_vm13  ;;  %vm1314_vm6 = vweird.f32 %v1278_v32 }
 0x44a   :  { %v1281_v22 = vsub.f32 1.0, %v1280_v34  ;;  %vm1301_vm2 = vmor %vm1299_vm0, %vm1300_vm14  ;;  %v1318_v44 = vand.u32 2147483647, %v1278_v32  ;;  %v1321_v54 = vor.u32 1.1754944e-38, %v1320_v3 }
 0x44b   :  { %v1296_v30 = vsub.f32 1.0, %v1295_v33 }
 0x44c   :  { %v1282_v19 = vmul.f32 %v1860_v45, %v1281_v22  ;;  %vm1319_vm8 = vcmp.eq.f32.partialorder %v1318_v44, 8.507059e+37  ;;  %v1653_v44 = vld [vmem:[#allocation13 + $0x70] sm:$0xff] }
 0x44d   :  { %v1297_v29 = vmul.f32 %v1862_v25, %v1296_v30 }
 0x44e   :  { %v1864_v24 = vpop.eup %1863  ;;  %v1283_v26 = vadd.f32 %v1860_v45, %v1282_v19 }
 0x44f   :  { %v1310_v35 = vmul.f32 %v1864_v24, %v1278_v32  ;;  %v1298_v56 = vadd.f32 %v1862_v25, %v1297_v29  ;;  %v1866_v48 = vpop.eup %1865  ;;  %vm1315_vm5 = vweird.f32 %v1864_v24 }
 0x450   :  { %v1287_v47 = vsel %vm1286_vm1, %v1860_v45, %v1283_v26  ;;  %vm1316_vm7 = vmor %vm1314_vm6, %vm1315_vm5 }
 0x451   :  { %v1311_v49 = vsub.f32 1.0, %v1310_v35  ;;  %v1292_v50 = vsel %vm1289_vm3, %v1291_v17, %v1287_v47  ;;  %v1302_v51 = vsel %vm1301_vm2, %v1862_v25, %v1298_v56 }
 0x452   :  { %v1307_v52 = vsel %vm1304_vm4, %v1306_v46, %v1302_v51  ;;  %v1326_v53 = vmul.f32 %v1866_v48, %v1292_v50 }
 0x453   :  { %v1325_v55 = vmul.f32 %v1307_v52, %v3040_v37  ;;  %v1312_v2 = vmul.f32 %v1864_v24, %v1311_v49 }
 0x455   :  { %v3112_v6 = vadd.f32 %v1326_v53, %v1325_v55  ;;  %v1313_v4 = vadd.f32 %v1864_v24, %v1312_v2 }
 0x457   :  { %1867 = vtanh.f32 %v3112_v6  ;;  %v1317_v58 = vsel %vm1316_vm7, %v1864_v24, %v1313_v4 }
 0x458   :  { %v1322_v7 = vsel %vm1319_vm8, %v1321_v54, %v1317_v58  ;;  %v1652_v58 = vld [vmem:[#allocation13 + $0x68] sm:$0xff]  ;;  %v1651_v54 = vld [vmem:[#allocation13 + $0x60] sm:$0xff] }
 0x45d   :  { %v1868_v5 = vpop.eup %1867 }
 0x45e   :  { %v1329_v0 = vmul.f32 %v1868_v5, %v1322_v7  ;;  %v1650_v5 = vld [vmem:[#allocation13 + $0x58] sm:$0xff]  ;;  %v1649_v7 = vld [vmem:[#allocation13 + $0x50] sm:$0xff] }
 0x460   :  { %1351 = vmatmul.f32.vlgmr.msrb.gmra.mxu0 %v1329_v0  ;;  %1371 = vmatmul.f32.vlgmr.msra.gmra.mxu1 %v1329_v0 }
 0x461   :  { %1391 = vmatmul.f32.vlgmr.msra.gmra.mxu2 %v1329_v0  ;;  %1411 = vmatmul.f32.vlgmr.msra.gmra.mxu3 %v1329_v0  ;;  %v1648_v0 = vld [vmem:[#allocation13 + $0x48] sm:$0xff] }
 0x4dd   :  { %v1352_v37 = vpop.f32.mrf.mxu0  ;;  %v1372_v10 = vpop.f32.mrf.mxu1 }
 0x4de   :  { %v1415_v1 = vadd.f32 %v1352_v37, %v3435_v60  ;;  %v1416_v18 = vadd.f32 %v1372_v10, %v3436_v62  ;;  %v1647_v37 = vld [vmem:[#allocation13 + $0x40] sm:$0xff]  ;;  %v1646_v10 = vld [vmem:[#allocation13 + $0x38] sm:$0xff]  ;;  %v1645_v60 = vld [vmem:[#allocation13 + $0x30] sm:$0xff] }
 0x4e0   :  { %v1749_v11 = vmul.f32 -1.442695, %v1415_v1  ;;  %v1750_v61 = vmul.f32 -1.442695, %v1416_v18  ;;  %v3439_v18 = vld [vmem:[#allocation47_spill] sm:$0xff] }
 0x4e2   :  { %1869 = vpow2.f32 %v1749_v11 }
 0x4e3   :  { %1871 = vpow2.f32 %v1750_v61  ;;  %v3440_v61 = vld [vmem:[#allocation70_spill] sm:$0xff] }
 0x4e4   :  { %v1392_v31 = vpop.f32.mrf.mxu2  ;;  %v1412_v14 = vpop.f32.mrf.mxu3 }
 0x4e5   :  { %v1417_v8 = vadd.f32 %v1392_v31, %v3437_v12  ;;  %v1418_v27 = vadd.f32 %v1412_v14, %v3438_v36  ;;  %v1644_v12 = vld [vmem:[#allocation13 + $0x28] sm:$0xff] }
 0x4e6   :  { %v1640_v14 = vld [vmem:[#allocation13 + $0x8] sm:$0xff] }
 0x4e7   :  { %v1751_v57 = vmul.f32 -1.442695, %v1417_v8 }
 0x4e8   :  { %v1870_v59 = vpop.eup %1869 }
 0x4e9   :  { %v1872_v63 = vpop.eup %1871  ;;  %v1428_v9 = vadd.f32 1.0, %v1870_v59  ;;  %1873 = vpow2.f32 %v1751_v57  ;;  %v1643_v59 = vld [vmem:[#allocation13 + $0x20] sm:$0xff] }
 0x4ea   :  { %v1429_v13 = vadd.f32 1.0, %v1872_v63  ;;  %v1642_v63 = vld [vmem:[#allocation13 + $0x18] sm:$0xff] }
 0x4eb   :  { %1875 = vrcp.f32 %v1428_v9  ;;  %v1442_v20 = vand.u32 2147483648, %v1428_v9  ;;  %v1440_v34 = vand.u32 2147483647, %v1428_v9  ;;  %vm1436_vm11 = vweird.f32 %v1428_v9 }
 0x4ec   :  { %1877 = vrcp.f32 %v1429_v13  ;;  %v1457_v23 = vand.u32 2147483648, %v1429_v13  ;;  %v1455_v22 = vand.u32 2147483647, %v1429_v13  ;;  %vm1451_vm12 = vweird.f32 %v1429_v13 }
 0x4ed   :  { %v1443_v19 = vor.u32 1.1754944e-38, %v1442_v20  ;;  %vm1441_vm15 = vcmp.eq.f32.partialorder %v1440_v34, 8.507059e+37 }
 0x4ee   :  { %v1458_v29 = vor.u32 1.1754944e-38, %v1457_v23  ;;  %vm1456_vm0 = vcmp.eq.f32.partialorder %v1455_v22, 8.507059e+37 }
 0x4ef   :  { %v1874_v15 = vpop.eup %1873 }
 0x4f0   :  { %v1430_v16 = vadd.f32 1.0, %v1874_v15  ;;  %v3441_v15 = vld [vmem:[#allocation71_spill] sm:$0xff] }
 0x4f1   :  { %v1876_v39 = vpop.eup %1875 }
 0x4f2   :  { %v1878_v21 = vpop.eup %1877  ;;  %v1432_v38 = vmul.f32 %v1876_v39, %v1428_v9  ;;  %1879 = vrcp.f32 %v1430_v16  ;;  %vm1437_vm9 = vweird.f32 %v1876_v39  ;;  %v1472_v51 = vand.u32 2147483648, %v1430_v16  ;;  %v1641_v9 = vld [vmem:[#allocation13 + $0x10] sm:$0xff] }
 0x4f3   :  { %v1447_v40 = vmul.f32 %v1878_v21, %v1429_v13  ;;  %1881 = vtanh.f32 %v1418_v27  ;;  %vm1452_vm10 = vweird.f32 %v1878_v21  ;;  %vm1438_vm13 = vmor %vm1436_vm11, %vm1437_vm9  ;;  %vm1466_vm2 = vweird.f32 %v1430_v16 }
 0x4f4   :  { %v1433_v32 = vsub.f32 1.0, %v1432_v38  ;;  %vm1453_vm14 = vmor %vm1451_vm12, %vm1452_vm10  ;;  %v1470_v52 = vand.u32 2147483647, %v1430_v16  ;;  %v1473_v55 = vor.u32 1.1754944e-38, %v1472_v51 }
 0x4f5   :  { %v1448_v45 = vsub.f32 1.0, %v1447_v40 }
 0x4f6   :  { %v1434_v25 = vmul.f32 %v1876_v39, %v1433_v32  ;;  %vm1471_vm4 = vcmp.eq.f32.partialorder %v1470_v52, 8.507059e+37 }
 0x4f7   :  { %v1449_v33 = vmul.f32 %v1878_v21, %v1448_v45 }
 0x4f8   :  { %v1880_v30 = vpop.eup %1879  ;;  %v1435_v28 = vadd.f32 %v1876_v39, %v1434_v25  ;;  %v3442_v25 = vld [vmem:[#allocation72_spill] sm:$0xff] }
 0x4f9   :  { %v1462_v41 = vmul.f32 %v1880_v30, %v1430_v16  ;;  %v1450_v42 = vadd.f32 %v1878_v21, %v1449_v33  ;;  %v1882_v24 = vpop.eup %1881  ;;  %vm1467_vm1 = vweird.f32 %v1880_v30 }
 0x4fa   :  { %v1439_v43 = vsel %vm1438_vm13, %v1876_v39, %v1435_v28  ;;  %vm1468_vm3 = vmor %vm1466_vm2, %vm1467_vm1  ;;  %v1639_v39 = vld [vmem:[#allocation13] sm:$0xff] }
 0x4fb   :  { %v1463_v26 = vsub.f32 1.0, %v1462_v41  ;;  %v1444_v35 = vsel %vm1441_vm15, %v1443_v19, %v1439_v43  ;;  %v1454_v17 = vsel %vm1453_vm14, %v1878_v21, %v1450_v42 }
 0x4fc   :  { %v1459_v56 = vsel %vm1456_vm0, %v1458_v29, %v1454_v17  ;;  %v1478_v46 = vmul.f32 %v1882_v24, %v1444_v35 }
 0x4fd   :  { %v1477_v47 = vmul.f32 %v1459_v56, %v3112_v6  ;;  %v1464_v48 = vmul.f32 %v1880_v30, %v1463_v26  ;;  %v1654_v6 = vld [vmem:[#allocation13 + $0x78] sm:$0xff] }
 0x4fe   :  { %1659 = vmatpush.msrb.mxu0 %v1654_v6 }
 0x4ff   :  { %v3120_v49 = vadd.f32 %v1478_v46, %v1477_v47  ;;  %v1465_v50 = vadd.f32 %v1880_v30, %v1464_v48 }
 0x500   :  { %1660 = vmatpush.msrb.mxu0 %v1653_v44 }
 0x501   :  { %1883 = vtanh.f32 %v3120_v49  ;;  %v1469_v53 = vsel %vm1468_vm3, %v1880_v30, %v1465_v50 }
 0x502   :  { %v1474_v4 = vsel %vm1471_vm4, %v1473_v55, %v1469_v53  ;;  %1661 = vmatpush.msrb.mxu0 %v1652_v58 }
 0x504   :  { %1662 = vmatpush.msrb.mxu0 %v1651_v54 }
 0x506   :  { %1663 = vmatpush.msrb.mxu0 %v1650_v5 }
 0x507   :  { %v1884_v2 = vpop.eup %1883 }
 0x508   :  { %v1481_v3 = vmul.f32 %v1884_v2, %v1474_v4  ;;  %1664 = vmatpush.msrb.mxu0 %v1649_v7 }
 0x50a   :  { %1503 = vmatmul.f32.vlgmr.msra.gmra.mxu0 %v1481_v3  ;;  %1523 = vmatmul.f32.vlgmr.msrb.gmra.mxu1 %v1481_v3 }
 0x50b   :  { %1543 = vmatmul.f32.vlgmr.msrb.gmra.mxu2 %v1481_v3  ;;  %1563 = vmatmul.f32.vlgmr.msrb.gmra.mxu3 %v1481_v3 }
 0x50c   :  { %1665 = vmatpush.msrb.mxu0 %v1648_v0 }
 0x50e   :  { %1666 = vmatpush.msrb.mxu0 %v1647_v37 }
 0x510   :  { %1667 = vmatpush.msrb.mxu0 %v1646_v10 }
 0x512   :  { %1668 = vmatpush.msrb.mxu0 %v1645_v60 }
 0x514   :  { %1669 = vmatpush.msrb.mxu0 %v1644_v12 }
 0x516   :  { %1670 = vmatpush.msrb.mxu0 %v1643_v59 }
 0x518   :  { %1671 = vmatpush.msrb.mxu0 %v1642_v63 }
 0x51a   :  { %1672 = vmatpush.msrb.mxu0 %v1641_v9 }
 0x51c   :  { %1673 = vmatpush.msrb.mxu0 %v1640_v14 }
 0x51e   :  { %1674 = vmatpush.msrb.mxu0 %v1639_v39 }
 0x587   :  { %v1504_v1 = vpop.f32.mrf.mxu0  ;;  %v1524_v62 = vpop.f32.mrf.mxu1 }
 0x588   :  { %v1567_v11 = vadd.f32 %v1504_v1, %v3439_v18  ;;  %v1568_v31 = vadd.f32 %v1524_v62, %v3440_v61 }
 0x58a   :  { %v1752_v8 = vmul.f32 -1.442695, %v1567_v11  ;;  %v1753_v57 = vmul.f32 -1.442695, %v1568_v31 }
 0x58c   :  { %1885 = vpow2.f32 %v1752_v8 }
 0x58d   :  { %1887 = vpow2.f32 %v1753_v57 }
 0x58e   :  { %v1544_v13 = vpop.f32.mrf.mxu2  ;;  %v1564_v32 = vpop.f32.mrf.mxu3 }
 0x58f   :  { %v1569_v16 = vadd.f32 %v1544_v13, %v3441_v15  ;;  %v1570_v34 = vadd.f32 %v1564_v32, %v3442_v25 }
 0x591   :  { %v1754_v36 = vmul.f32 -1.442695, %v1569_v16 }
 0x592   :  { %v1886_v27 = vpop.eup %1885 }
 0x593   :  { %v1888_v21 = vpop.eup %1887  ;;  %v1580_v38 = vadd.f32 1.0, %v1886_v27  ;;  %1889 = vpow2.f32 %v1754_v36 }
 0x594   :  { %v1581_v40 = vadd.f32 1.0, %v1888_v21 }
 0x595   :  { %1891 = vrcp.f32 %v1580_v38  ;;  %v1594_v19 = vand.u32 2147483648, %v1580_v38  ;;  %v1592_v43 = vand.u32 2147483647, %v1580_v38  ;;  %vm1588_vm7 = vweird.f32 %v1580_v38 }
 0x596   :  { %1893 = vrcp.f32 %v1581_v40  ;;  %v1609_v42 = vand.u32 2147483648, %v1581_v40  ;;  %v1607_v26 = vand.u32 2147483647, %v1581_v40  ;;  %vm1603_vm8 = vweird.f32 %v1581_v40 }
 0x597   :  { %v1595_v46 = vor.u32 1.1754944e-38, %v1594_v19  ;;  %vm1593_vm11 = vcmp.eq.f32.partialorder %v1592_v43, 8.507059e+37 }
 0x598   :  { %v1610_v48 = vor.u32 1.1754944e-38, %v1609_v42  ;;  %vm1608_vm12 = vcmp.eq.f32.partialorder %v1607_v26, 8.507059e+37 }
 0x599   :  { %v1890_v45 = vpop.eup %1889 }
 0x59a   :  { %v1582_v20 = vadd.f32 1.0, %v1890_v45 }
 0x59b   :  { %v1892_v23 = vpop.eup %1891 }
 0x59c   :  { %v1894_v33 = vpop.eup %1893  ;;  %v1584_v22 = vmul.f32 %v1892_v23, %v1580_v38  ;;  %1895 = vrcp.f32 %v1582_v20  ;;  %vm1589_vm5 = vweird.f32 %v1892_v23  ;;  %v1624_v54 = vand.u32 2147483648, %v1582_v20 }
 0x59d   :  { %v1599_v30 = vmul.f32 %v1894_v33, %v1581_v40  ;;  %1897 = vtanh.f32 %v1570_v34  ;;  %vm1604_vm6 = vweird.f32 %v1894_v33  ;;  %vm1590_vm9 = vmor %vm1588_vm7, %vm1589_vm5  ;;  %vm1618_vm14 = vweird.f32 %v1582_v20 }
 0x59e   :  { %v1585_v28 = vsub.f32 1.0, %v1584_v22  ;;  %vm1605_vm10 = vmor %vm1603_vm8, %vm1604_vm6  ;;  %v1622_v5 = vand.u32 2147483647, %v1582_v20  ;;  %v1625_v0 = vor.u32 1.1754944e-38, %v1624_v54 }
 0x59f   :  { %v1600_v41 = vsub.f32 1.0, %v1599_v30 }
 0x5a0   :  { %v1586_v29 = vmul.f32 %v1892_v23, %v1585_v28  ;;  %vm1623_vm0 = vcmp.eq.f32.partialorder %v1622_v5, 8.507059e+37 }
 0x5a1   :  { %v1601_v24 = vmul.f32 %v1894_v33, %v1600_v41 }
 0x5a2   :  { %v1896_v35 = vpop.eup %1895  ;;  %v1587_v17 = vadd.f32 %v1892_v23, %v1586_v29 }
 0x5a3   :  { %v1614_v56 = vmul.f32 %v1896_v35, %v1582_v20  ;;  %v1602_v47 = vadd.f32 %v1894_v33, %v1601_v24  ;;  %v1898_v51 = vpop.eup %1897  ;;  %vm1619_vm13 = vweird.f32 %v1896_v35 }
 0x5a4   :  { %v1591_v50 = vsel %vm1590_vm9, %v1892_v23, %v1587_v17  ;;  %vm1620_vm15 = vmor %vm1618_vm14, %vm1619_vm13 }
 0x5a5   :  { %v1615_v52 = vsub.f32 1.0, %v1614_v56  ;;  %v1596_v53 = vsel %vm1593_vm11, %v1595_v46, %v1591_v50  ;;  %v1606_v55 = vsel %vm1605_vm10, %v1894_v33, %v1602_v47 }
 0x5a6   :  { %v1611_v2 = vsel %vm1608_vm12, %v1610_v48, %v1606_v55  ;;  %v1630_v4 = vmul.f32 %v1898_v51, %v1596_v53 }
 0x5a7   :  { %v1629_v3 = vmul.f32 %v1611_v2, %v3120_v49  ;;  %v1616_v6 = vmul.f32 %v1896_v35, %v1615_v52  ;;  %v1772_v49 = vld [vmem:[%s3139_s5] ss:$0 sm:$0xff] }
 0x5a9   :  { %v1631_v44 = vadd.f32 %v1630_v4, %v1629_v3  ;;  %v1617_v58 = vadd.f32 %v1896_v35, %v1616_v6 }
 0x5ab   :  { %1899 = vtanh.f32 %v1631_v44  ;;  %v1621_v7 = vsel %vm1620_vm15, %v1896_v35, %v1617_v58 }
 0x5ac   :  { %v1626_v10 = vsel %vm1623_vm0, %v1625_v0, %v1621_v7 }
 0x5b1   :  { %v1900_v37 = vpop.eup %1899 }
 0x5b2   :  { %v1633_v60 = vmul.f32 %v1900_v37, %v1626_v10 }
 0x5b4   :  { %1675 = vmatmul.f32.vlgmr.msrb.gmra.mxu0 %v1633_v60 }
 0x631   :  { %v1676_v1 = vpop.f32.mrf.mxu0 }
 0x632   :  { %v1677_v62 = vadd.f32 %v1772_v49, %v1676_v1 }
 0x634   :  { %1679 = vst [vmem:[#allocation14] sm:$0xff] %v1677_v62 }
 0x635   :  { %1690 = dma.vmem_to_hbm [thread:$0]  %s1686_s24, 128, %s1688_s27, [#allocation7]  }
 0x636   :  { %2115 = dma.done.wait [#allocation7], 128  }
 0x637   :  { %2116 = vsyncadd [#allocation7], 4294967168 }
 0x638   :  { %1695 = vsyncpa [#allocation6], 1 }
 0x639   :  { %1696 = vsyncpa [#allocation9], 1 }
 0x63a   :  { %1697 = vsyncpa [#allocation12], 1 }
 0x63b   :  { %1698 = vsyncpa [#allocation7], 1 }

// kernel: tpu_custom_call.1
= control target key start
LH: loop header
LB: loop body
LE: loop exit
PB: predicated region body
PF: predicated region fallthrough
CT: control target
= control target key end

     0   :  { %11 = vsyncpa [#allocation6], 0  ;;  %s3134_s0 = inlined_call_operand.hbm [shape: f32[8,8,16], index: 0, kind: input, shape index: {}]   ;;  %s3135_s1 = inlined_call_operand.hbm [shape: f32[16,512], index: 1, kind: input, shape index: {}]   ;;  %s3136_s2 = inlined_call_operand.hbm [shape: f32[128,512], index: 2, kind: input, shape index: {}]   ;;  %s3137_s3 = inlined_call_operand.hbm [shape: f32[1,512], index: 3, kind: input, shape index: {}]   ;;  %s3138_s4 = inlined_call_operand.hbm [shape: f32[128,128], index: 4, kind: input, shape index: {}]   ;;  %s3139_s5 = inlined_call_operand.vmem [shape: f32[1,128], index: 5, kind: input, shape index: {}]   ;;  %s3140_s6 = inlined_call_operand.hbm [shape: f32[8,128], index: 6, kind: output, shape index: {}]  }
   0x1   :  { %12 = vsyncpa [#allocation9], 0 }
   0x2   :  { %13 = vsyncpa [#allocation12], 0  ;;  %s32_s23 = sshll.u32 %s3135_s1, 4  ;;  %s33_s23 = int_to_ptr.hbm [resolvable:$true] %s32_s23 }
   0x3   :  { %14 = vsyncpa [#allocation7], 0  ;;  %s2117_s24 = smov [#allocation8]   ;;  %s59_s28 = sshll.u32 %s3137_s3, 4  ;;  %s60_s28 = int_to_ptr.hbm [resolvable:$true] %s59_s28 }
   0x4   :  { %s34_s25 = sshll.u32 %s2117_s24, 4  ;;  %s2118_s29 = smov 512   ;;  %s35_s25 = int_to_ptr.vmem [resolvable:$true] %s34_s25 }
   0x5   :  { %s2119_s30 = smov 32   ;;  %s2120_s7 = smov [#allocation11]  }
   0x6   :  { %40 = dma.hbm_to_vmem [thread:$0]  %s33_s23, 1024, %s35_s25, [#allocation9], %s2118_s29, %s2118_s29, %s2119_s30  }
   0x7   :  { %s61_s8 = sshll.u32 %s2120_s7, 4  ;;  %s19_s11 = sshll.u32 %s3134_s0, 4  ;;  %s62_s8 = int_to_ptr.vmem [resolvable:$true] %s61_s8  ;;  %s20_s11 = int_to_ptr.hbm [resolvable:$true] %s19_s11 }
   0x8   :  { %64 = dma.hbm_to_vmem [thread:$0]  %s60_s28, 64, %s62_s8, [#allocation12]  }
   0x9   :  { %s2121_s1 = smov [#allocation5]   ;;  %s45_s3 = sshll.u32 %s3136_s2, 4  ;;  %s46_s3 = int_to_ptr.hbm [resolvable:$true] %s45_s3 }
   0xa   :  { %s21_s12 = sshll.u32 %s2121_s1, 4  ;;  %s2122_s15 = smov 128   ;;  %s22_s12 = int_to_ptr.vmem [resolvable:$true] %s21_s12 }
   0xb   :  { %s2123_s16 = smov 8   ;;  %s2124_s17 = smov [#allocation10]  }
   0xc   :  { %27 = dma.hbm_to_vmem [thread:$0]  %s20_s11, 1024, %s22_s12, [#allocation6], %s2122_s15, %s2122_s15, %s2123_s16  }
   0xd   :  { %s47_s18 = sshll.u32 %s2124_s17, 4  ;;  %s69_s0 = sshll.u32 %s3138_s4, 4  ;;  %s48_s18 = int_to_ptr.vmem [resolvable:$true] %s47_s18  ;;  %s70_s0 = int_to_ptr.hbm [resolvable:$true] %s69_s0 }
   0xe   :  { %53 = dma.hbm_to_vmem [thread:$0]  %s46_s3, 8192, %s48_s18, [#allocation9], %s2118_s29, %s2118_s29, %s2119_s30  }
   0xf   :  { %s2125_s21 = smov [#allocation13]  }
  0x10   :  { %s71_s22 = sshll.u32 %s2125_s21, 4  ;;  %s72_s22 = int_to_ptr.vmem [resolvable:$true] %s71_s22 }
  0x11   :  { %77 = dma.hbm_to_vmem [thread:$0]  %s70_s0, 2048, %s72_s22, [#allocation12], %s2122_s15, %s2122_s15, %s2123_s16  }
  0x12   :  { %2109 = dma.done.wait [#allocation6], 1024  }
  0x13   :  { %2110 = vsyncadd [#allocation6], 4294966272 }
  0x14   :  { %2111 = dma.done.wait [#allocation9], 9216  }
  0x15   :  { %2112 = vsyncadd [#allocation9], 4294958080 }
  0x16   :  { %2113 = dma.done.wait [#allocation12], 2112  }
  0x17   :  { %2114 = vsyncadd [#allocation12], 4294965184  ;;  %v118_v0 = vld [vmem:[#allocation8 + $0x20] sm:$0xff]  ;;  %vm132_vm0 = vcmask 130048   ;;  %v2178_v3 = vld [vmem:[#allocation5 + $0x28] sm:$0xff]  ;;  %s2127_s23 = smov [#allocation14]  }
  0x18   :  { %v114_v1 = vld [vmem:[#allocation8] sm:$0xff]  ;;  %171 = vmatpush.msra.mxu0 %v118_v0  ;;  %1755 = vmatpush.msra.mxu1 %v118_v0  ;;  %v2180_v4 = vld [vmem:[#allocation5 + $0x30] sm:$0xff]  ;;  %v2182_v5 = vld [vmem:[#allocation5 + $0x38] sm:$0xff]  ;;  %s1685_s24 = sshll.u32 %s2127_s23, 4  ;;  %s1687_s27 = sshll.u32 %s3140_s6, 4  ;;  %s1686_s24 = int_to_ptr.vmem [resolvable:$true] %s1685_s24  ;;  %s1688_s27 = int_to_ptr.hbm [resolvable:$true] %s1687_s27 }
  0x19   :  { %1756 = vmatpush.msra.mxu2 %v118_v0  ;;  %1757 = vmatpush.msra.mxu3 %v118_v0  ;;  %v106_v2 = vld [vmem:[#allocation5] sm:$0xff]  ;;  %v119_v6 = vld [vmem:[#allocation8 + $0x28] sm:$0xff]  ;;  %v120_v7 = vld [vmem:[#allocation8 + $0x30] sm:$0xff] }
  0x1a   :  { %172 = vmatpush.msra.mxu0 %v114_v1  ;;  %1758 = vmatpush.msra.mxu1 %v114_v1  ;;  %v121_v8 = vld [vmem:[#allocation8 + $0x38] sm:$0xff]  ;;  %v2187_v9 = vld [vmem:[#allocation10 + $0x1e0] sm:$0xff]  ;;  %v115_v10 = vld [vmem:[#allocation8 + $0x8] sm:$0xff] }
  0x1b   :  { %1759 = vmatpush.msra.mxu2 %v114_v1  ;;  %1760 = vmatpush.msra.mxu3 %v114_v1  ;;  %v116_v11 = vld [vmem:[#allocation8 + $0x10] sm:$0xff]  ;;  %v117_v12 = vld [vmem:[#allocation8 + $0x18] sm:$0xff]  ;;  %v2193_v13 = vld [vmem:[#allocation10 + $0x1e8] sm:$0xff] }
  0x1c   :  { %1699 = vmatmul.msk.f32.vlgmr.msra.gmra.mxu0 %vm132_vm0, %v106_v2  ;;  %1704 = vmatmul.msk.f32.vlgmr.msra.gmra.mxu1 %vm132_vm0, %v2178_v3  ;;  %v2196_v14 = vld [vmem:[#allocation10 + $0x1c0] sm:$0xff]  ;;  %v2198_v15 = vld [vmem:[#allocation10 + $0x1f0] sm:$0xff]  ;;  %v2200_v16 = vld [vmem:[#allocation10 + $0x1c8] sm:$0xff] }
  0x1d   :  { %1705 = vmatmul.msk.f32.vlgmr.msra.gmra.mxu2 %vm132_vm0, %v2180_v4  ;;  %1706 = vmatmul.msk.f32.vlgmr.msra.gmra.mxu3 %vm132_vm0, %v2182_v5  ;;  %v2202_v17 = vld [vmem:[#allocation10 + $0x1f8] sm:$0xff]  ;;  %v107_v18 = vld [vmem:[#allocation5 + $0x8] sm:$0xff]  ;;  %v2208_v19 = vld [vmem:[#allocation10 + $0x1a0] sm:$0xff] }
  0x1e   :  { %212 = vmatpush.msrb.mxu1 %v119_v6  ;;  %253 = vmatpush.msrb.mxu2 %v120_v7  ;;  %v2210_v20 = vld [vmem:[#allocation10 + $0x1a8] sm:$0xff]  ;;  %v2215_v21 = vld [vmem:[#allocation10 + $0x1d0] sm:$0xff]  ;;  %v2217_v22 = vld [vmem:[#allocation10 + $0x1d8] sm:$0xff] }
  0x1f   :  { %294 = vmatpush.msrb.mxu3 %v121_v8  ;;  %423 = vmatpush.msrb.mxu0 %v2187_v9  ;;  %v2221_v23 = vld [vmem:[#allocation10 + $0x180] sm:$0xff]  ;;  %v2223_v24 = vld [vmem:[#allocation10 + $0x188] sm:$0xff]  ;;  %v2227_v25 = vld [vmem:[#allocation10 + $0x1b0] sm:$0xff] }
  0x20   :  { %213 = vmatpush.msrb.mxu1 %v115_v10  ;;  %254 = vmatpush.msrb.mxu2 %v116_v11  ;;  %v2229_v26 = vld [vmem:[#allocation10 + $0x1b8] sm:$0xff]  ;;  %v2231_v27 = vld [vmem:[#allocation10 + $0x160] sm:$0xff]  ;;  %v2234_v28 = vld [vmem:[#allocation10 + $0x168] sm:$0xff] }
  0x21   :  { %295 = vmatpush.msrb.mxu3 %v117_v12  ;;  %424 = vmatpush.msrb.mxu0 %v2196_v14  ;;  %v2239_v29 = vld [vmem:[#allocation10 + $0x190] sm:$0xff]  ;;  %v2241_v30 = vld [vmem:[#allocation10 + $0x198] sm:$0xff]  ;;  %v2247_v32 = vld [vmem:[#allocation10 + $0x140] sm:$0xff] }
  0x22   :  { %443 = vmatpush.msra.mxu1 %v2193_v13  ;;  %463 = vmatpush.msra.mxu2 %v2198_v15  ;;  %v108_v31 = vld [vmem:[#allocation5 + $0x10] sm:$0xff]  ;;  %v2250_v33 = vld [vmem:[#allocation10 + $0x148] sm:$0xff]  ;;  %v2257_v35 = vld [vmem:[#allocation10 + $0x178] sm:$0xff] }
  0x23   :  { %483 = vmatpush.msra.mxu3 %v2202_v17  ;;  %425 = vmatpush.msrb.mxu0 %v2208_v19  ;;  %v2255_v34 = vld [vmem:[#allocation10 + $0x170] sm:$0xff]  ;;  %v2261_v36 = vld [vmem:[#allocation10 + $0x120] sm:$0xff]  ;;  %v2263_v37 = vld [vmem:[#allocation10 + $0x128] sm:$0xff] }
  0x24   :  { %444 = vmatpush.msra.mxu1 %v2200_v16  ;;  %1700 = vmatmul.msk.f32.gmra.mxu0 %vm132_vm0, %v107_v18  ;;  %v2267_v38 = vld [vmem:[#allocation10 + $0x150] sm:$0xff]  ;;  %v2269_v39 = vld [vmem:[#allocation10 + $0x158] sm:$0xff]  ;;  %v2271_v40 = vld [vmem:[#allocation10 + $0x100] sm:$0xff] }
  0x25   :  { %1707 = vmatmul.msk.f32.vlgmr.msrb.gmra.mxu1 %vm132_vm0, %v106_v2  ;;  %1715 = vmatmul.msk.f32.vlgmr.msrb.gmra.mxu2 %vm132_vm0, %v106_v2  ;;  %v2274_v41 = vld [vmem:[#allocation10 + $0x108] sm:$0xff]  ;;  %v2279_v42 = vld [vmem:[#allocation10 + $0x130] sm:$0xff]  ;;  %v2281_v43 = vld [vmem:[#allocation10 + $0x138] sm:$0xff] }
  0x26   :  { %1723 = vmatmul.msk.f32.vlgmr.msrb.gmra.mxu3 %vm132_vm0, %v106_v2  ;;  %445 = vmatpush.msra.mxu1 %v2210_v20  ;;  %v109_v44 = vld [vmem:[#allocation5 + $0x18] sm:$0xff]  ;;  %v2287_v45 = vld [vmem:[#allocation10 + $0xe0] sm:$0xff]  ;;  %v2290_v46 = vld [vmem:[#allocation10 + $0xe8] sm:$0xff] }
  0x27   :  { %464 = vmatpush.msra.mxu2 %v2215_v21  ;;  %484 = vmatpush.msra.mxu3 %v2217_v22  ;;  %v2295_v47 = vld [vmem:[#allocation10 + $0x110] sm:$0xff]  ;;  %v2297_v48 = vld [vmem:[#allocation10 + $0x118] sm:$0xff]  ;;  %v2301_v49 = vld [vmem:[#allocation10 + $0xc0] sm:$0xff] }
  0x28   :  { %426 = vmatpush.msrb.mxu0 %v2221_v23  ;;  %446 = vmatpush.msra.mxu1 %v2223_v24  ;;  %v2303_v50 = vld [vmem:[#allocation10 + $0xc8] sm:$0xff]  ;;  %v2307_v51 = vld [vmem:[#allocation10 + $0xf0] sm:$0xff]  ;;  %v2309_v52 = vld [vmem:[#allocation10 + $0xf8] sm:$0xff] }
  0x29   :  { %465 = vmatpush.msra.mxu2 %v2227_v25  ;;  %485 = vmatpush.msra.mxu3 %v2229_v26  ;;  %v2311_v53 = vld [vmem:[#allocation10 + $0xa0] sm:$0xff]  ;;  %v2314_v54 = vld [vmem:[#allocation10 + $0xa8] sm:$0xff]  ;;  %v2319_v55 = vld [vmem:[#allocation10 + $0xd0] sm:$0xff] }
  0x2a   :  { %427 = vmatpush.msrb.mxu0 %v2231_v27  ;;  %447 = vmatpush.msra.mxu1 %v2234_v28  ;;  %3238 = vst [vmem:[#allocation19_spill] sm:$0xff] %v2311_v53  ;;  %v2321_v56 = vld [vmem:[#allocation10 + $0xd8] sm:$0xff]  ;;  %v2323_v57 = vld [vmem:[#allocation10 + $0x80] sm:$0xff]  ;;  %v2335_v60 = vld [vmem:[#allocation10 + $0x88] sm:$0xff] }
  0x2b   :  { %466 = vmatpush.msra.mxu2 %v2239_v29  ;;  %486 = vmatpush.msra.mxu3 %v2241_v30  ;;  %3239 = vst [vmem:[#allocation20_spill] sm:$0xff] %v2314_v54  ;;  %v110_v58 = vld [vmem:[#allocation5 + $0x20] sm:$0xff]  ;;  %v2337_v61 = vld [vmem:[#allocation10 + $0xb0] sm:$0xff]  ;;  %v2343_v63 = vld [vmem:[#allocation10 + $0xb8] sm:$0xff] }
  0x2c   :  { %1701 = vmatmul.msk.f32.gmra.mxu0 %vm132_vm0, %v108_v31  ;;  %448 = vmatpush.msra.mxu1 %v2250_v33  ;;  %3240 = vst [vmem:[#allocation21_spill] sm:$0xff] %v2319_v55  ;;  %v2329_v59 = vld [vmem:[#allocation10 + $0x60] sm:$0xff]  ;;  %v2347_v0 = vld [vmem:[#allocation10 + $0x68] sm:$0xff]  ;;  %v2349_v1 = vld [vmem:[#allocation10 + $0x90] sm:$0xff] }
  0x2d   :  { %1708 = vmatmul.msk.f32.gmra.mxu1 %vm132_vm0, %v107_v18  ;;  %1716 = vmatmul.msk.f32.gmra.mxu2 %vm132_vm0, %v107_v18  ;;  %3241 = vst [vmem:[#allocation22_spill] sm:$0xff] %v2321_v56  ;;  %v2341_v62 = vld [vmem:[#allocation10 + $0x40] sm:$0xff]  ;;  %v2355_v6 = vld [vmem:[#allocation10 + $0x98] sm:$0xff]  ;;  %v2358_v7 = vld [vmem:[#allocation10 + $0x48] sm:$0xff] }
  0x2e   :  { %1724 = vmatmul.msk.f32.gmra.mxu3 %vm132_vm0, %v107_v18  ;;  %428 = vmatpush.msrb.mxu0 %v2247_v32  ;;  %3242 = vst [vmem:[#allocation23_spill] sm:$0xff] %v2323_v57  ;;  %v2351_v2 = vld [vmem:[#allocation10 + $0x20] sm:$0xff]  ;;  %v2360_v8 = vld [vmem:[#allocation10 + $0x70] sm:$0xff]  ;;  %v2371_v11 = vld [vmem:[#allocation10 + $0x28] sm:$0xff] }
  0x2f   :  { %467 = vmatpush.msra.mxu2 %v2255_v34  ;;  %487 = vmatpush.msra.mxu3 %v2257_v35  ;;  %3243 = vst [vmem:[#allocation24_spill] sm:$0xff] %v2329_v59  ;;  %v2363_v10 = vld [vmem:[#allocation10] sm:$0xff]  ;;  %v2375_v12 = vld [vmem:[#allocation10 + $0x50] sm:$0xff]  ;;  %v2377_v18 = vld [vmem:[#allocation10 + $0x78] sm:$0xff] }
  0x30   :  { %429 = vmatpush.msrb.mxu0 %v2261_v36  ;;  %449 = vmatpush.msra.mxu1 %v2263_v37  ;;  %3244 = vst [vmem:[#allocation25_spill] sm:$0xff] %v2335_v60 }
  0x31   :  { %468 = vmatpush.msra.mxu2 %v2267_v38  ;;  %488 = vmatpush.msra.mxu3 %v2269_v39  ;;  %3245 = vst [vmem:[#allocation26_spill] sm:$0xff] %v2337_v61 }
  0x32   :  { %430 = vmatpush.msrb.mxu0 %v2271_v40  ;;  %450 = vmatpush.msra.mxu1 %v2274_v41  ;;  %3246 = vst [vmem:[#allocation27_spill] sm:$0xff] %v2341_v62 }
  0x33   :  { %469 = vmatpush.msra.mxu2 %v2279_v42  ;;  %489 = vmatpush.msra.mxu3 %v2281_v43  ;;  %3247 = vst [vmem:[#allocation28_spill] sm:$0xff] %v2343_v63 }
  0x34   :  { %1702 = vmatmul.msk.f32.gmra.mxu0 %vm132_vm0, %v109_v44  ;;  %451 = vmatpush.msra.mxu1 %v2290_v46  ;;  %3248 = vst [vmem:[#allocation29_spill] sm:$0xff] %v2347_v0 }
  0x35   :  { %1709 = vmatmul.msk.f32.gmra.mxu1 %vm132_vm0, %v108_v31  ;;  %1717 = vmatmul.msk.f32.gmra.mxu2 %vm132_vm0, %v108_v31  ;;  %3249 = vst [vmem:[#allocation30_spill] sm:$0xff] %v2349_v1 }
  0x36   :  { %1725 = vmatmul.msk.f32.gmra.mxu3 %vm132_vm0, %v108_v31  ;;  %431 = vmatpush.msrb.mxu0 %v2287_v45  ;;  %3250 = vst [vmem:[#allocation31_spill] sm:$0xff] %v2351_v2  ;;  %v2126_v31 = vmov 0.0  }
  0x37   :  { %470 = vmatpush.msra.mxu2 %v2295_v47  ;;  %490 = vmatpush.msra.mxu3 %v2297_v48  ;;  %3251 = vst [vmem:[#allocation32_spill] sm:$0xff] %v2355_v6 }
  0x38   :  { %432 = vmatpush.msrb.mxu0 %v2301_v49  ;;  %452 = vmatpush.msra.mxu1 %v2303_v50  ;;  %3252 = vst [vmem:[#allocation33_spill] sm:$0xff] %v2358_v7 }
  0x39   :  { %471 = vmatpush.msra.mxu2 %v2307_v51  ;;  %491 = vmatpush.msra.mxu3 %v2309_v52  ;;  %3253 = vst [vmem:[#allocation34_spill] sm:$0xff] %v2360_v8 }
  0x3a   :  { %433 = vmatpush.msrb.mxu0 %v2311_v53  ;;  %453 = vmatpush.msra.mxu1 %v2314_v54  ;;  %3254 = vst [vmem:[#allocation35_spill] sm:$0xff] %v2363_v10 }
  0x3b   :  { %472 = vmatpush.msra.mxu2 %v2319_v55  ;;  %492 = vmatpush.msra.mxu3 %v2321_v56  ;;  %3255 = vst [vmem:[#allocation36_spill] sm:$0xff] %v2371_v11 }
  0x3c   :  { %434 = vmatpush.msrb.mxu0 %v2323_v57  ;;  %454 = vmatpush.msra.mxu1 %v2335_v60  ;;  %3256 = vst [vmem:[#allocation37_spill] sm:$0xff] %v2375_v12 }
  0x3d   :  { %1710 = vmatmul.msk.f32.gmra.mxu1 %vm132_vm0, %v109_v44  ;;  %1703 = vmatmul.msk.f32.gmra.mxu0 %vm132_vm0, %v110_v58  ;;  %3257 = vst [vmem:[#allocation38_spill] sm:$0xff] %v2377_v18 }
  0x3e   :  { %1718 = vmatmul.msk.f32.gmra.mxu2 %vm132_vm0, %v109_v44  ;;  %1726 = vmatmul.msk.f32.gmra.mxu3 %vm132_vm0, %v109_v44  ;;  %v2381_v44 = vld [vmem:[#allocation10 + $0x8] sm:$0xff] }
  0x3f   :  { %435 = vmatpush.msrb.mxu0 %v2329_v59  ;;  %473 = vmatpush.msra.mxu2 %v2337_v61  ;;  %3258 = vst [vmem:[#allocation39_spill] sm:$0xff] %v2381_v44 }
  0x40   :  { %493 = vmatpush.msra.mxu3 %v2343_v63  ;;  %455 = vmatpush.msra.mxu1 %v2347_v0 }
  0x41   :  { %436 = vmatpush.msrb.mxu0 %v2341_v62  ;;  %474 = vmatpush.msra.mxu2 %v2349_v1  ;;  %v2394_v62 = vld [vmem:[#allocation10 + $0x10] sm:$0xff] }
  0x42   :  { %494 = vmatpush.msra.mxu3 %v2355_v6  ;;  %456 = vmatpush.msra.mxu1 %v2358_v7  ;;  %v2392_v7 = vld [vmem:[#allocation10 + $0x38] sm:$0xff]  ;;  %3262 = vst [vmem:[#allocation43_spill] sm:$0xff] %v2394_v62 }
  0x43   :  { %437 = vmatpush.msrb.mxu0 %v2351_v2  ;;  %475 = vmatpush.msra.mxu2 %v2360_v8  ;;  %v2385_v2 = vld [vmem:[#allocation10 + $0x58] sm:$0xff]  ;;  %3261 = vst [vmem:[#allocation42_spill] sm:$0xff] %v2392_v7 }
  0x44   :  { %457 = vmatpush.msra.mxu1 %v2371_v11  ;;  %3259 = vst [vmem:[#allocation40_spill] sm:$0xff] %v2385_v2  ;;  %495 = vmatpush.msra.mxu3 %v2377_v18 }
  0x45   :  { %438 = vmatpush.msrb.mxu0 %v2363_v10  ;;  %1711 = vmatmul.msk.f32.gmra.mxu1 %vm132_vm0, %v110_v58  ;;  %v2387_v10 = vld [vmem:[#allocation10 + $0x30] sm:$0xff] }
  0x46   :  { %1719 = vmatmul.msk.f32.gmra.mxu2 %vm132_vm0, %v110_v58  ;;  %439 = vmatmul.f32.vlgmr.msrb.gmra.mxu0 %v2126_v31  ;;  %3260 = vst [vmem:[#allocation41_spill] sm:$0xff] %v2387_v10 }
  0x47   :  { %1727 = vmatmul.msk.f32.gmra.mxu3 %vm132_vm0, %v110_v58  ;;  %476 = vmatpush.msra.mxu2 %v2375_v12  ;;  %v2399_v58 = vld [vmem:[#allocation10 + $0x18] sm:$0xff] }
  0x48   :  { %458 = vmatpush.msra.mxu1 %v2381_v44  ;;  %575 = vmatpush.msra.mxu0 %v2187_v9  ;;  %3263 = vst [vmem:[#allocation44_spill] sm:$0xff] %v2399_v58 }
  0x49   :  { %496 = vmatpush.msra.mxu3 %v2385_v2  ;;  %477 = vmatpush.msra.mxu2 %v2387_v10 }
  0x4a   :  { %595 = vmatpush.msrb.mxu1 %v2193_v13  ;;  %576 = vmatpush.msra.mxu0 %v2196_v14 }
  0x4b   :  { %497 = vmatpush.msra.mxu3 %v2392_v7  ;;  %478 = vmatpush.msra.mxu2 %v2394_v62 }
  0x4c   :  { %596 = vmatpush.msrb.mxu1 %v2200_v16  ;;  %577 = vmatpush.msra.mxu0 %v2208_v19 }
  0x4d   :  { %1712 = vmatmul.msk.f32.gmra.mxu1 %vm132_vm0, %v2178_v3  ;;  %615 = vmatpush.msrb.mxu2 %v2198_v15 }
  0x4e   :  { %1720 = vmatmul.msk.f32.gmra.mxu2 %vm132_vm0, %v2178_v3  ;;  %498 = vmatpush.msra.mxu3 %v2399_v58 }
  0x4f   :  { %1728 = vmatmul.msk.f32.gmra.mxu3 %vm132_vm0, %v2178_v3  ;;  %616 = vmatpush.msrb.mxu2 %v2215_v21  ;;  %v3264_v3 = vld [vmem:[#allocation27_spill] sm:$0xff] }
  0x50   :  { %635 = vmatpush.msrb.mxu3 %v2202_v17  ;;  %597 = vmatpush.msrb.mxu1 %v2210_v20 }
  0x51   :  { %617 = vmatpush.msrb.mxu2 %v2227_v25  ;;  %578 = vmatpush.msra.mxu0 %v2221_v23 }
  0x52   :  { %636 = vmatpush.msrb.mxu3 %v2217_v22  ;;  %598 = vmatpush.msrb.mxu1 %v2223_v24 }
  0x53   :  { %618 = vmatpush.msrb.mxu2 %v2239_v29  ;;  %579 = vmatpush.msra.mxu0 %v2231_v27 }
  0x54   :  { %637 = vmatpush.msrb.mxu3 %v2229_v26  ;;  %599 = vmatpush.msrb.mxu1 %v2234_v28 }
  0x55   :  { %1713 = vmatmul.msk.f32.gmra.mxu1 %vm132_vm0, %v2180_v4  ;;  %619 = vmatpush.msrb.mxu2 %v2255_v34 }
  0x56   :  { %1721 = vmatmul.msk.f32.gmra.mxu2 %vm132_vm0, %v2180_v4  ;;  %638 = vmatpush.msrb.mxu3 %v2241_v30 }
  0x57   :  { %1729 = vmatmul.msk.f32.gmra.mxu3 %vm132_vm0, %v2180_v4  ;;  %580 = vmatpush.msra.mxu0 %v2247_v32  ;;  %v3265_v4 = vld [vmem:[#allocation33_spill] sm:$0xff] }
  0x58   :  { %639 = vmatpush.msrb.mxu3 %v2257_v35  ;;  %600 = vmatpush.msrb.mxu1 %v2250_v33 }
  0x59   :  { %620 = vmatpush.msrb.mxu2 %v2267_v38  ;;  %581 = vmatpush.msra.mxu0 %v2261_v36 }
  0x5a   :  { %640 = vmatpush.msrb.mxu3 %v2269_v39  ;;  %601 = vmatpush.msrb.mxu1 %v2263_v37 }
  0x5b   :  { %621 = vmatpush.msrb.mxu2 %v2279_v42  ;;  %582 = vmatpush.msra.mxu0 %v2271_v40 }
  0x5c   :  { %641 = vmatpush.msrb.mxu3 %v2281_v43  ;;  %602 = vmatpush.msrb.mxu1 %v2274_v41 }
  0x5d   :  { %1714 = vmatmul.msk.f32.gmra.mxu1 %vm132_vm0, %v2182_v5  ;;  %622 = vmatpush.msrb.mxu2 %v2295_v47 }
  0x5e   :  { %1722 = vmatmul.msk.f32.gmra.mxu2 %vm132_vm0, %v2182_v5  ;;  %642 = vmatpush.msrb.mxu3 %v2297_v48 }
  0x5f   :  { %1730 = vmatmul.msk.f32.gmra.mxu3 %vm132_vm0, %v2182_v5  ;;  %583 = vmatpush.msra.mxu0 %v2287_v45  ;;  %v3266_v5 = vld [vmem:[#allocation31_spill] sm:$0xff] }
  0x60   :  { %603 = vmatpush.msrb.mxu1 %v2290_v46  ;;  %623 = vmatpush.msrb.mxu2 %v2307_v51 }
  0x61   :  { %643 = vmatpush.msrb.mxu3 %v2309_v52  ;;  %584 = vmatpush.msra.mxu0 %v2301_v49 }
  0x62   :  { %604 = vmatpush.msrb.mxu1 %v2303_v50  ;;  %624 = vmatpush.msrb.mxu2 %v2319_v55 }
  0x63   :  { %644 = vmatpush.msrb.mxu3 %v2321_v56  ;;  %585 = vmatpush.msra.mxu0 %v2311_v53 }
  0x64   :  { %625 = vmatpush.msrb.mxu2 %v2337_v61  ;;  %605 = vmatpush.msrb.mxu1 %v2314_v54 }
  0x65   :  { %459 = vmatmul.f32.vlgmr.msra.gmra.mxu1 %v2126_v31  ;;  %586 = vmatpush.msra.mxu0 %v2323_v57 }
  0x66   :  { %479 = vmatmul.f32.vlgmr.msra.gmra.mxu2 %v2126_v31  ;;  %645 = vmatpush.msrb.mxu3 %v2343_v63 }
  0x67   :  { %499 = vmatmul.f32.vlgmr.msra.gmra.mxu3 %v2126_v31  ;;  %606 = vmatpush.msrb.mxu1 %v2335_v60  ;;  %v3267_v31 = vld [vmem:[#allocation35_spill] sm:$0xff] }
  0x68   :  { %626 = vmatpush.msrb.mxu2 %v2349_v1  ;;  %587 = vmatpush.msra.mxu0 %v2329_v59 }
  0x69   :  { %646 = vmatpush.msrb.mxu3 %v2355_v6  ;;  %607 = vmatpush.msrb.mxu1 %v2347_v0 }
  0x6a   :  { %627 = vmatpush.msrb.mxu2 %v2360_v8  ;;  %588 = vmatpush.msra.mxu0 %v3264_v3 }
  0x6b   :  { %647 = vmatpush.msrb.mxu3 %v2377_v18  ;;  %608 = vmatpush.msrb.mxu1 %v3265_v4 }
  0x6c   :  { %628 = vmatpush.msrb.mxu2 %v2375_v12  ;;  %589 = vmatpush.msra.mxu0 %v3266_v5 }
  0x6d   :  { %648 = vmatpush.msrb.mxu3 %v2385_v2  ;;  %609 = vmatpush.msrb.mxu1 %v2371_v11 }
  0x6e   :  { %629 = vmatpush.msrb.mxu2 %v2387_v10  ;;  %590 = vmatpush.msra.mxu0 %v3267_v31 }
  0x6f   :  { %649 = vmatpush.msrb.mxu3 %v2392_v7  ;;  %610 = vmatpush.msrb.mxu1 %v2381_v44 }
  0x70   :  { %630 = vmatpush.msrb.mxu2 %v2394_v62  ;;  %727 = vmatpush.msrb.mxu0 %v2187_v9 }
  0x71   :  { %650 = vmatpush.msrb.mxu3 %v2399_v58  ;;  %747 = vmatpush.msra.mxu1 %v2193_v13 }
  0x72   :  { %767 = vmatpush.msra.mxu2 %v2198_v15  ;;  %728 = vmatpush.msrb.mxu0 %v2196_v14 }
  0x73   :  { %787 = vmatpush.msra.mxu3 %v2202_v17  ;;  %748 = vmatpush.msra.mxu1 %v2200_v16 }
  0x74   :  { %768 = vmatpush.msra.mxu2 %v2215_v21  ;;  %729 = vmatpush.msrb.mxu0 %v2208_v19 }
  0x75   :  { %788 = vmatpush.msra.mxu3 %v2217_v22  ;;  %749 = vmatpush.msra.mxu1 %v2210_v20 }
  0x76   :  { %769 = vmatpush.msra.mxu2 %v2227_v25  ;;  %730 = vmatpush.msrb.mxu0 %v2221_v23 }
  0x77   :  { %789 = vmatpush.msra.mxu3 %v2229_v26  ;;  %750 = vmatpush.msra.mxu1 %v2223_v24 }
  0x78   :  { %770 = vmatpush.msra.mxu2 %v2239_v29  ;;  %731 = vmatpush.msrb.mxu0 %v2231_v27 }
  0x79   :  { %790 = vmatpush.msra.mxu3 %v2241_v30  ;;  %751 = vmatpush.msra.mxu1 %v2234_v28 }
  0x7a   :  { %771 = vmatpush.msra.mxu2 %v2255_v34  ;;  %732 = vmatpush.msrb.mxu0 %v2247_v32 }
  0x7b   :  { %791 = vmatpush.msra.mxu3 %v2257_v35  ;;  %752 = vmatpush.msra.mxu1 %v2250_v33 }
  0x7c   :  { %772 = vmatpush.msra.mxu2 %v2267_v38  ;;  %733 = vmatpush.msrb.mxu0 %v2261_v36 }
  0x7d   :  { %792 = vmatpush.msra.mxu3 %v2269_v39  ;;  %753 = vmatpush.msra.mxu1 %v2263_v37 }
  0x7e   :  { %773 = vmatpush.msra.mxu2 %v2279_v42  ;;  %734 = vmatpush.msrb.mxu0 %v2271_v40 }
  0x7f   :  { %793 = vmatpush.msra.mxu3 %v2281_v43  ;;  %754 = vmatpush.msra.mxu1 %v2274_v41 }
  0x80   :  { %774 = vmatpush.msra.mxu2 %v2295_v47  ;;  %735 = vmatpush.msrb.mxu0 %v2287_v45 }
  0x81   :  { %794 = vmatpush.msra.mxu3 %v2297_v48  ;;  %755 = vmatpush.msra.mxu1 %v2290_v46 }
  0x82   :  { %775 = vmatpush.msra.mxu2 %v2307_v51  ;;  %736 = vmatpush.msrb.mxu0 %v2301_v49 }
  0x83   :  { %795 = vmatpush.msra.mxu3 %v2309_v52  ;;  %756 = vmatpush.msra.mxu1 %v2303_v50 }
  0x84   :  { %776 = vmatpush.msra.mxu2 %v2319_v55  ;;  %737 = vmatpush.msrb.mxu0 %v2311_v53 }
  0x85   :  { %796 = vmatpush.msra.mxu3 %v2321_v56  ;;  %757 = vmatpush.msra.mxu1 %v2314_v54 }
  0x86   :  { %777 = vmatpush.msra.mxu2 %v2337_v61  ;;  %738 = vmatpush.msrb.mxu0 %v2323_v57 }
  0x87   :  { %797 = vmatpush.msra.mxu3 %v2343_v63  ;;  %758 = vmatpush.msra.mxu1 %v2335_v60 }
  0x88   :  { %778 = vmatpush.msra.mxu2 %v2349_v1  ;;  %739 = vmatpush.msrb.mxu0 %v2329_v59 }
  0x89   :  { %798 = vmatpush.msra.mxu3 %v2355_v6  ;;  %759 = vmatpush.msra.mxu1 %v2347_v0 }
  0x8a   :  { %779 = vmatpush.msra.mxu2 %v2360_v8  ;;  %740 = vmatpush.msrb.mxu0 %v3264_v3 }
  0x8b   :  { %799 = vmatpush.msra.mxu3 %v2377_v18  ;;  %760 = vmatpush.msra.mxu1 %v3265_v4  ;;  %v122_v4 = vld [vmem:[#allocation11] sm:$0xf] }
  0x8c   :  { %780 = vmatpush.msra.mxu2 %v2375_v12  ;;  %741 = vmatpush.msrb.mxu0 %v3266_v5  ;;  %v124_v12 = vperm.slane %v122_v4, 0 }
  0x8d   :  { %800 = vmatpush.msra.mxu3 %v2385_v2  ;;  %761 = vmatpush.msra.mxu1 %v2371_v11 }
  0x8e   :  { %781 = vmatpush.msra.mxu2 %v2387_v10  ;;  %742 = vmatpush.msrb.mxu0 %v3267_v31 }
  0x8f   :  { %801 = vmatpush.msra.mxu3 %v2392_v7  ;;  %762 = vmatpush.msra.mxu1 %v2381_v44  ;;  %v125_v44 = vperm.slane %v122_v4, 1 }
  0x90   :  { %782 = vmatpush.msra.mxu2 %v2394_v62 }
  0x91   :  { %802 = vmatpush.msra.mxu3 %v2399_v58 }
  0x99   :  { %v174_v3 = vpop.f32.mrf.mxu0  ;;  %v189_v2 = vpop.f32.mrf.mxu1 }
  0x9a   :  { %v2552_v18 = vadd.f32 %v189_v2, %v124_v12 }
  0x9c   :  { %3268 = vst [vmem:[#allocation45_spill] sm:$0xff] %v2552_v18  ;;  %v126_v18 = vperm.slane %v122_v4, 2 }
  0xa0   :  { %v192_v5 = vpop.f32.mrf.mxu2  ;;  %v195_v11 = vpop.f32.mrf.mxu3 }
  0xa1   :  { %v2554_v8 = vadd.f32 %v192_v5, %v124_v12  ;;  %v2556_v10 = vadd.f32 %v195_v11, %v124_v12  ;;  %v177_v7 = vpop.f32.mrf.mxu0  ;;  %v2568_v5 = vperm.slane %v122_v4, 3 }
  0xa2   :  { %v215_v31 = vpop.f32.mrf.mxu1  ;;  %v2558_v0 = vadd.f32 %v177_v7, %v124_v12 }
  0xa3   :  { %3269 = vst [vmem:[#allocation46_spill] sm:$0xff] %v2554_v8 }
  0xa4   :  { %3270 = vst [vmem:[#allocation47_spill] sm:$0xff] %v2556_v10 }
  0xa5   :  { %3271 = vst [vmem:[#allocation48_spill] sm:$0xff] %v2558_v0 }
  0xa8   :  { %v2560_v62 = vpop.f32.mrf.mxu2 }
  0xa9   :  { %v2562_v58 = vpop.f32.mrf.mxu3  ;;  %v180_v59 = vpop.f32.mrf.mxu0 }
  0xaa   :  { %v218_v6 = vpop.f32.mrf.mxu1  ;;  %v2564_v1 = vadd.f32 %v180_v59, %v124_v12 }
  0xab   :  { %v2566_v2 = vadd.f32 %v218_v6, %v125_v44 }
  0xac   :  { %3272 = vst [vmem:[#allocation49_spill] sm:$0xff] %v2564_v1 }
  0xad   :  { %3273 = vst [vmem:[#allocation50_spill] sm:$0xff] %v2566_v2 }
  0xb0   :  { %v259_v11 = vpop.f32.mrf.mxu2 }
  0xb1   :  { %v300_v10 = vpop.f32.mrf.mxu3  ;;  %v2570_v8 = vadd.f32 %v259_v11, %v126_v18  ;;  %v183_v0 = vpop.f32.mrf.mxu0 }
  0xb2   :  { %v2573_v7 = vadd.f32 %v300_v10, %v2568_v5  ;;  %v221_v60 = vpop.f32.mrf.mxu1  ;;  %v2575_v57 = vadd.f32 %v183_v0, %v124_v12 }
  0xb3   :  { %3274 = vst [vmem:[#allocation51_spill] sm:$0xff] %v2570_v8  ;;  %v2577_v63 = vadd.f32 %v221_v60, %v125_v44 }
  0xb4   :  { %3275 = vst [vmem:[#allocation52_spill] sm:$0xff] %v2573_v7 }
  0xb5   :  { %3276 = vst [vmem:[#allocation53_spill] sm:$0xff] %v2575_v57 }
  0xb6   :  { %3277 = vst [vmem:[#allocation54_spill] sm:$0xff] %v2577_v63 }
  0xb8   :  { %v262_v59 = vpop.f32.mrf.mxu2 }
  0xb9   :  { %v303_v1 = vpop.f32.mrf.mxu3  ;;  %v2579_v6 = vadd.f32 %v262_v59, %v126_v18 }
  0xba   :  { %v2582_v4 = vadd.f32 %v303_v1, %v2568_v5  ;;  %v224_v2 = vpop.f32.mrf.mxu1  ;;  %v186_v61 = vpop.f32.mrf.mxu0 }
  0xbb   :  { %3278 = vst [vmem:[#allocation55_spill] sm:$0xff] %v2579_v6  ;;  %v2584_v11 = vadd.f32 %v224_v2, %v125_v44  ;;  %v2586_v8 = vadd.f32 %v186_v61, %v124_v12 }
  0xbc   :  { %3279 = vst [vmem:[#allocation56_spill] sm:$0xff] %v2582_v4 }
  0xbd   :  { %3280 = vst [vmem:[#allocation57_spill] sm:$0xff] %v2584_v11 }
  0xbe   :  { %3281 = vst [vmem:[#allocation58_spill] sm:$0xff] %v2586_v8 }
  0xc1   :  { %v265_v10 = vpop.f32.mrf.mxu2  ;;  %v306_v0 = vpop.f32.mrf.mxu3 }
  0xc2   :  { %v2588_v7 = vadd.f32 %v265_v10, %v126_v18  ;;  %v227_v57 = vpop.f32.mrf.mxu1  ;;  %v2591_v60 = vadd.f32 %v306_v0, %v2568_v5  ;;  %v175_v10 = vadd.f32 %v174_v3, %v124_v12 }
  0xc3   :  { %v2593_v63 = vadd.f32 %v227_v57, %v125_v44  ;;  %v440_v8 = vpop.f32.mrf.mxu0 }
  0xc4   :  { %3282 = vst [vmem:[#allocation59_spill] sm:$0xff] %v2588_v7  ;;  %v503_v7 = vadd.f32 %v440_v8, %v175_v10  ;;  %v216_v10 = vadd.f32 %v215_v31, %v125_v44 }
  0xc5   :  { %3283 = vst [vmem:[#allocation60_spill] sm:$0xff] %v2591_v60 }
  0xc6   :  { %3284 = vst [vmem:[#allocation61_spill] sm:$0xff] %v2593_v63  ;;  %v1731_v57 = vmul.f32 -1.442695, %v503_v7 }
  0xc8   :  { %1773 = vpow2.f32 %v1731_v57 }
  0xc9   :  { %v268_v59 = vpop.f32.mrf.mxu2 }
  0xca   :  { %v2595_v6 = vadd.f32 %v268_v59, %v126_v18  ;;  %v309_v1 = vpop.f32.mrf.mxu3  ;;  %v230_v4 = vpop.f32.mrf.mxu1 }
  0xcb   :  { %v2598_v2 = vadd.f32 %v309_v1, %v2568_v5  ;;  %v2600_v61 = vadd.f32 %v230_v4, %v125_v44 }
  0xcc   :  { %3285 = vst [vmem:[#allocation62_spill] sm:$0xff] %v2595_v6 }
  0xcd   :  { %3286 = vst [vmem:[#allocation63_spill] sm:$0xff] %v2598_v2 }
  0xce   :  { %3287 = vst [vmem:[#allocation64_spill] sm:$0xff] %v2600_v61  ;;  %v1774_v3 = vpop.eup %1773 }
  0xd1   :  { %v271_v11 = vpop.f32.mrf.mxu2 }
  0xd2   :  { %v2602_v54 = vadd.f32 %v271_v11, %v126_v18  ;;  %v312_v0 = vpop.f32.mrf.mxu3  ;;  %v233_v60 = vpop.f32.mrf.mxu1  ;;  %v516_v11 = vadd.f32 1.0, %v1774_v3 }
  0xd3   :  { %v2605_v63 = vadd.f32 %v312_v0, %v2568_v5  ;;  %v2607_v59 = vadd.f32 %v233_v60, %v125_v44 }
  0xd4   :  { %3288 = vst [vmem:[#allocation65_spill] sm:$0xff] %v2602_v54  ;;  %1775 = vrcp.f32 %v516_v11  ;;  %vm524_vm2 = vweird.f32 %v516_v11 }
  0xd5   :  { %3289 = vst [vmem:[#allocation66_spill] sm:$0xff] %v2605_v63 }
  0xd6   :  { %3290 = vst [vmem:[#allocation67_spill] sm:$0xff] %v2607_v59 }
  0xd9   :  { %v274_v6 = vpop.f32.mrf.mxu2 }
  0xda   :  { %v2609_v1 = vadd.f32 %v274_v6, %v126_v18  ;;  %v315_v4 = vpop.f32.mrf.mxu3  ;;  %v236_v61 = vpop.f32.mrf.mxu1 }
  0xdb   :  { %v2612_v12 = vadd.f32 %v315_v4, %v2568_v5  ;;  %v2614_v8 = vadd.f32 %v236_v61, %v125_v44  ;;  %v257_v4 = vadd.f32 %v2560_v62, %v126_v18  ;;  %v1776_v61 = vpop.eup %1775 }
  0xdc   :  { %3291 = vst [vmem:[#allocation68_spill] sm:$0xff] %v2609_v1  ;;  %v520_v44 = vmul.f32 %v1776_v61, %v516_v11  ;;  %vm525_vm1 = vweird.f32 %v1776_v61 }
  0xdd   :  { %3292 = vst [vmem:[#allocation69_spill] sm:$0xff] %v2612_v12  ;;  %vm526_vm4 = vmor %vm524_vm2, %vm525_vm1 }
  0xde   :  { %3293 = vst [vmem:[#allocation70_spill] sm:$0xff] %v2614_v8 }
  0xe1   :  { %v277_v7 = vpop.f32.mrf.mxu2 }
  0xe2   :  { %v2616_v54 = vadd.f32 %v277_v7, %v126_v18  ;;  %v318_v0 = vpop.f32.mrf.mxu3  ;;  %v460_v60 = vpop.f32.mrf.mxu1  ;;  %v521_v7 = vsub.f32 1.0, %v520_v44 }
  0xe3   :  { %v2619_v57 = vadd.f32 %v318_v0, %v2568_v5  ;;  %v504_v6 = vadd.f32 %v460_v60, %v216_v10  ;;  %v298_v0 = vadd.f32 %v2562_v58, %v2568_v5 }
  0xe4   :  { %3294 = vst [vmem:[#allocation71_spill] sm:$0xff] %v2616_v54 }
  0xe5   :  { %3295 = vst [vmem:[#allocation72_spill] sm:$0xff] %v2619_v57  ;;  %v1732_v1 = vmul.f32 -1.442695, %v504_v6 }
  0xe7   :  { %1777 = vpow2.f32 %v1732_v1  ;;  %v522_v1 = vmul.f32 %v1776_v61, %v521_v7 }
  0xe9   :  { %v480_v12 = vpop.f32.mrf.mxu2 }
  0xea   :  { %v505_v8 = vadd.f32 %v480_v12, %v257_v4  ;;  %v500_v54 = vpop.f32.mrf.mxu3  ;;  %v523_v12 = vadd.f32 %v1776_v61, %v522_v1 }
  0xeb   :  { %v506_v60 = vadd.f32 %v500_v54, %v298_v0 }
  0xec   :  { %v1733_v59 = vmul.f32 -1.442695, %v505_v8  ;;  %v527_v54 = vsel %vm526_vm4, %v1776_v61, %v523_v12 }
  0xed   :  { %v1778_v3 = vpop.eup %1777 }
  0xee   :  { %v517_v31 = vadd.f32 1.0, %v1778_v3  ;;  %1779 = vpow2.f32 %v1733_v59  ;;  %v530_v59 = vand.u32 2147483648, %v516_v11  ;;  %v528_v3 = vand.u32 2147483647, %v516_v11 }
  0xf0   :  { %1781 = vrcp.f32 %v517_v31  ;;  %v545_v8 = vand.u32 2147483648, %v517_v31  ;;  %v543_v44 = vand.u32 2147483647, %v517_v31  ;;  %vm539_vm5 = vweird.f32 %v517_v31 }
  0xf1   :  { %v531_v63 = vor.u32 1.1754944e-38, %v530_v59  ;;  %vm529_vm7 = vcmp.eq.f32.partialorder %v528_v3, 8.507059e+37 }
  0xf2   :  { %v546_v0 = vor.u32 1.1754944e-38, %v545_v8  ;;  %vm544_vm8 = vcmp.eq.f32.partialorder %v543_v44, 8.507059e+37 }
  0xf4   :  { %v1780_v10 = vpop.eup %1779 }
  0xf5   :  { %v518_v6 = vadd.f32 1.0, %v1780_v10 }
  0xf6   :  { %v1782_v57 = vpop.eup %1781 }
  0xf7   :  { %v535_v62 = vmul.f32 %v1782_v57, %v517_v31  ;;  %1783 = vrcp.f32 %v518_v6  ;;  %vm540_vm3 = vweird.f32 %v1782_v57  ;;  %v560_v61 = vand.u32 2147483648, %v518_v6 }
  0xf8   :  { %1785 = vtanh.f32 %v506_v60  ;;  %vm541_vm6 = vmor %vm539_vm5, %vm540_vm3  ;;  %vm554_vm10 = vweird.f32 %v518_v6  ;;  %v558_v31 = vand.u32 2147483647, %v518_v6 }
  0xf9   :  { %v536_v18 = vsub.f32 1.0, %v535_v62  ;;  %v532_v62 = vsel %vm529_vm7, %v531_v63, %v527_v54  ;;  %v561_v8 = vor.u32 1.1754944e-38, %v560_v61  ;;  %v3325_v54 = vld [vmem:[#allocation52_spill] sm:$0xff] }
  0xfa   :  { %vm559_vm12 = vcmp.eq.f32.partialorder %v558_v31, 8.507059e+37 }
  0xfb   :  { %v537_v4 = vmul.f32 %v1782_v57, %v536_v18 }
  0xfd   :  { %v1784_v58 = vpop.eup %1783  ;;  %v538_v5 = vadd.f32 %v1782_v57, %v537_v4 }
  0xfe   :  { %v1786_v7 = vpop.eup %1785  ;;  %v550_v10 = vmul.f32 %v1784_v58, %v518_v6  ;;  %vm555_vm9 = vweird.f32 %v1784_v58 }
  0xff   :  { %v542_v60 = vsel %vm541_vm6, %v1782_v57, %v538_v5  ;;  %v566_v11 = vmul.f32 %v1786_v7, %v532_v62  ;;  %vm556_vm11 = vmor %vm554_vm10, %vm555_vm9 }
 0x100   :  { %v551_v1 = vsub.f32 1.0, %v550_v10  ;;  %v547_v2 = vsel %vm544_vm8, %v546_v0, %v542_v60 }
 0x101   :  { %v565_v18 = vmul.f32 0.0, %v547_v2 }
 0x102   :  { %v552_v53 = vmul.f32 %v1784_v58, %v551_v1 }
 0x103   :  { %v2624_v56 = vadd.f32 %v566_v11, %v565_v18 }
 0x104   :  { %v553_v55 = vadd.f32 %v1784_v58, %v552_v53 }
 0x105   :  { %1787 = vtanh.f32 %v2624_v56 }
 0x106   :  { %v557_v12 = vsel %vm556_vm11, %v1784_v58, %v553_v55 }
 0x107   :  { %v562_v59 = vsel %vm559_vm12, %v561_v8, %v557_v12 }
 0x10b   :  { %v1788_v57 = vpop.eup %1787 }
 0x10c   :  { %v569_v63 = vmul.f32 %v1788_v57, %v562_v59 }
 0x10e   :  { %591 = vmatmul.f32.vlgmr.msra.gmra.mxu0 %v569_v63  ;;  %611 = vmatmul.f32.vlgmr.msrb.gmra.mxu1 %v569_v63 }
 0x10f   :  { %631 = vmatmul.f32.vlgmr.msrb.gmra.mxu2 %v569_v63  ;;  %651 = vmatmul.f32.vlgmr.msrb.gmra.mxu3 %v569_v63 }
 0x110   :  { %879 = vmatpush.msra.mxu0 %v2187_v9  ;;  %899 = vmatpush.msrb.mxu1 %v2193_v13  ;;  %v3296_v9 = vld [vmem:[#allocation21_spill] sm:$0xff]  ;;  %v3297_v13 = vld [vmem:[#allocation22_spill] sm:$0xff] }
 0x111   :  { %919 = vmatpush.msrb.mxu2 %v2198_v15  ;;  %939 = vmatpush.msrb.mxu3 %v2202_v17  ;;  %v3299_v15 = vld [vmem:[#allocation20_spill] sm:$0xff] }
 0x112   :  { %880 = vmatpush.msra.mxu0 %v2196_v14  ;;  %900 = vmatpush.msrb.mxu1 %v2200_v16  ;;  %v3298_v14 = vld [vmem:[#allocation19_spill] sm:$0xff]  ;;  %v3300_v16 = vld [vmem:[#allocation26_spill] sm:$0xff]  ;;  %v3301_v17 = vld [vmem:[#allocation28_spill] sm:$0xff] }
 0x113   :  { %920 = vmatpush.msrb.mxu2 %v2215_v21  ;;  %940 = vmatpush.msrb.mxu3 %v2217_v22  ;;  %v3304_v21 = vld [vmem:[#allocation30_spill] sm:$0xff]  ;;  %v3305_v22 = vld [vmem:[#allocation32_spill] sm:$0xff] }
 0x114   :  { %881 = vmatpush.msra.mxu0 %v2208_v19  ;;  %901 = vmatpush.msrb.mxu1 %v2210_v20  ;;  %v3302_v19 = vld [vmem:[#allocation23_spill] sm:$0xff]  ;;  %v3303_v20 = vld [vmem:[#allocation25_spill] sm:$0xff] }
 0x115   :  { %921 = vmatpush.msrb.mxu2 %v2227_v25  ;;  %941 = vmatpush.msrb.mxu3 %v2229_v26  ;;  %v3308_v25 = vld [vmem:[#allocation34_spill] sm:$0xff] }
 0x116   :  { %882 = vmatpush.msra.mxu0 %v2221_v23  ;;  %902 = vmatpush.msrb.mxu1 %v2223_v24  ;;  %v3306_v23 = vld [vmem:[#allocation24_spill] sm:$0xff]  ;;  %v3307_v24 = vld [vmem:[#allocation29_spill] sm:$0xff]  ;;  %v3309_v26 = vld [vmem:[#allocation38_spill] sm:$0xff] }
 0x117   :  { %922 = vmatpush.msrb.mxu2 %v2239_v29  ;;  %942 = vmatpush.msrb.mxu3 %v2241_v30  ;;  %v3312_v29 = vld [vmem:[#allocation37_spill] sm:$0xff]  ;;  %v3313_v30 = vld [vmem:[#allocation40_spill] sm:$0xff] }
 0x118   :  { %883 = vmatpush.msra.mxu0 %v2231_v27  ;;  %903 = vmatpush.msrb.mxu1 %v2234_v28  ;;  %v3310_v27 = vld [vmem:[#allocation27_spill] sm:$0xff]  ;;  %v3311_v28 = vld [vmem:[#allocation33_spill] sm:$0xff] }
 0x119   :  { %923 = vmatpush.msrb.mxu2 %v2255_v34  ;;  %943 = vmatpush.msrb.mxu3 %v2257_v35  ;;  %v3316_v34 = vld [vmem:[#allocation41_spill] sm:$0xff]  ;;  %v3317_v35 = vld [vmem:[#allocation42_spill] sm:$0xff] }
 0x11a   :  { %884 = vmatpush.msra.mxu0 %v2247_v32  ;;  %904 = vmatpush.msrb.mxu1 %v2250_v33  ;;  %v3314_v32 = vld [vmem:[#allocation31_spill] sm:$0xff]  ;;  %v3315_v33 = vld [vmem:[#allocation36_spill] sm:$0xff] }
 0x11b   :  { %924 = vmatpush.msrb.mxu2 %v2267_v38  ;;  %944 = vmatpush.msrb.mxu3 %v2269_v39  ;;  %v3320_v38 = vld [vmem:[#allocation43_spill] sm:$0xff]  ;;  %v3321_v39 = vld [vmem:[#allocation44_spill] sm:$0xff] }
 0x11c   :  { %885 = vmatpush.msra.mxu0 %v2261_v36  ;;  %905 = vmatpush.msrb.mxu1 %v2263_v37  ;;  %v3318_v36 = vld [vmem:[#allocation35_spill] sm:$0xff] }
 0x11d   :  { %925 = vmatpush.msrb.mxu2 %v2279_v42  ;;  %945 = vmatpush.msrb.mxu3 %v2281_v43  ;;  %v3319_v37 = vld [vmem:[#allocation39_spill] sm:$0xff]  ;;  %v3322_v42 = vld [vmem:[#allocation48_spill] sm:$0xff] }
 0x11e   :  { %886 = vmatpush.msra.mxu0 %v2271_v40  ;;  %906 = vmatpush.msrb.mxu1 %v2274_v41 }
 0x11f   :  { %926 = vmatpush.msrb.mxu2 %v2295_v47  ;;  %946 = vmatpush.msrb.mxu3 %v2297_v48 }
 0x120   :  { %887 = vmatpush.msra.mxu0 %v2287_v45  ;;  %907 = vmatpush.msrb.mxu1 %v2290_v46  ;;  %v3323_v45 = vld [vmem:[#allocation50_spill] sm:$0xff] }
 0x121   :  { %927 = vmatpush.msrb.mxu2 %v2307_v51  ;;  %947 = vmatpush.msrb.mxu3 %v2309_v52 }
 0x122   :  { %888 = vmatpush.msra.mxu0 %v2301_v49  ;;  %908 = vmatpush.msrb.mxu1 %v2303_v50  ;;  %v3324_v50 = vld [vmem:[#allocation51_spill] sm:$0xff] }
 0x123   :  { %928 = vmatpush.msrb.mxu2 %v3296_v9  ;;  %948 = vmatpush.msrb.mxu3 %v3297_v13 }
 0x124   :  { %889 = vmatpush.msra.mxu0 %v3298_v14  ;;  %909 = vmatpush.msrb.mxu1 %v3299_v15 }
 0x125   :  { %929 = vmatpush.msrb.mxu2 %v3300_v16  ;;  %949 = vmatpush.msrb.mxu3 %v3301_v17 }
 0x126   :  { %890 = vmatpush.msra.mxu0 %v3302_v19  ;;  %910 = vmatpush.msrb.mxu1 %v3303_v20 }
 0x127   :  { %930 = vmatpush.msrb.mxu2 %v3304_v21  ;;  %950 = vmatpush.msrb.mxu3 %v3305_v22 }
 0x128   :  { %891 = vmatpush.msra.mxu0 %v3306_v23  ;;  %911 = vmatpush.msrb.mxu1 %v3307_v24 }
 0x129   :  { %931 = vmatpush.msrb.mxu2 %v3308_v25  ;;  %951 = vmatpush.msrb.mxu3 %v3309_v26 }
 0x12a   :  { %892 = vmatpush.msra.mxu0 %v3310_v27  ;;  %912 = vmatpush.msrb.mxu1 %v3311_v28 }
 0x12b   :  { %932 = vmatpush.msrb.mxu2 %v3312_v29  ;;  %952 = vmatpush.msrb.mxu3 %v3313_v30 }
 0x12c   :  { %893 = vmatpush.msra.mxu0 %v3314_v32  ;;  %913 = vmatpush.msrb.mxu1 %v3315_v33 }
 0x12d   :  { %933 = vmatpush.msrb.mxu2 %v3316_v34  ;;  %953 = vmatpush.msrb.mxu3 %v3317_v35 }
 0x12e   :  { %894 = vmatpush.msra.mxu0 %v3318_v36  ;;  %914 = vmatpush.msrb.mxu1 %v3319_v37 }
 0x12f   :  { %934 = vmatpush.msrb.mxu2 %v3320_v38  ;;  %954 = vmatpush.msrb.mxu3 %v3321_v39 }
 0x18b   :  { %v592_v40 = vpop.f32.mrf.mxu0  ;;  %v612_v41 = vpop.f32.mrf.mxu1 }
 0x18c   :  { %v655_v43 = vadd.f32 %v592_v40, %v3322_v42  ;;  %v656_v46 = vadd.f32 %v612_v41, %v3323_v45 }
 0x18e   :  { %v1734_v47 = vmul.f32 -1.442695, %v655_v43  ;;  %v1735_v48 = vmul.f32 -1.442695, %v656_v46  ;;  %v2702_v46 = vld [vmem:[#allocation10 + $0x1e8] sm:$0xff] }
 0x190   :  { %1789 = vpow2.f32 %v1734_v47  ;;  %v2705_v47 = vld [vmem:[#allocation10 + $0x1f0] sm:$0xff] }
 0x191   :  { %1791 = vpow2.f32 %v1735_v48  ;;  %v2708_v48 = vld [vmem:[#allocation10 + $0x1f8] sm:$0xff] }
 0x192   :  { %v632_v49 = vpop.f32.mrf.mxu2  ;;  %v652_v4 = vpop.f32.mrf.mxu3 }
 0x193   :  { %v657_v51 = vadd.f32 %v632_v49, %v3324_v50  ;;  %v658_v5 = vadd.f32 %v652_v4, %v3325_v54  ;;  %v2711_v49 = vld [vmem:[#allocation10 + $0x1c0] sm:$0xff]  ;;  %v2714_v50 = vld [vmem:[#allocation10 + $0x1c8] sm:$0xff] }
 0x194   :  { %v2735_v4 = vld [vmem:[#allocation10 + $0x180] sm:$0xff] }
 0x195   :  { %v1736_v52 = vmul.f32 -1.442695, %v657_v51  ;;  %v2717_v51 = vld [vmem:[#allocation10 + $0x1d0] sm:$0xff]  ;;  %v2747_v54 = vld [vmem:[#allocation10 + $0x160] sm:$0xff] }
 0x196   :  { %v1790_v53 = vpop.eup %1789 }
 0x197   :  { %v1792_v55 = vpop.eup %1791  ;;  %v668_v2 = vadd.f32 1.0, %v1790_v53  ;;  %1793 = vpow2.f32 %v1736_v52  ;;  %v2720_v52 = vld [vmem:[#allocation10 + $0x1d8] sm:$0xff]  ;;  %v2723_v53 = vld [vmem:[#allocation10 + $0x1a0] sm:$0xff] }
 0x198   :  { %v669_v6 = vadd.f32 1.0, %v1792_v55  ;;  %v2726_v55 = vld [vmem:[#allocation10 + $0x1a8] sm:$0xff] }
 0x199   :  { %1795 = vrcp.f32 %v668_v2  ;;  %v682_v62 = vand.u32 2147483648, %v668_v2  ;;  %v680_v61 = vand.u32 2147483647, %v668_v2  ;;  %vm676_vm15 = vweird.f32 %v668_v2 }
 0x19a   :  { %1797 = vrcp.f32 %v669_v6  ;;  %v697_v18 = vand.u32 2147483648, %v669_v6  ;;  %v695_v12 = vand.u32 2147483647, %v669_v6  ;;  %vm691_vm0 = vweird.f32 %v669_v6 }
 0x19b   :  { %v683_v63 = vor.u32 1.1754944e-38, %v682_v62  ;;  %vm681_vm3 = vcmp.eq.f32.partialorder %v680_v61, 8.507059e+37  ;;  %v2768_v62 = vld [vmem:[#allocation10 + $0x158] sm:$0xff]  ;;  %v2777_v61 = vld [vmem:[#allocation10 + $0x130] sm:$0xff] }
 0x19c   :  { %v698_v13 = vor.u32 1.1754944e-38, %v697_v18  ;;  %vm696_vm4 = vcmp.eq.f32.partialorder %v695_v12, 8.507059e+37  ;;  %v2771_v18 = vld [vmem:[#allocation10 + $0x120] sm:$0xff] }
 0x19d   :  { %v1794_v3 = vpop.eup %1793  ;;  %v2783_v12 = vld [vmem:[#allocation10 + $0x100] sm:$0xff] }
 0x19e   :  { %v670_v44 = vadd.f32 1.0, %v1794_v3  ;;  %v2738_v3 = vld [vmem:[#allocation10 + $0x188] sm:$0xff] }
 0x19f   :  { %v1796_v58 = vpop.eup %1795 }
 0x1a0   :  { %v1798_v7 = vpop.eup %1797  ;;  %v672_v0 = vmul.f32 %v1796_v58, %v668_v2  ;;  %1799 = vrcp.f32 %v670_v44  ;;  %vm677_vm13 = vweird.f32 %v1796_v58  ;;  %v712_v32 = vand.u32 2147483648, %v670_v44  ;;  %v2729_v2 = vld [vmem:[#allocation10 + $0x1b0] sm:$0xff] }
 0x1a1   :  { %v687_v10 = vmul.f32 %v1798_v7, %v669_v6  ;;  %1801 = vtanh.f32 %v658_v5  ;;  %vm692_vm14 = vweird.f32 %v1798_v7  ;;  %vm678_vm1 = vmor %vm676_vm15, %vm677_vm13  ;;  %vm706_vm6 = vweird.f32 %v670_v44  ;;  %v2732_v6 = vld [vmem:[#allocation10 + $0x1b8] sm:$0xff]  ;;  %v2750_v5 = vld [vmem:[#allocation10 + $0x168] sm:$0xff] }
 0x1a2   :  { %v673_v60 = vsub.f32 1.0, %v672_v0  ;;  %vm693_vm2 = vmor %vm691_vm0, %vm692_vm14  ;;  %v710_v36 = vand.u32 2147483647, %v670_v44  ;;  %v713_v41 = vor.u32 1.1754944e-38, %v712_v32  ;;  %v2756_v0 = vld [vmem:[#allocation10 + $0x178] sm:$0xff]  ;;  %v2834_v32 = vld [vmem:[#allocation10 + $0x88] sm:$0xff] }
 0x1a3   :  { %v688_v1 = vsub.f32 1.0, %v687_v10  ;;  %v2759_v10 = vld [vmem:[#allocation10 + $0x140] sm:$0xff]  ;;  %3333 = vst [vmem:[#allocation25_spill] sm:$0xff] %v2834_v32 }
 0x1a4   :  { %v674_v11 = vmul.f32 %v1796_v58, %v673_v60  ;;  %vm711_vm8 = vcmp.eq.f32.partialorder %v710_v36, 8.507059e+37  ;;  %v2762_v60 = vld [vmem:[#allocation10 + $0x148] sm:$0xff]  ;;  %v2837_v36 = vld [vmem:[#allocation10 + $0x90] sm:$0xff] }
 0x1a5   :  { %v689_v31 = vmul.f32 %v1798_v7, %v688_v1  ;;  %v2765_v1 = vld [vmem:[#allocation10 + $0x150] sm:$0xff]  ;;  %3334 = vst [vmem:[#allocation30_spill] sm:$0xff] %v2837_v36 }
 0x1a6   :  { %v1800_v8 = vpop.eup %1799  ;;  %v675_v57 = vadd.f32 %v1796_v58, %v674_v11  ;;  %v2774_v11 = vld [vmem:[#allocation10 + $0x128] sm:$0xff] }
 0x1a7   :  { %v702_v59 = vmul.f32 %v1800_v8, %v670_v44  ;;  %v690_v9 = vadd.f32 %v1798_v7, %v689_v31  ;;  %v1802_v15 = vpop.eup %1801  ;;  %vm707_vm5 = vweird.f32 %v1800_v8  ;;  %v2741_v44 = vld [vmem:[#allocation10 + $0x190] sm:$0xff]  ;;  %v2780_v31 = vld [vmem:[#allocation10 + $0x138] sm:$0xff] }
 0x1a8   :  { %v679_v14 = vsel %vm678_vm1, %v1796_v58, %v675_v57  ;;  %vm708_vm7 = vmor %vm706_vm6, %vm707_vm5  ;;  %v2744_v58 = vld [vmem:[#allocation10 + $0x198] sm:$0xff]  ;;  %v2789_v57 = vld [vmem:[#allocation10 + $0x110] sm:$0xff] }
 0x1a9   :  { %v703_v16 = vsub.f32 1.0, %v702_v59  ;;  %v684_v17 = vsel %vm681_vm3, %v683_v63, %v679_v14  ;;  %v694_v19 = vsel %vm693_vm2, %v1798_v7, %v690_v9  ;;  %v2753_v7 = vld [vmem:[#allocation10 + $0x170] sm:$0xff]  ;;  %v2792_v59 = vld [vmem:[#allocation10 + $0x118] sm:$0xff]  ;;  %v2795_v63 = vld [vmem:[#allocation10 + $0xe0] sm:$0xff] }
 0x1aa   :  { %v699_v20 = vsel %vm696_vm4, %v698_v13, %v694_v19  ;;  %v718_v21 = vmul.f32 %v1802_v15, %v684_v17  ;;  %v2798_v9 = vld [vmem:[#allocation10 + $0xe8] sm:$0xff]  ;;  %v2801_v13 = vld [vmem:[#allocation10 + $0xf0] sm:$0xff]  ;;  %v2804_v14 = vld [vmem:[#allocation10 + $0xf8] sm:$0xff] }
 0x1ab   :  { %v717_v23 = vmul.f32 %v699_v20, %v2624_v56  ;;  %v704_v24 = vmul.f32 %v1800_v8, %v703_v16  ;;  %v2699_v56 = vld [vmem:[#allocation10 + $0x1e0] sm:$0xff]  ;;  %v2810_v16 = vld [vmem:[#allocation10 + $0xc8] sm:$0xff]  ;;  %v2813_v17 = vld [vmem:[#allocation10 + $0xd0] sm:$0xff] }
 0x1ac   :  { %v2807_v15 = vld [vmem:[#allocation10 + $0xc0] sm:$0xff]  ;;  %3326 = vst [vmem:[#allocation21_spill] sm:$0xff] %v2813_v17  ;;  %v2816_v19 = vld [vmem:[#allocation10 + $0xd8] sm:$0xff] }
 0x1ad   :  { %v2696_v27 = vadd.f32 %v718_v21, %v717_v23  ;;  %v705_v28 = vadd.f32 %v1800_v8, %v704_v24  ;;  %3327 = vst [vmem:[#allocation22_spill] sm:$0xff] %v2816_v19  ;;  %v2819_v20 = vld [vmem:[#allocation10 + $0xa0] sm:$0xff]  ;;  %v2822_v21 = vld [vmem:[#allocation10 + $0xa8] sm:$0xff]  ;;  %v2825_v23 = vld [vmem:[#allocation10 + $0xb0] sm:$0xff] }
 0x1ae   :  { %3328 = vst [vmem:[#allocation19_spill] sm:$0xff] %v2819_v20  ;;  %v2828_v24 = vld [vmem:[#allocation10 + $0xb8] sm:$0xff] }
 0x1af   :  { %1803 = vtanh.f32 %v2696_v27  ;;  %v709_v40 = vsel %vm708_vm7, %v1800_v8, %v705_v28  ;;  %v2786_v8 = vld [vmem:[#allocation10 + $0x108] sm:$0xff]  ;;  %3329 = vst [vmem:[#allocation20_spill] sm:$0xff] %v2822_v21  ;;  %v2831_v28 = vld [vmem:[#allocation10 + $0x80] sm:$0xff] }
 0x1b0   :  { %v714_v43 = vsel %vm711_vm8, %v713_v41, %v709_v40  ;;  %3330 = vst [vmem:[#allocation26_spill] sm:$0xff] %v2825_v23  ;;  %v2841_v40 = vld [vmem:[#allocation10 + $0x60] sm:$0xff]  ;;  %v2844_v41 = vld [vmem:[#allocation10 + $0x68] sm:$0xff] }
 0x1b1   :  { %3331 = vst [vmem:[#allocation28_spill] sm:$0xff] %v2828_v24 }
 0x1b2   :  { %3332 = vst [vmem:[#allocation23_spill] sm:$0xff] %v2831_v28 }
 0x1b3   :  { %3335 = vst [vmem:[#allocation32_spill] sm:$0xff] %v2841_v40 }
 0x1b4   :  { %3336 = vst [vmem:[#allocation24_spill] sm:$0xff] %v2844_v41 }
 0x1b5   :  { %v1804_v42 = vpop.eup %1803 }
 0x1b6   :  { %v721_v45 = vmul.f32 %v1804_v42, %v714_v43  ;;  %v2849_v42 = vld [vmem:[#allocation10 + $0x40] sm:$0xff]  ;;  %v2852_v43 = vld [vmem:[#allocation10 + $0x48] sm:$0xff] }
 0x1b7   :  { %3337 = vst [vmem:[#allocation29_spill] sm:$0xff] %v2849_v42 }
 0x1b8   :  { %743 = vmatmul.f32.vlgmr.msrb.gmra.mxu0 %v721_v45  ;;  %763 = vmatmul.f32.vlgmr.msra.gmra.mxu1 %v721_v45  ;;  %3338 = vst [vmem:[#allocation34_spill] sm:$0xff] %v2852_v43 }
 0x1b9   :  { %783 = vmatmul.f32.vlgmr.msra.gmra.mxu2 %v721_v45  ;;  %803 = vmatmul.f32.vlgmr.msra.gmra.mxu3 %v721_v45 }
 0x1ba   :  { %1031 = vmatpush.msrb.mxu0 %v2699_v56  ;;  %1051 = vmatpush.msra.mxu1 %v2702_v46 }
 0x1bb   :  { %1071 = vmatpush.msra.mxu2 %v2705_v47  ;;  %1091 = vmatpush.msra.mxu3 %v2708_v48 }
 0x1bc   :  { %1032 = vmatpush.msrb.mxu0 %v2711_v49  ;;  %1052 = vmatpush.msra.mxu1 %v2714_v50 }
 0x1bd   :  { %1072 = vmatpush.msra.mxu2 %v2717_v51  ;;  %1092 = vmatpush.msra.mxu3 %v2720_v52 }
 0x1be   :  { %1033 = vmatpush.msrb.mxu0 %v2723_v53  ;;  %1053 = vmatpush.msra.mxu1 %v2726_v55 }
 0x1bf   :  { %1073 = vmatpush.msra.mxu2 %v2729_v2  ;;  %1093 = vmatpush.msra.mxu3 %v2732_v6 }
 0x1c0   :  { %1034 = vmatpush.msrb.mxu0 %v2735_v4  ;;  %1054 = vmatpush.msra.mxu1 %v2738_v3 }
 0x1c1   :  { %1074 = vmatpush.msra.mxu2 %v2741_v44  ;;  %1094 = vmatpush.msra.mxu3 %v2744_v58 }
 0x1c2   :  { %1035 = vmatpush.msrb.mxu0 %v2747_v54  ;;  %1055 = vmatpush.msra.mxu1 %v2750_v5 }
 0x1c3   :  { %1075 = vmatpush.msra.mxu2 %v2753_v7  ;;  %1095 = vmatpush.msra.mxu3 %v2756_v0 }
 0x1c4   :  { %1036 = vmatpush.msrb.mxu0 %v2759_v10  ;;  %1056 = vmatpush.msra.mxu1 %v2762_v60 }
 0x1c5   :  { %1076 = vmatpush.msra.mxu2 %v2765_v1  ;;  %1096 = vmatpush.msra.mxu3 %v2768_v62 }
 0x1c6   :  { %1037 = vmatpush.msrb.mxu0 %v2771_v18  ;;  %1057 = vmatpush.msra.mxu1 %v2774_v11 }
 0x1c7   :  { %1077 = vmatpush.msra.mxu2 %v2777_v61  ;;  %1097 = vmatpush.msra.mxu3 %v2780_v31 }
 0x1c8   :  { %1038 = vmatpush.msrb.mxu0 %v2783_v12  ;;  %1058 = vmatpush.msra.mxu1 %v2786_v8 }
 0x1c9   :  { %1078 = vmatpush.msra.mxu2 %v2789_v57  ;;  %1098 = vmatpush.msra.mxu3 %v2792_v59 }
 0x1ca   :  { %1039 = vmatpush.msrb.mxu0 %v2795_v63  ;;  %1059 = vmatpush.msra.mxu1 %v2798_v9 }
 0x1cb   :  { %1079 = vmatpush.msra.mxu2 %v2801_v13  ;;  %1099 = vmatpush.msra.mxu3 %v2804_v14 }
 0x1cc   :  { %1040 = vmatpush.msrb.mxu0 %v2807_v15  ;;  %1060 = vmatpush.msra.mxu1 %v2810_v16 }
 0x1cd   :  { %1080 = vmatpush.msra.mxu2 %v2813_v17  ;;  %1100 = vmatpush.msra.mxu3 %v2816_v19 }
 0x1ce   :  { %1041 = vmatpush.msrb.mxu0 %v2819_v20  ;;  %1061 = vmatpush.msra.mxu1 %v2822_v21 }
 0x1cf   :  { %1081 = vmatpush.msra.mxu2 %v2825_v23  ;;  %1101 = vmatpush.msra.mxu3 %v2828_v24 }
 0x1d0   :  { %1042 = vmatpush.msrb.mxu0 %v2831_v28  ;;  %1062 = vmatpush.msra.mxu1 %v2834_v32 }
 0x1d1   :  { %1082 = vmatpush.msra.mxu2 %v2837_v36  ;;  %1102 = vmatpush.msra.mxu3 %v3305_v22  ;;  %v2857_v22 = vld [vmem:[#allocation10 + $0x20] sm:$0xff] }
 0x1d2   :  { %1043 = vmatpush.msrb.mxu0 %v2841_v40  ;;  %1063 = vmatpush.msra.mxu1 %v2844_v41  ;;  %3339 = vst [vmem:[#allocation38_spill] sm:$0xff] %v2857_v22 }
 0x1d3   :  { %1083 = vmatpush.msra.mxu2 %v3308_v25  ;;  %1103 = vmatpush.msra.mxu3 %v3309_v26  ;;  %v2863_v25 = vld [vmem:[#allocation10] sm:$0xff] }
 0x1d4   :  { %1044 = vmatpush.msrb.mxu0 %v2849_v42  ;;  %1064 = vmatpush.msra.mxu1 %v2852_v43  ;;  %3340 = vst [vmem:[#allocation27_spill] sm:$0xff] %v2863_v25  ;;  %v3343_v42 = vld [vmem:[#allocation55_spill] sm:$0xff] }
 0x1d5   :  { %1084 = vmatpush.msra.mxu2 %v3312_v29  ;;  %1104 = vmatpush.msra.mxu3 %v3313_v30  ;;  %v3341_v30 = vld [vmem:[#allocation49_spill] sm:$0xff] }
 0x1d6   :  { %1045 = vmatpush.msrb.mxu0 %v2857_v22  ;;  %1065 = vmatpush.msra.mxu1 %v3315_v33  ;;  %v3342_v22 = vld [vmem:[#allocation54_spill] sm:$0xff] }
 0x1d7   :  { %1085 = vmatpush.msra.mxu2 %v3316_v34  ;;  %1105 = vmatpush.msra.mxu3 %v3317_v35 }
 0x1d8   :  { %1046 = vmatpush.msrb.mxu0 %v2863_v25  ;;  %1066 = vmatpush.msra.mxu1 %v3319_v37 }
 0x1d9   :  { %1086 = vmatpush.msra.mxu2 %v3320_v38  ;;  %1106 = vmatpush.msra.mxu3 %v3321_v39 }
 0x235   :  { %v744_v26 = vpop.f32.mrf.mxu0  ;;  %v764_v29 = vpop.f32.mrf.mxu1 }
 0x236   :  { %v807_v45 = vadd.f32 %v744_v26, %v3341_v30  ;;  %v808_v33 = vadd.f32 %v764_v29, %v3342_v22  ;;  %v3344_v22 = vld [vmem:[#allocation56_spill] sm:$0xff] }
 0x238   :  { %v1737_v43 = vmul.f32 -1.442695, %v807_v45  ;;  %v1738_v34 = vmul.f32 -1.442695, %v808_v33 }
 0x23a   :  { %1805 = vpow2.f32 %v1737_v43 }
 0x23b   :  { %1807 = vpow2.f32 %v1738_v34 }
 0x23c   :  { %v784_v35 = vpop.f32.mrf.mxu2  ;;  %v804_v39 = vpop.f32.mrf.mxu3 }
 0x23d   :  { %v809_v41 = vadd.f32 %v784_v35, %v3343_v42  ;;  %v810_v29 = vadd.f32 %v804_v39, %v3344_v22 }
 0x23f   :  { %v1739_v25 = vmul.f32 -1.442695, %v809_v41 }
 0x240   :  { %v1806_v40 = vpop.eup %1805 }
 0x241   :  { %v1808_v37 = vpop.eup %1807  ;;  %v820_v36 = vadd.f32 1.0, %v1806_v40  ;;  %1809 = vpow2.f32 %v1739_v25 }
 0x242   :  { %v821_v38 = vadd.f32 1.0, %v1808_v37 }
 0x243   :  { %1811 = vrcp.f32 %v820_v36  ;;  %v834_v41 = vand.u32 2147483648, %v820_v36  ;;  %v832_v25 = vand.u32 2147483647, %v820_v36  ;;  %vm828_vm11 = vweird.f32 %v820_v36 }
 0x244   :  { %1813 = vrcp.f32 %v821_v38  ;;  %v849_v35 = vand.u32 2147483648, %v821_v38  ;;  %v847_v28 = vand.u32 2147483647, %v821_v38  ;;  %vm843_vm12 = vweird.f32 %v821_v38 }
 0x245   :  { %v835_v22 = vor.u32 1.1754944e-38, %v834_v41  ;;  %vm833_vm15 = vcmp.eq.f32.partialorder %v832_v25, 8.507059e+37 }
 0x246   :  { %vm848_vm0 = vcmp.eq.f32.partialorder %v847_v28, 8.507059e+37 }
 0x247   :  { %v1810_v32 = vpop.eup %1809 }
 0x248   :  { %v822_v26 = vadd.f32 1.0, %v1810_v32 }
 0x249   :  { %v1812_v30 = vpop.eup %1811 }
 0x24a   :  { %v1814_v45 = vpop.eup %1813  ;;  %v824_v43 = vmul.f32 %v1812_v30, %v820_v36  ;;  %1815 = vrcp.f32 %v822_v26  ;;  %vm829_vm9 = vweird.f32 %v1812_v30  ;;  %v864_v41 = vand.u32 2147483648, %v822_v26 }
 0x24b   :  { %v839_v33 = vmul.f32 %v1814_v45, %v821_v38  ;;  %1817 = vtanh.f32 %v810_v29  ;;  %vm844_vm10 = vweird.f32 %v1814_v45  ;;  %vm830_vm13 = vmor %vm828_vm11, %vm829_vm9  ;;  %vm858_vm2 = vweird.f32 %v822_v26 }
 0x24c   :  { %v825_v34 = vsub.f32 1.0, %v824_v43  ;;  %vm845_vm14 = vmor %vm843_vm12, %vm844_vm10  ;;  %v850_v43 = vor.u32 1.1754944e-38, %v849_v35  ;;  %v865_v25 = vor.u32 1.1754944e-38, %v864_v41  ;;  %v3363_v41 = vld [vmem:[#allocation38_spill] sm:$0xff] }
 0x24d   :  { %v840_v42 = vsub.f32 1.0, %v839_v33 }
 0x24e   :  { %v826_v40 = vmul.f32 %v1812_v30, %v825_v34 }
 0x24f   :  { %v841_v37 = vmul.f32 %v1814_v45, %v840_v42 }
 0x250   :  { %v1816_v24 = vpop.eup %1815  ;;  %v827_v32 = vadd.f32 %v1812_v30, %v826_v40 }
 0x251   :  { %v854_v39 = vmul.f32 %v1816_v24, %v822_v26  ;;  %v842_v23 = vadd.f32 %v1814_v45, %v841_v37  ;;  %v1818_v29 = vpop.eup %1817  ;;  %vm859_vm1 = vweird.f32 %v1816_v24  ;;  %v3352_v37 = vld [vmem:[#allocation25_spill] sm:$0xff] }
 0x252   :  { %v831_v33 = vsel %vm830_vm13, %v1812_v30, %v827_v32  ;;  %v862_v30 = vand.u32 2147483647, %v822_v26  ;;  %vm860_vm3 = vmor %vm858_vm2, %vm859_vm1  ;;  %v3350_v26 = vld [vmem:[#allocation28_spill] sm:$0xff]  ;;  %v3353_v32 = vld [vmem:[#allocation30_spill] sm:$0xff] }
 0x253   :  { %v855_v21 = vsub.f32 1.0, %v854_v39  ;;  %v836_v34 = vsel %vm833_vm15, %v835_v22, %v831_v33  ;;  %v846_v20 = vsel %vm845_vm14, %v1814_v45, %v842_v23  ;;  %v3351_v45 = vld [vmem:[#allocation23_spill] sm:$0xff]  ;;  %v2924_v39 = vld [vmem:[#allocation10 + $0x98] sm:$0xff] }
 0x254   :  { %v851_v42 = vsel %vm848_vm0, %v850_v43, %v846_v20  ;;  %v870_v19 = vmul.f32 %v1818_v29, %v836_v34  ;;  %vm863_vm4 = vcmp.eq.f32.partialorder %v862_v30, 8.507059e+37  ;;  %3354 = vst [vmem:[#allocation33_spill] sm:$0xff] %v2924_v39  ;;  %v3355_v22 = vld [vmem:[#allocation32_spill] sm:$0xff]  ;;  %v3359_v34 = vld [vmem:[#allocation29_spill] sm:$0xff]  ;;  %v2944_v30 = vld [vmem:[#allocation10 + $0x28] sm:$0xff] }
 0x255   :  { %v869_v17 = vmul.f32 %v851_v42, %v2696_v27  ;;  %v856_v40 = vmul.f32 %v1816_v24, %v855_v21  ;;  %v3345_v27 = vld [vmem:[#allocation21_spill] sm:$0xff]  ;;  %v3348_v21 = vld [vmem:[#allocation20_spill] sm:$0xff]  ;;  %v3360_v42 = vld [vmem:[#allocation34_spill] sm:$0xff]  ;;  %3364 = vst [vmem:[#allocation41_spill] sm:$0xff] %v2944_v30 }
 0x256   :  { %v3356_v43 = vld [vmem:[#allocation24_spill] sm:$0xff] }
 0x257   :  { %v2874_v36 = vadd.f32 %v870_v19, %v869_v17  ;;  %v857_v38 = vadd.f32 %v1816_v24, %v856_v40  ;;  %v3346_v17 = vld [vmem:[#allocation22_spill] sm:$0xff]  ;;  %v3347_v19 = vld [vmem:[#allocation19_spill] sm:$0xff]  ;;  %v2932_v29 = vld [vmem:[#allocation10 + $0x78] sm:$0xff] }
 0x258   :  { %v2929_v33 = vld [vmem:[#allocation10 + $0x70] sm:$0xff]  ;;  %3358 = vst [vmem:[#allocation40_spill] sm:$0xff] %v2932_v29 }
 0x259   :  { %1819 = vtanh.f32 %v2874_v36  ;;  %v861_v35 = vsel %vm860_vm3, %v1816_v24, %v857_v38  ;;  %v3349_v24 = vld [vmem:[#allocation26_spill] sm:$0xff]  ;;  %3357 = vst [vmem:[#allocation37_spill] sm:$0xff] %v2929_v33  ;;  %v2937_v40 = vld [vmem:[#allocation10 + $0x50] sm:$0xff]  ;;  %v2940_v38 = vld [vmem:[#allocation10 + $0x58] sm:$0xff] }
 0x25a   :  { %v866_v28 = vsel %vm863_vm4, %v865_v25, %v861_v35  ;;  %3361 = vst [vmem:[#allocation31_spill] sm:$0xff] %v2937_v40  ;;  %v2947_v35 = vld [vmem:[#allocation10 + $0x30] sm:$0xff]  ;;  %v2950_v25 = vld [vmem:[#allocation10 + $0x38] sm:$0xff] }
 0x25b   :  { %3362 = vst [vmem:[#allocation36_spill] sm:$0xff] %v2940_v38 }
 0x25c   :  { %3365 = vst [vmem:[#allocation42_spill] sm:$0xff] %v2947_v35 }
 0x25d   :  { %3366 = vst [vmem:[#allocation35_spill] sm:$0xff] %v2950_v25 }
 0x25f   :  { %v1820_v23 = vpop.eup %1819 }
 0x260   :  { %v873_v20 = vmul.f32 %v1820_v23, %v866_v28  ;;  %v3367_v23 = vld [vmem:[#allocation27_spill] sm:$0xff] }
 0x261   :  { %v2954_v28 = vld [vmem:[#allocation10 + $0x8] sm:$0xff] }
 0x262   :  { %895 = vmatmul.f32.vlgmr.msra.gmra.mxu0 %v873_v20  ;;  %915 = vmatmul.f32.vlgmr.msrb.gmra.mxu1 %v873_v20  ;;  %3368 = vst [vmem:[#allocation39_spill] sm:$0xff] %v2954_v28 }
 0x263   :  { %935 = vmatmul.f32.vlgmr.msrb.gmra.mxu2 %v873_v20  ;;  %955 = vmatmul.f32.vlgmr.msrb.gmra.mxu3 %v873_v20  ;;  %v2957_v20 = vld [vmem:[#allocation10 + $0x10] sm:$0xff] }
 0x264   :  { %1183 = vmatpush.msra.mxu0 %v2699_v56  ;;  %1203 = vmatpush.msrb.mxu1 %v2702_v46  ;;  %3369 = vst [vmem:[#allocation43_spill] sm:$0xff] %v2957_v20 }
 0x265   :  { %1223 = vmatpush.msrb.mxu2 %v2705_v47  ;;  %1243 = vmatpush.msrb.mxu3 %v2708_v48 }
 0x266   :  { %1184 = vmatpush.msra.mxu0 %v2711_v49  ;;  %1204 = vmatpush.msrb.mxu1 %v2714_v50 }
 0x267   :  { %1224 = vmatpush.msrb.mxu2 %v2717_v51  ;;  %1244 = vmatpush.msrb.mxu3 %v2720_v52 }
 0x268   :  { %1185 = vmatpush.msra.mxu0 %v2723_v53  ;;  %1205 = vmatpush.msrb.mxu1 %v2726_v55 }
 0x269   :  { %1225 = vmatpush.msrb.mxu2 %v2729_v2  ;;  %1245 = vmatpush.msrb.mxu3 %v2732_v6 }
 0x26a   :  { %1186 = vmatpush.msra.mxu0 %v2735_v4  ;;  %1206 = vmatpush.msrb.mxu1 %v2738_v3 }
 0x26b   :  { %1226 = vmatpush.msrb.mxu2 %v2741_v44  ;;  %1246 = vmatpush.msrb.mxu3 %v2744_v58 }
 0x26c   :  { %1187 = vmatpush.msra.mxu0 %v2747_v54  ;;  %1207 = vmatpush.msrb.mxu1 %v2750_v5 }
 0x26d   :  { %1227 = vmatpush.msrb.mxu2 %v2753_v7  ;;  %1247 = vmatpush.msrb.mxu3 %v2756_v0 }
 0x26e   :  { %1188 = vmatpush.msra.mxu0 %v2759_v10  ;;  %1208 = vmatpush.msrb.mxu1 %v2762_v60 }
 0x26f   :  { %1228 = vmatpush.msrb.mxu2 %v2765_v1  ;;  %1248 = vmatpush.msrb.mxu3 %v2768_v62 }
 0x270   :  { %1189 = vmatpush.msra.mxu0 %v2771_v18  ;;  %1209 = vmatpush.msrb.mxu1 %v2774_v11 }
 0x271   :  { %1229 = vmatpush.msrb.mxu2 %v2777_v61  ;;  %1249 = vmatpush.msrb.mxu3 %v2780_v31 }
 0x272   :  { %1190 = vmatpush.msra.mxu0 %v2783_v12  ;;  %1210 = vmatpush.msrb.mxu1 %v2786_v8 }
 0x273   :  { %1230 = vmatpush.msrb.mxu2 %v2789_v57  ;;  %1250 = vmatpush.msrb.mxu3 %v2792_v59 }
 0x274   :  { %1191 = vmatpush.msra.mxu0 %v2795_v63  ;;  %1211 = vmatpush.msrb.mxu1 %v2798_v9 }
 0x275   :  { %1231 = vmatpush.msrb.mxu2 %v2801_v13  ;;  %1251 = vmatpush.msrb.mxu3 %v2804_v14 }
 0x276   :  { %1192 = vmatpush.msra.mxu0 %v2807_v15  ;;  %1212 = vmatpush.msrb.mxu1 %v2810_v16 }
 0x277   :  { %1232 = vmatpush.msrb.mxu2 %v3345_v27  ;;  %1252 = vmatpush.msrb.mxu3 %v3346_v17 }
 0x278   :  { %1193 = vmatpush.msra.mxu0 %v3347_v19  ;;  %1213 = vmatpush.msrb.mxu1 %v3348_v21 }
 0x279   :  { %1233 = vmatpush.msrb.mxu2 %v3349_v24  ;;  %1253 = vmatpush.msrb.mxu3 %v3350_v26 }
 0x27a   :  { %1194 = vmatpush.msra.mxu0 %v3351_v45  ;;  %1214 = vmatpush.msrb.mxu1 %v3352_v37 }
 0x27b   :  { %1234 = vmatpush.msrb.mxu2 %v3353_v32  ;;  %1254 = vmatpush.msrb.mxu3 %v2924_v39 }
 0x27c   :  { %1195 = vmatpush.msra.mxu0 %v3355_v22  ;;  %1215 = vmatpush.msrb.mxu1 %v3356_v43 }
 0x27d   :  { %1235 = vmatpush.msrb.mxu2 %v2929_v33  ;;  %1255 = vmatpush.msrb.mxu3 %v2932_v29 }
 0x27e   :  { %1196 = vmatpush.msra.mxu0 %v3359_v34  ;;  %1216 = vmatpush.msrb.mxu1 %v3360_v42  ;;  %v3372_v42 = vld [vmem:[#allocation57_spill] sm:$0xff] }
 0x27f   :  { %1236 = vmatpush.msrb.mxu2 %v2937_v40  ;;  %1256 = vmatpush.msrb.mxu3 %v2940_v38  ;;  %v3371_v38 = vld [vmem:[#allocation53_spill] sm:$0xff] }
 0x280   :  { %1197 = vmatpush.msra.mxu0 %v3363_v41  ;;  %1217 = vmatpush.msrb.mxu1 %v2944_v30  ;;  %v2960_v41 = vld [vmem:[#allocation10 + $0x18] sm:$0xff] }
 0x281   :  { %1237 = vmatpush.msrb.mxu2 %v2947_v35  ;;  %1257 = vmatpush.msrb.mxu3 %v2950_v25  ;;  %3370 = vst [vmem:[#allocation44_spill] sm:$0xff] %v2960_v41 }
 0x282   :  { %1198 = vmatpush.msra.mxu0 %v3367_v23  ;;  %1218 = vmatpush.msrb.mxu1 %v2954_v28  ;;  %v3373_v28 = vld [vmem:[#allocation59_spill] sm:$0xff] }
 0x283   :  { %1238 = vmatpush.msrb.mxu2 %v2957_v20  ;;  %1258 = vmatpush.msrb.mxu3 %v2960_v41 }
 0x2df   :  { %v896_v30 = vpop.f32.mrf.mxu0  ;;  %v916_v35 = vpop.f32.mrf.mxu1 }
 0x2e0   :  { %v959_v40 = vadd.f32 %v896_v30, %v3371_v38  ;;  %v960_v25 = vadd.f32 %v916_v35, %v3372_v42  ;;  %v3374_v42 = vld [vmem:[#allocation60_spill] sm:$0xff] }
 0x2e2   :  { %v1740_v34 = vmul.f32 -1.442695, %v959_v40  ;;  %v1741_v23 = vmul.f32 -1.442695, %v960_v25 }
 0x2e4   :  { %1821 = vpow2.f32 %v1740_v34 }
 0x2e5   :  { %1823 = vpow2.f32 %v1741_v23 }
 0x2e6   :  { %v936_v29 = vpop.f32.mrf.mxu2  ;;  %v956_v41 = vpop.f32.mrf.mxu3 }
 0x2e7   :  { %v961_v33 = vadd.f32 %v936_v29, %v3373_v28  ;;  %v962_v40 = vadd.f32 %v956_v41, %v3374_v42 }
 0x2e9   :  { %v1742_v43 = vmul.f32 -1.442695, %v961_v33 }
 0x2ea   :  { %v1822_v22 = vpop.eup %1821 }
 0x2eb   :  { %v1824_v20 = vpop.eup %1823  ;;  %v972_v39 = vadd.f32 1.0, %v1822_v22  ;;  %1825 = vpow2.f32 %v1742_v43 }
 0x2ec   :  { %v973_v32 = vadd.f32 1.0, %v1824_v20 }
 0x2ed   :  { %1827 = vrcp.f32 %v972_v39  ;;  %v986_v33 = vand.u32 2147483648, %v972_v39  ;;  %v984_v43 = vand.u32 2147483647, %v972_v39  ;;  %vm980_vm7 = vweird.f32 %v972_v39 }
 0x2ee   :  { %1829 = vrcp.f32 %v973_v32  ;;  %v1001_v28 = vand.u32 2147483648, %v973_v32  ;;  %v999_v45 = vand.u32 2147483647, %v973_v32  ;;  %vm995_vm8 = vweird.f32 %v973_v32 }
 0x2ef   :  { %v987_v42 = vor.u32 1.1754944e-38, %v986_v33  ;;  %vm985_vm11 = vcmp.eq.f32.partialorder %v984_v43, 8.507059e+37 }
 0x2f0   :  { %vm1000_vm12 = vcmp.eq.f32.partialorder %v999_v45, 8.507059e+37 }
 0x2f1   :  { %v1826_v37 = vpop.eup %1825 }
 0x2f2   :  { %v974_v38 = vadd.f32 1.0, %v1826_v37 }
 0x2f3   :  { %v1828_v30 = vpop.eup %1827 }
 0x2f4   :  { %v1830_v35 = vpop.eup %1829  ;;  %v976_v34 = vmul.f32 %v1828_v30, %v972_v39  ;;  %1831 = vrcp.f32 %v974_v38  ;;  %vm981_vm5 = vweird.f32 %v1828_v30  ;;  %v1016_v33 = vand.u32 2147483648, %v974_v38 }
 0x2f5   :  { %v991_v25 = vmul.f32 %v1830_v35, %v973_v32  ;;  %1833 = vtanh.f32 %v962_v40  ;;  %vm996_vm6 = vweird.f32 %v1830_v35  ;;  %vm982_vm9 = vmor %vm980_vm7, %vm981_vm5  ;;  %vm1010_vm14 = vweird.f32 %v974_v38 }
 0x2f6   :  { %v977_v23 = vsub.f32 1.0, %v976_v34  ;;  %vm997_vm10 = vmor %vm995_vm8, %vm996_vm6  ;;  %v1002_v34 = vor.u32 1.1754944e-38, %v1001_v28  ;;  %v1017_v43 = vor.u32 1.1754944e-38, %v1016_v33  ;;  %v3393_v33 = vld [vmem:[#allocation38_spill] sm:$0xff] }
 0x2f7   :  { %v992_v29 = vsub.f32 1.0, %v991_v25 }
 0x2f8   :  { %v978_v22 = vmul.f32 %v1828_v30, %v977_v23 }
 0x2f9   :  { %v993_v20 = vmul.f32 %v1830_v35, %v992_v29 }
 0x2fa   :  { %v1832_v26 = vpop.eup %1831  ;;  %v979_v37 = vadd.f32 %v1828_v30, %v978_v22 }
 0x2fb   :  { %v1006_v41 = vmul.f32 %v1832_v26, %v974_v38  ;;  %v994_v24 = vadd.f32 %v1830_v35, %v993_v20  ;;  %v1834_v40 = vpop.eup %1833  ;;  %vm1011_vm13 = vweird.f32 %v1832_v26  ;;  %v3382_v20 = vld [vmem:[#allocation25_spill] sm:$0xff] }
 0x2fc   :  { %v983_v25 = vsel %vm982_vm9, %v1828_v30, %v979_v37  ;;  %v1014_v30 = vand.u32 2147483647, %v974_v38  ;;  %vm1012_vm15 = vmor %vm1010_vm14, %vm1011_vm13  ;;  %v3380_v38 = vld [vmem:[#allocation28_spill] sm:$0xff]  ;;  %v3383_v37 = vld [vmem:[#allocation30_spill] sm:$0xff] }
 0x2fd   :  { %v1007_v21 = vsub.f32 1.0, %v1006_v41  ;;  %v988_v23 = vsel %vm985_vm11, %v987_v42, %v983_v25  ;;  %v998_v19 = vsel %vm997_vm10, %v1830_v35, %v994_v24  ;;  %v3381_v35 = vld [vmem:[#allocation23_spill] sm:$0xff]  ;;  %v3384_v41 = vld [vmem:[#allocation33_spill] sm:$0xff]  ;;  %v3385_v42 = vld [vmem:[#allocation32_spill] sm:$0xff] }
 0x2fe   :  { %v1003_v29 = vsel %vm1000_vm12, %v1002_v34, %v998_v19  ;;  %v1022_v17 = vmul.f32 %v1834_v40, %v988_v23  ;;  %vm1015_vm0 = vcmp.eq.f32.partialorder %v1014_v30, 8.507059e+37  ;;  %v3386_v34 = vld [vmem:[#allocation24_spill] sm:$0xff]  ;;  %v3387_v25 = vld [vmem:[#allocation37_spill] sm:$0xff] }
 0x2ff   :  { %v1021_v27 = vmul.f32 %v1003_v29, %v2874_v36  ;;  %v1008_v22 = vmul.f32 %v1832_v26, %v1007_v21  ;;  %v3375_v36 = vld [vmem:[#allocation21_spill] sm:$0xff]  ;;  %v3378_v21 = vld [vmem:[#allocation20_spill] sm:$0xff]  ;;  %v3390_v29 = vld [vmem:[#allocation34_spill] sm:$0xff] }
 0x300   :  { %v3388_v40 = vld [vmem:[#allocation40_spill] sm:$0xff]  ;;  %v3389_v23 = vld [vmem:[#allocation29_spill] sm:$0xff] }
 0x301   :  { %v2968_v39 = vadd.f32 %v1022_v17, %v1021_v27  ;;  %v1009_v32 = vadd.f32 %v1832_v26, %v1008_v22  ;;  %v3376_v27 = vld [vmem:[#allocation22_spill] sm:$0xff]  ;;  %v3377_v17 = vld [vmem:[#allocation19_spill] sm:$0xff]  ;;  %v3394_v30 = vld [vmem:[#allocation41_spill] sm:$0xff] }
 0x302   :  { %v3391_v22 = vld [vmem:[#allocation31_spill] sm:$0xff] }
 0x303   :  { %1835 = vtanh.f32 %v2968_v39  ;;  %v1013_v28 = vsel %vm1012_vm15, %v1832_v26, %v1009_v32  ;;  %v3379_v26 = vld [vmem:[#allocation26_spill] sm:$0xff]  ;;  %v3392_v32 = vld [vmem:[#allocation36_spill] sm:$0xff] }
 0x304   :  { %v1018_v45 = vsel %vm1015_vm0, %v1017_v43, %v1013_v28  ;;  %v3395_v28 = vld [vmem:[#allocation42_spill] sm:$0xff]  ;;  %v3396_v43 = vld [vmem:[#allocation35_spill] sm:$0xff] }
 0x309   :  { %v1836_v24 = vpop.eup %1835 }
 0x30a   :  { %v1025_v19 = vmul.f32 %v1836_v24, %v1018_v45  ;;  %v3397_v24 = vld [vmem:[#allocation27_spill] sm:$0xff] }
 0x30b   :  { %v3398_v45 = vld [vmem:[#allocation39_spill] sm:$0xff] }
 0x30c   :  { %1047 = vmatmul.f32.vlgmr.msrb.gmra.mxu0 %v1025_v19  ;;  %1067 = vmatmul.f32.vlgmr.msra.gmra.mxu1 %v1025_v19 }
 0x30d   :  { %1087 = vmatmul.f32.vlgmr.msra.gmra.mxu2 %v1025_v19  ;;  %1107 = vmatmul.f32.vlgmr.msra.gmra.mxu3 %v1025_v19  ;;  %v3399_v19 = vld [vmem:[#allocation43_spill] sm:$0xff] }
 0x30e   :  { %1335 = vmatpush.msrb.mxu0 %v2699_v56  ;;  %1355 = vmatpush.msra.mxu1 %v2702_v46 }
 0x30f   :  { %1375 = vmatpush.msra.mxu2 %v2705_v47  ;;  %1395 = vmatpush.msra.mxu3 %v2708_v48 }
 0x310   :  { %1336 = vmatpush.msrb.mxu0 %v2711_v49  ;;  %1356 = vmatpush.msra.mxu1 %v2714_v50 }
 0x311   :  { %1376 = vmatpush.msra.mxu2 %v2717_v51  ;;  %1396 = vmatpush.msra.mxu3 %v2720_v52 }
 0x312   :  { %1337 = vmatpush.msrb.mxu0 %v2723_v53  ;;  %1357 = vmatpush.msra.mxu1 %v2726_v55 }
 0x313   :  { %1377 = vmatpush.msra.mxu2 %v2729_v2  ;;  %1397 = vmatpush.msra.mxu3 %v2732_v6 }
 0x314   :  { %1338 = vmatpush.msrb.mxu0 %v2735_v4  ;;  %1358 = vmatpush.msra.mxu1 %v2738_v3 }
 0x315   :  { %1378 = vmatpush.msra.mxu2 %v2741_v44  ;;  %1398 = vmatpush.msra.mxu3 %v2744_v58 }
 0x316   :  { %1339 = vmatpush.msrb.mxu0 %v2747_v54  ;;  %1359 = vmatpush.msra.mxu1 %v2750_v5 }
 0x317   :  { %1379 = vmatpush.msra.mxu2 %v2753_v7  ;;  %1399 = vmatpush.msra.mxu3 %v2756_v0 }
 0x318   :  { %1340 = vmatpush.msrb.mxu0 %v2759_v10  ;;  %1360 = vmatpush.msra.mxu1 %v2762_v60 }
 0x319   :  { %1380 = vmatpush.msra.mxu2 %v2765_v1  ;;  %1400 = vmatpush.msra.mxu3 %v2768_v62 }
 0x31a   :  { %1341 = vmatpush.msrb.mxu0 %v2771_v18  ;;  %1361 = vmatpush.msra.mxu1 %v2774_v11 }
 0x31b   :  { %1381 = vmatpush.msra.mxu2 %v2777_v61  ;;  %1401 = vmatpush.msra.mxu3 %v2780_v31 }
 0x31c   :  { %1342 = vmatpush.msrb.mxu0 %v2783_v12  ;;  %1362 = vmatpush.msra.mxu1 %v2786_v8 }
 0x31d   :  { %1382 = vmatpush.msra.mxu2 %v2789_v57  ;;  %1402 = vmatpush.msra.mxu3 %v2792_v59 }
 0x31e   :  { %1343 = vmatpush.msrb.mxu0 %v2795_v63  ;;  %1363 = vmatpush.msra.mxu1 %v2798_v9 }
 0x31f   :  { %1383 = vmatpush.msra.mxu2 %v2801_v13  ;;  %1403 = vmatpush.msra.mxu3 %v2804_v14 }
 0x320   :  { %1344 = vmatpush.msrb.mxu0 %v2807_v15  ;;  %1364 = vmatpush.msra.mxu1 %v2810_v16 }
 0x321   :  { %1384 = vmatpush.msra.mxu2 %v3375_v36  ;;  %1404 = vmatpush.msra.mxu3 %v3376_v27 }
 0x322   :  { %1345 = vmatpush.msrb.mxu0 %v3377_v17  ;;  %1365 = vmatpush.msra.mxu1 %v3378_v21 }
 0x323   :  { %1385 = vmatpush.msra.mxu2 %v3379_v26  ;;  %1405 = vmatpush.msra.mxu3 %v3380_v38 }
 0x324   :  { %1346 = vmatpush.msrb.mxu0 %v3381_v35  ;;  %1366 = vmatpush.msra.mxu1 %v3382_v20 }
 0x325   :  { %1386 = vmatpush.msra.mxu2 %v3383_v37  ;;  %1406 = vmatpush.msra.mxu3 %v3384_v41 }
 0x326   :  { %1347 = vmatpush.msrb.mxu0 %v3385_v42  ;;  %1367 = vmatpush.msra.mxu1 %v3386_v34 }
 0x327   :  { %1387 = vmatpush.msra.mxu2 %v3387_v25  ;;  %1407 = vmatpush.msra.mxu3 %v3388_v40  ;;  %v3401_v40 = vld [vmem:[#allocation58_spill] sm:$0xff]  ;;  %v3402_v25 = vld [vmem:[#allocation61_spill] sm:$0xff] }
 0x328   :  { %1348 = vmatpush.msrb.mxu0 %v3389_v23  ;;  %1368 = vmatpush.msra.mxu1 %v3390_v29  ;;  %v3400_v23 = vld [vmem:[#allocation44_spill] sm:$0xff] }
 0x329   :  { %1388 = vmatpush.msra.mxu2 %v3391_v22  ;;  %1408 = vmatpush.msra.mxu3 %v3392_v32 }
 0x32a   :  { %1349 = vmatpush.msrb.mxu0 %v3393_v33  ;;  %1369 = vmatpush.msra.mxu1 %v3394_v30 }
 0x32b   :  { %1389 = vmatpush.msra.mxu2 %v3395_v28  ;;  %1409 = vmatpush.msra.mxu3 %v3396_v43  ;;  %v3403_v43 = vld [vmem:[#allocation62_spill] sm:$0xff] }
 0x32c   :  { %1350 = vmatpush.msrb.mxu0 %v3397_v24  ;;  %1370 = vmatpush.msra.mxu1 %v3398_v45 }
 0x32d   :  { %1390 = vmatpush.msra.mxu2 %v3399_v19  ;;  %1410 = vmatpush.msra.mxu3 %v3400_v23 }
 0x389   :  { %v1048_v29 = vpop.f32.mrf.mxu0  ;;  %v1068_v22 = vpop.f32.mrf.mxu1 }
 0x38a   :  { %v1111_v32 = vadd.f32 %v1048_v29, %v3401_v40  ;;  %v1112_v33 = vadd.f32 %v1068_v22, %v3402_v25  ;;  %v3404_v25 = vld [vmem:[#allocation63_spill] sm:$0xff] }
 0x38c   :  { %v1743_v34 = vmul.f32 -1.442695, %v1111_v32  ;;  %v1744_v30 = vmul.f32 -1.442695, %v1112_v33 }
 0x38e   :  { %1837 = vpow2.f32 %v1743_v34 }
 0x38f   :  { %1839 = vpow2.f32 %v1744_v30 }
 0x390   :  { %v1088_v28 = vpop.f32.mrf.mxu2  ;;  %v1108_v23 = vpop.f32.mrf.mxu3 }
 0x391   :  { %v1113_v42 = vadd.f32 %v1088_v28, %v3403_v43  ;;  %v1114_v22 = vadd.f32 %v1108_v23, %v3404_v25 }
 0x393   :  { %v1745_v24 = vmul.f32 -1.442695, %v1113_v42 }
 0x394   :  { %v1838_v41 = vpop.eup %1837 }
 0x395   :  { %v1840_v45 = vpop.eup %1839  ;;  %v1124_v37 = vadd.f32 1.0, %v1838_v41  ;;  %1841 = vpow2.f32 %v1745_v24 }
 0x396   :  { %v1125_v19 = vadd.f32 1.0, %v1840_v45 }
 0x397   :  { %1843 = vrcp.f32 %v1124_v37  ;;  %v1138_v42 = vand.u32 2147483648, %v1124_v37  ;;  %v1136_v24 = vand.u32 2147483647, %v1124_v37  ;;  %vm1132_vm3 = vweird.f32 %v1124_v37 }
 0x398   :  { %1845 = vrcp.f32 %v1125_v19  ;;  %v1153_v43 = vand.u32 2147483648, %v1125_v19  ;;  %v1151_v35 = vand.u32 2147483647, %v1125_v19  ;;  %vm1147_vm4 = vweird.f32 %v1125_v19 }
 0x399   :  { %v1139_v25 = vor.u32 1.1754944e-38, %v1138_v42  ;;  %vm1137_vm7 = vcmp.eq.f32.partialorder %v1136_v24, 8.507059e+37 }
 0x39a   :  { %vm1152_vm8 = vcmp.eq.f32.partialorder %v1151_v35, 8.507059e+37 }
 0x39b   :  { %v1842_v20 = vpop.eup %1841 }
 0x39c   :  { %v1126_v40 = vadd.f32 1.0, %v1842_v20 }
 0x39d   :  { %v1844_v29 = vpop.eup %1843 }
 0x39e   :  { %v1846_v32 = vpop.eup %1845  ;;  %v1128_v34 = vmul.f32 %v1844_v29, %v1124_v37  ;;  %1847 = vrcp.f32 %v1126_v40  ;;  %vm1133_vm1 = vweird.f32 %v1844_v29  ;;  %v1168_v42 = vand.u32 2147483648, %v1126_v40 }
 0x39f   :  { %v1143_v33 = vmul.f32 %v1846_v32, %v1125_v19  ;;  %1849 = vtanh.f32 %v1114_v22  ;;  %vm1148_vm2 = vweird.f32 %v1846_v32  ;;  %vm1134_vm5 = vmor %vm1132_vm3, %vm1133_vm1  ;;  %vm1162_vm10 = vweird.f32 %v1126_v40 }
 0x3a0   :  { %v1129_v30 = vsub.f32 1.0, %v1128_v34  ;;  %vm1149_vm6 = vmor %vm1147_vm4, %vm1148_vm2  ;;  %v1154_v34 = vor.u32 1.1754944e-38, %v1153_v43  ;;  %v1169_v24 = vor.u32 1.1754944e-38, %v1168_v42 }
 0x3a1   :  { %v1144_v28 = vsub.f32 1.0, %v1143_v33 }
 0x3a2   :  { %v1130_v41 = vmul.f32 %v1844_v29, %v1129_v30 }
 0x3a3   :  { %v1145_v45 = vmul.f32 %v1846_v32, %v1144_v28 }
 0x3a4   :  { %v1848_v38 = vpop.eup %1847  ;;  %v1131_v20 = vadd.f32 %v1844_v29, %v1130_v41 }
 0x3a5   :  { %v1158_v23 = vmul.f32 %v1848_v38, %v1126_v40  ;;  %v1146_v26 = vadd.f32 %v1846_v32, %v1145_v45  ;;  %v1850_v22 = vpop.eup %1849  ;;  %vm1163_vm9 = vweird.f32 %v1848_v38 }
 0x3a6   :  { %v1135_v33 = vsel %vm1134_vm5, %v1844_v29, %v1131_v20  ;;  %v1166_v29 = vand.u32 2147483647, %v1126_v40  ;;  %vm1164_vm11 = vmor %vm1162_vm10, %vm1163_vm9  ;;  %v3434_v20 = vld [vmem:[#allocation66_spill] sm:$0xff] }
 0x3a7   :  { %v1159_v21 = vsub.f32 1.0, %v1158_v23  ;;  %v1140_v30 = vsel %vm1137_vm7, %v1139_v25, %v1135_v33  ;;  %v1150_v17 = vsel %vm1149_vm6, %v1846_v32, %v1146_v26 }
 0x3a8   :  { %v1155_v28 = vsel %vm1152_vm8, %v1154_v34, %v1150_v17  ;;  %v1174_v27 = vmul.f32 %v1850_v22, %v1140_v30  ;;  %vm1167_vm12 = vcmp.eq.f32.partialorder %v1166_v29, 8.507059e+37 }
 0x3a9   :  { %v1173_v36 = vmul.f32 %v1155_v28, %v2968_v39  ;;  %v1160_v41 = vmul.f32 %v1848_v38, %v1159_v21 }
 0x3ab   :  { %v3040_v37 = vadd.f32 %v1174_v27, %v1173_v36  ;;  %v1161_v19 = vadd.f32 %v1848_v38, %v1160_v41 }
 0x3ad   :  { %1851 = vtanh.f32 %v3040_v37  ;;  %v1165_v43 = vsel %vm1164_vm11, %v1848_v38, %v1161_v19 }
 0x3ae   :  { %v1170_v35 = vsel %vm1167_vm12, %v1169_v24, %v1165_v43 }
 0x3b3   :  { %v1852_v26 = vpop.eup %1851 }
 0x3b4   :  { %v1177_v17 = vmul.f32 %v1852_v26, %v1170_v35 }
 0x3b6   :  { %1199 = vmatmul.f32.vlgmr.msra.gmra.mxu0 %v1177_v17  ;;  %1219 = vmatmul.f32.vlgmr.msrb.gmra.mxu1 %v1177_v17 }
 0x3b7   :  { %1239 = vmatmul.f32.vlgmr.msrb.gmra.mxu2 %v1177_v17  ;;  %1259 = vmatmul.f32.vlgmr.msrb.gmra.mxu3 %v1177_v17 }
 0x3b8   :  { %1487 = vmatpush.msra.mxu0 %v2699_v56  ;;  %1507 = vmatpush.msrb.mxu1 %v2702_v46  ;;  %v3405_v56 = vld [vmem:[#allocation21_spill] sm:$0xff]  ;;  %v3406_v46 = vld [vmem:[#allocation22_spill] sm:$0xff] }
 0x3b9   :  { %1527 = vmatpush.msrb.mxu2 %v2705_v47  ;;  %1547 = vmatpush.msrb.mxu3 %v2708_v48  ;;  %v3407_v47 = vld [vmem:[#allocation19_spill] sm:$0xff]  ;;  %v3408_v48 = vld [vmem:[#allocation20_spill] sm:$0xff] }
 0x3ba   :  { %1488 = vmatpush.msra.mxu0 %v2711_v49  ;;  %1508 = vmatpush.msrb.mxu1 %v2714_v50  ;;  %v3409_v49 = vld [vmem:[#allocation26_spill] sm:$0xff]  ;;  %v3410_v50 = vld [vmem:[#allocation28_spill] sm:$0xff] }
 0x3bb   :  { %1528 = vmatpush.msrb.mxu2 %v2717_v51  ;;  %1548 = vmatpush.msrb.mxu3 %v2720_v52  ;;  %v3411_v51 = vld [vmem:[#allocation23_spill] sm:$0xff]  ;;  %v3412_v52 = vld [vmem:[#allocation25_spill] sm:$0xff] }
 0x3bc   :  { %1489 = vmatpush.msra.mxu0 %v2723_v53  ;;  %1509 = vmatpush.msrb.mxu1 %v2726_v55  ;;  %v3413_v53 = vld [vmem:[#allocation30_spill] sm:$0xff]  ;;  %v3414_v55 = vld [vmem:[#allocation33_spill] sm:$0xff] }
 0x3bd   :  { %1529 = vmatpush.msrb.mxu2 %v2729_v2  ;;  %1549 = vmatpush.msrb.mxu3 %v2732_v6  ;;  %v3415_v2 = vld [vmem:[#allocation32_spill] sm:$0xff] }
 0x3be   :  { %1490 = vmatpush.msra.mxu0 %v2735_v4  ;;  %1510 = vmatpush.msrb.mxu1 %v2738_v3  ;;  %v3416_v6 = vld [vmem:[#allocation24_spill] sm:$0xff]  ;;  %v3417_v4 = vld [vmem:[#allocation37_spill] sm:$0xff] }
 0x3bf   :  { %1530 = vmatpush.msrb.mxu2 %v2741_v44  ;;  %1550 = vmatpush.msrb.mxu3 %v2744_v58  ;;  %v3418_v3 = vld [vmem:[#allocation40_spill] sm:$0xff]  ;;  %v3419_v44 = vld [vmem:[#allocation29_spill] sm:$0xff]  ;;  %v3420_v58 = vld [vmem:[#allocation34_spill] sm:$0xff] }
 0x3c0   :  { %1491 = vmatpush.msra.mxu0 %v2747_v54  ;;  %1511 = vmatpush.msrb.mxu1 %v2750_v5  ;;  %v3421_v54 = vld [vmem:[#allocation31_spill] sm:$0xff]  ;;  %v3422_v5 = vld [vmem:[#allocation36_spill] sm:$0xff] }
 0x3c1   :  { %1531 = vmatpush.msrb.mxu2 %v2753_v7  ;;  %1551 = vmatpush.msrb.mxu3 %v2756_v0  ;;  %v3423_v7 = vld [vmem:[#allocation38_spill] sm:$0xff]  ;;  %v3424_v0 = vld [vmem:[#allocation41_spill] sm:$0xff] }
 0x3c2   :  { %1492 = vmatpush.msra.mxu0 %v2759_v10  ;;  %1512 = vmatpush.msrb.mxu1 %v2762_v60  ;;  %v3425_v10 = vld [vmem:[#allocation42_spill] sm:$0xff]  ;;  %v3426_v60 = vld [vmem:[#allocation35_spill] sm:$0xff] }
 0x3c3   :  { %1532 = vmatpush.msrb.mxu2 %v2765_v1  ;;  %1552 = vmatpush.msrb.mxu3 %v2768_v62  ;;  %v3427_v1 = vld [vmem:[#allocation27_spill] sm:$0xff] }
 0x3c4   :  { %1493 = vmatpush.msra.mxu0 %v2771_v18  ;;  %1513 = vmatpush.msrb.mxu1 %v2774_v11  ;;  %v3428_v62 = vld [vmem:[#allocation39_spill] sm:$0xff]  ;;  %v3430_v11 = vld [vmem:[#allocation44_spill] sm:$0xff] }
 0x3c5   :  { %1533 = vmatpush.msrb.mxu2 %v2777_v61  ;;  %1553 = vmatpush.msrb.mxu3 %v2780_v31  ;;  %v3429_v18 = vld [vmem:[#allocation43_spill] sm:$0xff] }
 0x3c6   :  { %1494 = vmatpush.msra.mxu0 %v2783_v12  ;;  %1514 = vmatpush.msrb.mxu1 %v2786_v8  ;;  %v3431_v12 = vld [vmem:[#allocation45_spill] sm:$0xff] }
 0x3c7   :  { %1534 = vmatpush.msrb.mxu2 %v2789_v57  ;;  %1554 = vmatpush.msrb.mxu3 %v2792_v59  ;;  %v3432_v57 = vld [vmem:[#allocation64_spill] sm:$0xff] }
 0x3c8   :  { %1495 = vmatpush.msra.mxu0 %v2795_v63  ;;  %1515 = vmatpush.msrb.mxu1 %v2798_v9 }
 0x3c9   :  { %1535 = vmatpush.msrb.mxu2 %v2801_v13  ;;  %1555 = vmatpush.msrb.mxu3 %v2804_v14  ;;  %v3433_v14 = vld [vmem:[#allocation65_spill] sm:$0xff] }
 0x3ca   :  { %1496 = vmatpush.msra.mxu0 %v2807_v15  ;;  %1516 = vmatpush.msrb.mxu1 %v2810_v16 }
 0x3cb   :  { %1536 = vmatpush.msrb.mxu2 %v3405_v56  ;;  %1556 = vmatpush.msrb.mxu3 %v3406_v46 }
 0x3cc   :  { %1497 = vmatpush.msra.mxu0 %v3407_v47  ;;  %1517 = vmatpush.msrb.mxu1 %v3408_v48 }
 0x3cd   :  { %1537 = vmatpush.msrb.mxu2 %v3409_v49  ;;  %1557 = vmatpush.msrb.mxu3 %v3410_v50 }
 0x3ce   :  { %1498 = vmatpush.msra.mxu0 %v3411_v51  ;;  %1518 = vmatpush.msrb.mxu1 %v3412_v52 }
 0x3cf   :  { %1538 = vmatpush.msrb.mxu2 %v3413_v53  ;;  %1558 = vmatpush.msrb.mxu3 %v3414_v55 }
 0x3d0   :  { %1499 = vmatpush.msra.mxu0 %v3415_v2  ;;  %1519 = vmatpush.msrb.mxu1 %v3416_v6 }
 0x3d1   :  { %1539 = vmatpush.msrb.mxu2 %v3417_v4  ;;  %1559 = vmatpush.msrb.mxu3 %v3418_v3 }
 0x3d2   :  { %1500 = vmatpush.msra.mxu0 %v3419_v44  ;;  %1520 = vmatpush.msrb.mxu1 %v3420_v58 }
 0x3d3   :  { %1540 = vmatpush.msrb.mxu2 %v3421_v54  ;;  %1560 = vmatpush.msrb.mxu3 %v3422_v5 }
 0x3d4   :  { %1501 = vmatpush.msra.mxu0 %v3423_v7  ;;  %1521 = vmatpush.msrb.mxu1 %v3424_v0 }
 0x3d5   :  { %1541 = vmatpush.msrb.mxu2 %v3425_v10  ;;  %1561 = vmatpush.msrb.mxu3 %v3426_v60  ;;  %v3435_v60 = vld [vmem:[#allocation46_spill] sm:$0xff] }
 0x3d6   :  { %1502 = vmatpush.msra.mxu0 %v3427_v1  ;;  %1522 = vmatpush.msrb.mxu1 %v3428_v62  ;;  %v3436_v62 = vld [vmem:[#allocation67_spill] sm:$0xff] }
 0x3d7   :  { %1542 = vmatpush.msrb.mxu2 %v3429_v18  ;;  %1562 = vmatpush.msrb.mxu3 %v3430_v11 }
 0x433   :  { %v1200_v61 = vpop.f32.mrf.mxu0  ;;  %v1220_v31 = vpop.f32.mrf.mxu1 }
 0x434   :  { %v1263_v8 = vadd.f32 %v1200_v61, %v3431_v12  ;;  %v1264_v59 = vadd.f32 %v1220_v31, %v3432_v57  ;;  %v3437_v12 = vld [vmem:[#allocation68_spill] sm:$0xff] }
 0x436   :  { %v1746_v63 = vmul.f32 -1.442695, %v1263_v8  ;;  %v1747_v9 = vmul.f32 -1.442695, %v1264_v59 }
 0x438   :  { %1853 = vpow2.f32 %v1746_v63 }
 0x439   :  { %1855 = vpow2.f32 %v1747_v9 }
 0x43a   :  { %v1240_v13 = vpop.f32.mrf.mxu2  ;;  %v1260_v38 = vpop.f32.mrf.mxu3 }
 0x43b   :  { %v1265_v15 = vadd.f32 %v1240_v13, %v3433_v14  ;;  %v1266_v23 = vadd.f32 %v1260_v38, %v3434_v20 }
 0x43d   :  { %v1748_v16 = vmul.f32 -1.442695, %v1265_v15 }
 0x43e   :  { %v1854_v39 = vpop.eup %1853 }
 0x43f   :  { %v1856_v36 = vpop.eup %1855  ;;  %v1276_v27 = vadd.f32 1.0, %v1854_v39  ;;  %1857 = vpow2.f32 %v1748_v16 }
 0x440   :  { %v1277_v21 = vadd.f32 1.0, %v1856_v36  ;;  %v3438_v36 = vld [vmem:[#allocation69_spill] sm:$0xff] }
 0x441   :  { %1859 = vrcp.f32 %v1276_v27  ;;  %v1290_v28 = vand.u32 2147483648, %v1276_v27  ;;  %v1288_v42 = vand.u32 2147483647, %v1276_v27  ;;  %vm1284_vm15 = vweird.f32 %v1276_v27 }
 0x442   :  { %1861 = vrcp.f32 %v1277_v21  ;;  %v1305_v41 = vand.u32 2147483648, %v1277_v21  ;;  %v1303_v43 = vand.u32 2147483647, %v1277_v21  ;;  %vm1299_vm0 = vweird.f32 %v1277_v21 }
 0x443   :  { %v1291_v17 = vor.u32 1.1754944e-38, %v1290_v28  ;;  %vm1289_vm3 = vcmp.eq.f32.partialorder %v1288_v42, 8.507059e+37 }
 0x444   :  { %v1306_v46 = vor.u32 1.1754944e-38, %v1305_v41  ;;  %vm1304_vm4 = vcmp.eq.f32.partialorder %v1303_v43, 8.507059e+37 }
 0x445   :  { %v1858_v40 = vpop.eup %1857 }
 0x446   :  { %v1278_v32 = vadd.f32 1.0, %v1858_v40 }
 0x447   :  { %v1860_v45 = vpop.eup %1859 }
 0x448   :  { %v1862_v25 = vpop.eup %1861  ;;  %v1280_v34 = vmul.f32 %v1860_v45, %v1276_v27  ;;  %1863 = vrcp.f32 %v1278_v32  ;;  %vm1285_vm13 = vweird.f32 %v1860_v45  ;;  %v1320_v3 = vand.u32 2147483648, %v1278_v32 }
 0x449   :  { %v1295_v33 = vmul.f32 %v1862_v25, %v1277_v21  ;;  %1865 = vtanh.f32 %v1266_v23  ;;  %vm1300_vm14 = vweird.f32 %v1862_v25  ;;  %vm1286_vm1 = vmor %vm1284_vm15, %vm1285_vm13  ;;  %vm1314_vm6 = vweird.f32 %v1278_v32 }
 0x44a   :  { %v1281_v22 = vsub.f32 1.0, %v1280_v34  ;;  %vm1301_vm2 = vmor %vm1299_vm0, %vm1300_vm14  ;;  %v1318_v44 = vand.u32 2147483647, %v1278_v32  ;;  %v1321_v54 = vor.u32 1.1754944e-38, %v1320_v3 }
 0x44b   :  { %v1296_v30 = vsub.f32 1.0, %v1295_v33 }
 0x44c   :  { %v1282_v19 = vmul.f32 %v1860_v45, %v1281_v22  ;;  %vm1319_vm8 = vcmp.eq.f32.partialorder %v1318_v44, 8.507059e+37  ;;  %v1653_v44 = vld [vmem:[#allocation13 + $0x70] sm:$0xff] }
 0x44d   :  { %v1297_v29 = vmul.f32 %v1862_v25, %v1296_v30 }
 0x44e   :  { %v1864_v24 = vpop.eup %1863  ;;  %v1283_v26 = vadd.f32 %v1860_v45, %v1282_v19 }
 0x44f   :  { %v1310_v35 = vmul.f32 %v1864_v24, %v1278_v32  ;;  %v1298_v56 = vadd.f32 %v1862_v25, %v1297_v29  ;;  %v1866_v48 = vpop.eup %1865  ;;  %vm1315_vm5 = vweird.f32 %v1864_v24 }
 0x450   :  { %v1287_v47 = vsel %vm1286_vm1, %v1860_v45, %v1283_v26  ;;  %vm1316_vm7 = vmor %vm1314_vm6, %vm1315_vm5 }
 0x451   :  { %v1311_v49 = vsub.f32 1.0, %v1310_v35  ;;  %v1292_v50 = vsel %vm1289_vm3, %v1291_v17, %v1287_v47  ;;  %v1302_v51 = vsel %vm1301_vm2, %v1862_v25, %v1298_v56 }
 0x452   :  { %v1307_v52 = vsel %vm1304_vm4, %v1306_v46, %v1302_v51  ;;  %v1326_v53 = vmul.f32 %v1866_v48, %v1292_v50 }
 0x453   :  { %v1325_v55 = vmul.f32 %v1307_v52, %v3040_v37  ;;  %v1312_v2 = vmul.f32 %v1864_v24, %v1311_v49 }
 0x455   :  { %v3112_v6 = vadd.f32 %v1326_v53, %v1325_v55  ;;  %v1313_v4 = vadd.f32 %v1864_v24, %v1312_v2 }
 0x457   :  { %1867 = vtanh.f32 %v3112_v6  ;;  %v1317_v58 = vsel %vm1316_vm7, %v1864_v24, %v1313_v4 }
 0x458   :  { %v1322_v7 = vsel %vm1319_vm8, %v1321_v54, %v1317_v58  ;;  %v1652_v58 = vld [vmem:[#allocation13 + $0x68] sm:$0xff]  ;;  %v1651_v54 = vld [vmem:[#allocation13 + $0x60] sm:$0xff] }
 0x45d   :  { %v1868_v5 = vpop.eup %1867 }
 0x45e   :  { %v1329_v0 = vmul.f32 %v1868_v5, %v1322_v7  ;;  %v1650_v5 = vld [vmem:[#allocation13 + $0x58] sm:$0xff]  ;;  %v1649_v7 = vld [vmem:[#allocation13 + $0x50] sm:$0xff] }
 0x460   :  { %1351 = vmatmul.f32.vlgmr.msrb.gmra.mxu0 %v1329_v0  ;;  %1371 = vmatmul.f32.vlgmr.msra.gmra.mxu1 %v1329_v0 }
 0x461   :  { %1391 = vmatmul.f32.vlgmr.msra.gmra.mxu2 %v1329_v0  ;;  %1411 = vmatmul.f32.vlgmr.msra.gmra.mxu3 %v1329_v0  ;;  %v1648_v0 = vld [vmem:[#allocation13 + $0x48] sm:$0xff] }
 0x4dd   :  { %v1352_v37 = vpop.f32.mrf.mxu0  ;;  %v1372_v10 = vpop.f32.mrf.mxu1 }
 0x4de   :  { %v1415_v1 = vadd.f32 %v1352_v37, %v3435_v60  ;;  %v1416_v18 = vadd.f32 %v1372_v10, %v3436_v62  ;;  %v1647_v37 = vld [vmem:[#allocation13 + $0x40] sm:$0xff]  ;;  %v1646_v10 = vld [vmem:[#allocation13 + $0x38] sm:$0xff]  ;;  %v1645_v60 = vld [vmem:[#allocation13 + $0x30] sm:$0xff] }
 0x4e0   :  { %v1749_v11 = vmul.f32 -1.442695, %v1415_v1  ;;  %v1750_v61 = vmul.f32 -1.442695, %v1416_v18  ;;  %v3439_v18 = vld [vmem:[#allocation47_spill] sm:$0xff] }
 0x4e2   :  { %1869 = vpow2.f32 %v1749_v11 }
 0x4e3   :  { %1871 = vpow2.f32 %v1750_v61  ;;  %v3440_v61 = vld [vmem:[#allocation70_spill] sm:$0xff] }
 0x4e4   :  { %v1392_v31 = vpop.f32.mrf.mxu2  ;;  %v1412_v14 = vpop.f32.mrf.mxu3 }
 0x4e5   :  { %v1417_v8 = vadd.f32 %v1392_v31, %v3437_v12  ;;  %v1418_v27 = vadd.f32 %v1412_v14, %v3438_v36  ;;  %v1644_v12 = vld [vmem:[#allocation13 + $0x28] sm:$0xff] }
 0x4e6   :  { %v1640_v14 = vld [vmem:[#allocation13 + $0x8] sm:$0xff] }
 0x4e7   :  { %v1751_v57 = vmul.f32 -1.442695, %v1417_v8 }
 0x4e8   :  { %v1870_v59 = vpop.eup %1869 }
 0x4e9   :  { %v1872_v63 = vpop.eup %1871  ;;  %v1428_v9 = vadd.f32 1.0, %v1870_v59  ;;  %1873 = vpow2.f32 %v1751_v57  ;;  %v1643_v59 = vld [vmem:[#allocation13 + $0x20] sm:$0xff] }
 0x4ea   :  { %v1429_v13 = vadd.f32 1.0, %v1872_v63  ;;  %v1642_v63 = vld [vmem:[#allocation13 + $0x18] sm:$0xff] }
 0x4eb   :  { %1875 = vrcp.f32 %v1428_v9  ;;  %v1442_v20 = vand.u32 2147483648, %v1428_v9  ;;  %v1440_v34 = vand.u32 2147483647, %v1428_v9  ;;  %vm1436_vm11 = vweird.f32 %v1428_v9 }
 0x4ec   :  { %1877 = vrcp.f32 %v1429_v13  ;;  %v1457_v23 = vand.u32 2147483648, %v1429_v13  ;;  %v1455_v22 = vand.u32 2147483647, %v1429_v13  ;;  %vm1451_vm12 = vweird.f32 %v1429_v13 }
 0x4ed   :  { %v1443_v19 = vor.u32 1.1754944e-38, %v1442_v20  ;;  %vm1441_vm15 = vcmp.eq.f32.partialorder %v1440_v34, 8.507059e+37 }
 0x4ee   :  { %v1458_v29 = vor.u32 1.1754944e-38, %v1457_v23  ;;  %vm1456_vm0 = vcmp.eq.f32.partialorder %v1455_v22, 8.507059e+37 }
 0x4ef   :  { %v1874_v15 = vpop.eup %1873 }
 0x4f0   :  { %v1430_v16 = vadd.f32 1.0, %v1874_v15  ;;  %v3441_v15 = vld [vmem:[#allocation71_spill] sm:$0xff] }
 0x4f1   :  { %v1876_v39 = vpop.eup %1875 }
 0x4f2   :  { %v1878_v21 = vpop.eup %1877  ;;  %v1432_v38 = vmul.f32 %v1876_v39, %v1428_v9  ;;  %1879 = vrcp.f32 %v1430_v16  ;;  %vm1437_vm9 = vweird.f32 %v1876_v39  ;;  %v1472_v51 = vand.u32 2147483648, %v1430_v16  ;;  %v1641_v9 = vld [vmem:[#allocation13 + $0x10] sm:$0xff] }
 0x4f3   :  { %v1447_v40 = vmul.f32 %v1878_v21, %v1429_v13  ;;  %1881 = vtanh.f32 %v1418_v27  ;;  %vm1452_vm10 = vweird.f32 %v1878_v21  ;;  %vm1438_vm13 = vmor %vm1436_vm11, %vm1437_vm9  ;;  %vm1466_vm2 = vweird.f32 %v1430_v16 }
 0x4f4   :  { %v1433_v32 = vsub.f32 1.0, %v1432_v38  ;;  %vm1453_vm14 = vmor %vm1451_vm12, %vm1452_vm10  ;;  %v1470_v52 = vand.u32 2147483647, %v1430_v16  ;;  %v1473_v55 = vor.u32 1.1754944e-38, %v1472_v51 }
 0x4f5   :  { %v1448_v45 = vsub.f32 1.0, %v1447_v40 }
 0x4f6   :  { %v1434_v25 = vmul.f32 %v1876_v39, %v1433_v32  ;;  %vm1471_vm4 = vcmp.eq.f32.partialorder %v1470_v52, 8.507059e+37 }
 0x4f7   :  { %v1449_v33 = vmul.f32 %v1878_v21, %v1448_v45 }
 0x4f8   :  { %v1880_v30 = vpop.eup %1879  ;;  %v1435_v28 = vadd.f32 %v1876_v39, %v1434_v25  ;;  %v3442_v25 = vld [vmem:[#allocation72_spill] sm:$0xff] }
 0x4f9   :  { %v1462_v41 = vmul.f32 %v1880_v30, %v1430_v16  ;;  %v1450_v42 = vadd.f32 %v1878_v21, %v1449_v33  ;;  %v1882_v24 = vpop.eup %1881  ;;  %vm1467_vm1 = vweird.f32 %v1880_v30 }
 0x4fa   :  { %v1439_v43 = vsel %vm1438_vm13, %v1876_v39, %v1435_v28  ;;  %vm1468_vm3 = vmor %vm1466_vm2, %vm1467_vm1  ;;  %v1639_v39 = vld [vmem:[#allocation13] sm:$0xff] }
 0x4fb   :  { %v1463_v26 = vsub.f32 1.0, %v1462_v41  ;;  %v1444_v35 = vsel %vm1441_vm15, %v1443_v19, %v1439_v43  ;;  %v1454_v17 = vsel %vm1453_vm14, %v1878_v21, %v1450_v42 }
 0x4fc   :  { %v1459_v56 = vsel %vm1456_vm0, %v1458_v29, %v1454_v17  ;;  %v1478_v46 = vmul.f32 %v1882_v24, %v1444_v35 }
 0x4fd   :  { %v1477_v47 = vmul.f32 %v1459_v56, %v3112_v6  ;;  %v1464_v48 = vmul.f32 %v1880_v30, %v1463_v26  ;;  %v1654_v6 = vld [vmem:[#allocation13 + $0x78] sm:$0xff] }
 0x4fe   :  { %1659 = vmatpush.msrb.mxu0 %v1654_v6 }
 0x4ff   :  { %v3120_v49 = vadd.f32 %v1478_v46, %v1477_v47  ;;  %v1465_v50 = vadd.f32 %v1880_v30, %v1464_v48 }
 0x500   :  { %1660 = vmatpush.msrb.mxu0 %v1653_v44 }
 0x501   :  { %1883 = vtanh.f32 %v3120_v49  ;;  %v1469_v53 = vsel %vm1468_vm3, %v1880_v30, %v1465_v50 }
 0x502   :  { %v1474_v4 = vsel %vm1471_vm4, %v1473_v55, %v1469_v53  ;;  %1661 = vmatpush.msrb.mxu0 %v1652_v58 }
 0x504   :  { %1662 = vmatpush.msrb.mxu0 %v1651_v54 }
 0x506   :  { %1663 = vmatpush.msrb.mxu0 %v1650_v5 }
 0x507   :  { %v1884_v2 = vpop.eup %1883 }
 0x508   :  { %v1481_v3 = vmul.f32 %v1884_v2, %v1474_v4  ;;  %1664 = vmatpush.msrb.mxu0 %v1649_v7 }
 0x50a   :  { %1503 = vmatmul.f32.vlgmr.msra.gmra.mxu0 %v1481_v3  ;;  %1523 = vmatmul.f32.vlgmr.msrb.gmra.mxu1 %v1481_v3 }
 0x50b   :  { %1543 = vmatmul.f32.vlgmr.msrb.gmra.mxu2 %v1481_v3  ;;  %1563 = vmatmul.f32.vlgmr.msrb.gmra.mxu3 %v1481_v3 }
 0x50c   :  { %1665 = vmatpush.msrb.mxu0 %v1648_v0 }
 0x50e   :  { %1666 = vmatpush.msrb.mxu0 %v1647_v37 }
 0x510   :  { %1667 = vmatpush.msrb.mxu0 %v1646_v10 }
 0x512   :  { %1668 = vmatpush.msrb.mxu0 %v1645_v60 }
 0x514   :  { %1669 = vmatpush.msrb.mxu0 %v1644_v12 }
 0x516   :  { %1670 = vmatpush.msrb.mxu0 %v1643_v59 }
 0x518   :  { %1671 = vmatpush.msrb.mxu0 %v1642_v63 }
 0x51a   :  { %1672 = vmatpush.msrb.mxu0 %v1641_v9 }
 0x51c   :  { %1673 = vmatpush.msrb.mxu0 %v1640_v14 }
 0x51e   :  { %1674 = vmatpush.msrb.mxu0 %v1639_v39 }
 0x587   :  { %v1504_v1 = vpop.f32.mrf.mxu0  ;;  %v1524_v62 = vpop.f32.mrf.mxu1 }
 0x588   :  { %v1567_v11 = vadd.f32 %v1504_v1, %v3439_v18  ;;  %v1568_v31 = vadd.f32 %v1524_v62, %v3440_v61 }
 0x58a   :  { %v1752_v8 = vmul.f32 -1.442695, %v1567_v11  ;;  %v1753_v57 = vmul.f32 -1.442695, %v1568_v31 }
 0x58c   :  { %1885 = vpow2.f32 %v1752_v8 }
 0x58d   :  { %1887 = vpow2.f32 %v1753_v57 }
 0x58e   :  { %v1544_v13 = vpop.f32.mrf.mxu2  ;;  %v1564_v32 = vpop.f32.mrf.mxu3 }
 0x58f   :  { %v1569_v16 = vadd.f32 %v1544_v13, %v3441_v15  ;;  %v1570_v34 = vadd.f32 %v1564_v32, %v3442_v25 }
 0x591   :  { %v1754_v36 = vmul.f32 -1.442695, %v1569_v16 }
 0x592   :  { %v1886_v27 = vpop.eup %1885 }
 0x593   :  { %v1888_v21 = vpop.eup %1887  ;;  %v1580_v38 = vadd.f32 1.0, %v1886_v27  ;;  %1889 = vpow2.f32 %v1754_v36 }
 0x594   :  { %v1581_v40 = vadd.f32 1.0, %v1888_v21 }
 0x595   :  { %1891 = vrcp.f32 %v1580_v38  ;;  %v1594_v19 = vand.u32 2147483648, %v1580_v38  ;;  %v1592_v43 = vand.u32 2147483647, %v1580_v38  ;;  %vm1588_vm7 = vweird.f32 %v1580_v38 }
 0x596   :  { %1893 = vrcp.f32 %v1581_v40  ;;  %v1609_v42 = vand.u32 2147483648, %v1581_v40  ;;  %v1607_v26 = vand.u32 2147483647, %v1581_v40  ;;  %vm1603_vm8 = vweird.f32 %v1581_v40 }
 0x597   :  { %v1595_v46 = vor.u32 1.1754944e-38, %v1594_v19  ;;  %vm1593_vm11 = vcmp.eq.f32.partialorder %v1592_v43, 8.507059e+37 }
 0x598   :  { %v1610_v48 = vor.u32 1.1754944e-38, %v1609_v42  ;;  %vm1608_vm12 = vcmp.eq.f32.partialorder %v1607_v26, 8.507059e+37 }
 0x599   :  { %v1890_v45 = vpop.eup %1889 }
 0x59a   :  { %v1582_v20 = vadd.f32 1.0, %v1890_v45 }
 0x59b   :  { %v1892_v23 = vpop.eup %1891 }
 0x59c   :  { %v1894_v33 = vpop.eup %1893  ;;  %v1584_v22 = vmul.f32 %v1892_v23, %v1580_v38  ;;  %1895 = vrcp.f32 %v1582_v20  ;;  %vm1589_vm5 = vweird.f32 %v1892_v23  ;;  %v1624_v54 = vand.u32 2147483648, %v1582_v20 }
 0x59d   :  { %v1599_v30 = vmul.f32 %v1894_v33, %v1581_v40  ;;  %1897 = vtanh.f32 %v1570_v34  ;;  %vm1604_vm6 = vweird.f32 %v1894_v33  ;;  %vm1590_vm9 = vmor %vm1588_vm7, %vm1589_vm5  ;;  %vm1618_vm14 = vweird.f32 %v1582_v20 }
 0x59e   :  { %v1585_v28 = vsub.f32 1.0, %v1584_v22  ;;  %vm1605_vm10 = vmor %vm1603_vm8, %vm1604_vm6  ;;  %v1622_v5 = vand.u32 2147483647, %v1582_v20  ;;  %v1625_v0 = vor.u32 1.1754944e-38, %v1624_v54 }
 0x59f   :  { %v1600_v41 = vsub.f32 1.0, %v1599_v30 }
 0x5a0   :  { %v1586_v29 = vmul.f32 %v1892_v23, %v1585_v28  ;;  %vm1623_vm0 = vcmp.eq.f32.partialorder %v1622_v5, 8.507059e+37 }
 0x5a1   :  { %v1601_v24 = vmul.f32 %v1894_v33, %v1600_v41 }
 0x5a2   :  { %v1896_v35 = vpop.eup %1895  ;;  %v1587_v17 = vadd.f32 %v1892_v23, %v1586_v29 }
 0x5a3   :  { %v1614_v56 = vmul.f32 %v1896_v35, %v1582_v20  ;;  %v1602_v47 = vadd.f32 %v1894_v33, %v1601_v24  ;;  %v1898_v51 = vpop.eup %1897  ;;  %vm1619_vm13 = vweird.f32 %v1896_v35 }
 0x5a4   :  { %v1591_v50 = vsel %vm1590_vm9, %v1892_v23, %v1587_v17  ;;  %vm1620_vm15 = vmor %vm1618_vm14, %vm1619_vm13 }
 0x5a5   :  { %v1615_v52 = vsub.f32 1.0, %v1614_v56  ;;  %v1596_v53 = vsel %vm1593_vm11, %v1595_v46, %v1591_v50  ;;  %v1606_v55 = vsel %vm1605_vm10, %v1894_v33, %v1602_v47 }
 0x5a6   :  { %v1611_v2 = vsel %vm1608_vm12, %v1610_v48, %v1606_v55  ;;  %v1630_v4 = vmul.f32 %v1898_v51, %v1596_v53 }
 0x5a7   :  { %v1629_v3 = vmul.f32 %v1611_v2, %v3120_v49  ;;  %v1616_v6 = vmul.f32 %v1896_v35, %v1615_v52  ;;  %v1772_v49 = vld [vmem:[%s3139_s5] ss:$0 sm:$0xff] }
 0x5a9   :  { %v1631_v44 = vadd.f32 %v1630_v4, %v1629_v3  ;;  %v1617_v58 = vadd.f32 %v1896_v35, %v1616_v6 }
 0x5ab   :  { %1899 = vtanh.f32 %v1631_v44  ;;  %v1621_v7 = vsel %vm1620_vm15, %v1896_v35, %v1617_v58 }
 0x5ac   :  { %v1626_v10 = vsel %vm1623_vm0, %v1625_v0, %v1621_v7 }
 0x5b1   :  { %v1900_v37 = vpop.eup %1899 }
 0x5b2   :  { %v1633_v60 = vmul.f32 %v1900_v37, %v1626_v10 }
 0x5b4   :  { %1675 = vmatmul.f32.vlgmr.msrb.gmra.mxu0 %v1633_v60 }
 0x631   :  { %v1676_v1 = vpop.f32.mrf.mxu0 }
 0x632   :  { %v1677_v62 = vadd.f32 %v1772_v49, %v1676_v1 }
 0x634   :  { %1679 = vst [vmem:[#allocation14] sm:$0xff] %v1677_v62 }
 0x635   :  { %1690 = dma.vmem_to_hbm [thread:$0]  %s1686_s24, 128, %s1688_s27, [#allocation7]  }
 0x636   :  { %2115 = dma.done.wait [#allocation7], 128  }
 0x637   :  { %2116 = vsyncadd [#allocation7], 4294967168 }
 0x638   :  { %1695 = vsyncpa [#allocation6], 1 }
 0x639   :  { %1696 = vsyncpa [#allocation9], 1 }
 0x63a   :  { %1697 = vsyncpa [#allocation12], 1 }
 0x63b   :  { %1698 = vsyncpa [#allocation7], 1 }

</bundles_post_ra>
